<compile_context>
chip_gen: v7x
topology: tpu7x:2x2x1
jax: 0.10.0
libtpu: 0.0.40
codegen_flags: <defaults>
</compile_context>

<pallas_src>
import functools

import jax
import jax.numpy as jnp
from jax import lax
from jax.experimental import pallas as pl
from jax.experimental.pallas import tpu as pltpu

EPS = 1e-5


def transformer_layer_kernel(
    x_ref,              # (N, C)  full token sequence of this batch element (f32)
    g1_ref, bt1_ref,    # (1, C)  layernorm1 gamma / beta (f32)
    wq_ref,             # (C, C)  to_queries, pre-scaled by head_dim**-0.5 (bf16)
    wkv_ref,            # (C, 2C) to_keys_values (bf16)
    wp_ref, bp_ref,     # (C, C) bf16, (1, C) f32   project (with bias)
    g2_ref, bt2_ref,    # (1, C)  layernorm2 gamma / beta (f32)
    w1_ref, bb1_ref,    # (C, H) bf16, (1, H) f32   mlp.fc1
    w2_ref, bb2_ref,    # (H, C) bf16, (1, C) f32   mlp.fc2
    o_ref,              # (tq, C) output tile
    k_cache,            # (num_heads, N, hd) bf16 VMEM scratch (per-batch K cache)
    v_cache,            # (num_heads, N, hd) bf16 VMEM scratch (per-batch V cache)
    *, num_heads, tq, mxu_dtype,
):
    qi = pl.program_id(1)
    N, C = x_ref.shape
    hd = C // num_heads

    def layernorm(v, g, b):                       # f32 elementwise (VPU/EUP)
        mu = jnp.mean(v, axis=-1, keepdims=True)
        var = jnp.mean((v - mu) ** 2, axis=-1, keepdims=True)
        return (v - mu) * lax.rsqrt(var + EPS) * g + b

    # ---- K/V branch: computed ONCE per batch element, cached in bf16 --------
    # Valid because the qi axis is "arbitrary" (sequential per core) and the
    # batch axis is the outer grid axis.
    @pl.when(qi == 0)
    def _():
        xn_full = layernorm(x_ref[...], g1_ref[...], bt1_ref[...])       # (N, C)
        kv = jnp.dot(xn_full.astype(mxu_dtype), wkv_ref[...],
                     preferred_element_type=jnp.float32)                 # (N, 2C)
        kvb = kv.astype(mxu_dtype)
        # to_keys_values column layout is (keys|values) x (head, hd); store the
        # cache head-major so the per-tile batched matmuls need no relayout.
        k_cache[...] = jnp.stack(
            [kvb[:, h * hd:(h + 1) * hd] for h in range(num_heads)], axis=0)
        v_cache[...] = jnp.stack(
            [kvb[:, C + h * hd:C + (h + 1) * hd] for h in range(num_heads)], axis=0)

    # ---- this query-row tile ------------------------------------------------
    row0 = pl.multiple_of(qi * tq, tq)
    xt = x_ref[pl.ds(row0, tq), :]                                       # (tq, C) f32
    xn_t = layernorm(xt, g1_ref[...], bt1_ref[...])

    # Wq already carries the 1/sqrt(hd) scale (folded on host).
    q = jnp.dot(xn_t.astype(mxu_dtype), wq_ref[...],
                preferred_element_type=jnp.float32)                      # (tq, C)
    qb = q.astype(mxu_dtype)
    qh = jnp.stack([qb[:, h * hd:(h + 1) * hd] for h in range(num_heads)],
                   axis=0)                                               # (H, tq, hd)

    # Batched-head attention: one MXU contraction per matmul (head = batch dim).
    s = lax.dot_general(qh, k_cache[...], (((2,), (2,)), ((0,), (0,))),
                        preferred_element_type=jnp.float32)              # (H, tq, N)
    s = s - jnp.max(s, axis=-1, keepdims=True)
    p = jnp.exp(s)
    p = p * pl.reciprocal(jnp.sum(p, axis=-1, keepdims=True), approx=True)

    ctx = lax.dot_general(p.astype(mxu_dtype), v_cache[...],
                          (((2,), (1,)), ((0,), (0,))),
                          preferred_element_type=jnp.float32)            # (H, tq, hd)
    # Rebuild one lane-dense (tq, C) value (head order matches project's input
    # column layout); no scratch round-trip before the projection.
    attn = jnp.concatenate([ctx[h] for h in range(num_heads)], axis=-1)  # (tq, C)

    proj = jnp.dot(attn.astype(mxu_dtype), wp_ref[...],
                   preferred_element_type=jnp.float32) + bp_ref[...]
    x1 = xt + proj                                                       # residual 1

    # ---- MLP branch ----------------------------------------------------------
    xn2 = layernorm(x1, g2_ref[...], bt2_ref[...])
    h1 = jnp.dot(xn2.astype(mxu_dtype), w1_ref[...],
                 preferred_element_type=jnp.float32) + bb1_ref[...]
    h1 = jnp.maximum(h1, 0.0)                                            # ReLU
    y = jnp.dot(h1.astype(mxu_dtype), w2_ref[...],
                preferred_element_type=jnp.float32) + bb2_ref[...]
    # TODO(synk): dropout is a no-op here (p=0.0 / eval mode).

    o_ref[...] = (x1 + y).astype(o_ref.dtype)                            # residual 2


def transformer_layer(x, params, num_heads, *, tq=None, mxu_dtype=jnp.bfloat16):
    """Fused TransformerLayer forward (self-attention, mask=None, dropout=0)."""
    B, N, C = x.shape
    H = params["w_fc1"].shape[1]
    assert C % num_heads == 0
    hd = C // num_heads
    if tq is None:
        tq = min(N, 256)     # target 256 on v6e/v7x, 128 on v5e for exact MXU rows
    assert N % tq == 0 and tq % 8 == 0, "tq must divide N and be sublane-aligned"
    nq = N // tq

    # Fold the attention scale into Wq on the host (free); store big weights in
    # bf16 so DMA + VMEM bytes halve.  Biases / norm params stay f32.
    wq = (params["wq"] * (hd ** -0.5)).astype(mxu_dtype)
    wkv = params["wkv"].astype(mxu_dtype)
    wp = params["wp"].astype(mxu_dtype)
    w1 = params["w_fc1"].astype(mxu_dtype)
    w2 = params["w_fc2"].astype(mxu_dtype)

    consts = [
        params["g1"], params["bt1"],      # norm1
        wq, wkv,                          # Wq (pre-scaled), Wkv
        wp, params["bp"],                 # project
        params["g2"], params["bt2"],      # norm2
        w1, params["b_fc1"],              # fc1
        w2, params["b_fc2"],              # fc2
    ]

    kernel = functools.partial(transformer_layer_kernel,
                               num_heads=num_heads, tq=tq, mxu_dtype=mxu_dtype)

    # VMEM budget derived from the real footprint (weights kept conservatively
    # at 2x in case single-buffering is not honored), clamped to [32, 100] MiB.
    itemsize = x.dtype.itemsize
    weight_bytes = sum(int(a.size) * a.dtype.itemsize for a in consts)
    vmem_limit = int(min(max(
        2 * weight_bytes
        + 2 * N * C * itemsize            # double-buffered x block
        + 2 * tq * C * itemsize           # double-buffered out tile
        + 2 * N * 2 * C                   # bf16 K/V cache scratch
        + (16 << 20),                     # intermediates / spill headroom
        32 << 20), 100 << 20))

    def call(weight_pipeline_mode):
        def const_spec(shape):
            nd = len(shape)
            idx = lambda b, qi, _nd=nd: (0,) * _nd
            if weight_pipeline_mode is None:
                return pl.BlockSpec(shape, idx)
            return pl.BlockSpec(shape, idx, pipeline_mode=weight_pipeline_mode)

        in_specs = [pl.BlockSpec((None, N, C), lambda b, qi: (b, 0, 0))]   # x (full seq)
        in_specs += [const_spec(tuple(a.shape)) for a in consts]

        return pl.pallas_call(
            kernel,
            out_shape=jax.ShapeDtypeStruct((B, N, C), x.dtype),
            grid=(B, nq),
            in_specs=in_specs,
            out_specs=pl.BlockSpec((None, tq, C), lambda b, qi: (b, qi, 0)),
            scratch_shapes=[
                pltpu.VMEM((num_heads, N, hd), mxu_dtype),   # K cache (head-major)
                pltpu.VMEM((num_heads, N, hd), mxu_dtype),   # V cache (head-major)
            ],
            compiler_params=pltpu.CompilerParams(
                # qi must be "arbitrary": the KV cache written at qi==0 is reused
                # by the later query tiles of the same batch element.
                dimension_semantics=("parallel", "arbitrary"),
                vmem_limit_bytes=vmem_limit,
            ),
        )(x, *consts)

    try:
        # Single-buffer the never-re-fetched weights/biases (halves their VMEM).
        return call(pl.Buffered(1))
    except Exception:
        # Fallback: default double buffering (still correct, slightly more VMEM).
        return call(None)


def reference(x, params, num_heads):
    """Pure-JAX f32 reference mirroring the PyTorch module (dropout=0, eval)."""
    def ln(v, g, b):
        mu = v.mean(-1, keepdims=True)
        var = ((v - mu) ** 2).mean(-1, keepdims=True)
        return (v - mu) / jnp.sqrt(var + EPS) * g + b

    B, N, C = x.shape
    hd = C // num_heads
    xn = ln(x, params["g1"][0], params["bt1"][0])
    q = xn @ params["wq"]
    kv = xn @ params["wkv"]
    k, v = kv[..., :C], kv[..., C:]
    qh = q.reshape(B, N, num_heads, hd)
    kh = k.reshape(B, N, num_heads, hd)
    vh = v.reshape(B, N, num_heads, hd)
    att = jnp.einsum("bnhd,bmhd->bnmh", qh, kh) * hd ** -0.5
    att = jax.nn.softmax(att, axis=2)
    out = jnp.einsum("bnmh,bmhd->bnhd", att, vh).reshape(B, N, C)
    out = out @ params["wp"] + params["bp"][0]
    x1 = x + out
    xn2 = ln(x1, params["g2"][0], params["bt2"][0])
    h1 = jax.nn.relu(xn2 @ params["w_fc1"] + params["b_fc1"][0])
    y = h1 @ params["w_fc2"] + params["b_fc2"][0]
    return x1 + y


def init_params(key, dim_self, dim_ref, num_heads, mlp_ratio=4.0):
    C, H = dim_self, int(dim_self * mlp_ratio)
    keys = jax.random.split(key, 8)
    s = 0.05
    return {
        "g1": jnp.ones((1, C), jnp.float32),
        "bt1": jnp.zeros((1, C), jnp.float32),
        "wq": s * jax.random.normal(keys[0], (C, C), jnp.float32),        # (in, out)
        "wkv": s * jax.random.normal(keys[1], (dim_ref, 2 * C), jnp.float32),
        "wp": s * jax.random.normal(keys[2], (C, C), jnp.float32),
        "bp": s * jax.random.normal(keys[3], (1, C), jnp.float32),
        "g2": jnp.ones((1, C), jnp.float32),
        "bt2": jnp.zeros((1, C), jnp.float32),
        "w_fc1": s * jax.random.normal(keys[4], (C, H), jnp.float32),
        "b_fc1": s * jax.random.normal(keys[5], (1, H), jnp.float32),
        "w_fc2": s * jax.random.normal(keys[6], (H, C), jnp.float32),
        "b_fc2": s * jax.random.normal(keys[7], (1, C), jnp.float32),
    }


if __name__ == "__main__":
    # Small but lane/sublane-aligned demo shapes: C multiple of 128, N multiple
    # of 8.  tq=8 -> grid=(2, 2), so the KV caching across the qi axis is
    # actually exercised (never benchmark at this tq; production uses 128/256).
    B, N, C = 2, 16, 128
    NUM_HEADS = 4            # head_dim = 32
    TQ = 8

    key = jax.random.PRNGKey(0)
    kx, kp = jax.random.split(key)
    x = jax.random.normal(kx, (B, N, C), jnp.float32)
    params = init_params(kp, C, C, NUM_HEADS)

    out = jax.block_until_ready(transformer_layer(x, params, NUM_HEADS, tq=TQ))
    ref = reference(x, params, NUM_HEADS)

    assert out.shape == (B, N, C)
    # bf16 MXU inputs + approx reciprocal vs. an f32 reference -> loose tolerance.
    max_err = jnp.max(jnp.abs(out - ref))
    assert jnp.allclose(out, ref, rtol=3e-2, atol=3e-2), f"max abs err = {max_err}"

    print("KERNEL_OK")
</pallas_src>

<mosaic_0001>
module attributes {stable_mosaic.version = 11 : i64} {
  func.func @transformer_layer_kernel(%arg0: i32, %arg1: i32, %arg2: memref<1x16x128xf32, #tpu.memory_space<vmem>>, %arg3: memref<1x128xf32, #tpu.memory_space<vmem>>, %arg4: memref<1x128xf32, #tpu.memory_space<vmem>>, %arg5: memref<128x128xbf16, #tpu.memory_space<vmem>>, %arg6: memref<128x256xbf16, #tpu.memory_space<vmem>>, %arg7: memref<128x128xbf16, #tpu.memory_space<vmem>>, %arg8: memref<1x128xf32, #tpu.memory_space<vmem>>, %arg9: memref<1x128xf32, #tpu.memory_space<vmem>>, %arg10: memref<1x128xf32, #tpu.memory_space<vmem>>, %arg11: memref<128x512xbf16, #tpu.memory_space<vmem>>, %arg12: memref<1x512xf32, #tpu.memory_space<vmem>>, %arg13: memref<512x128xbf16, #tpu.memory_space<vmem>>, %arg14: memref<1x128xf32, #tpu.memory_space<vmem>>, %arg15: memref<1x8x128xf32, #tpu.memory_space<vmem>>, %arg16: memref<4x16x32xbf16, #tpu.memory_space<vmem>>, %arg17: memref<4x16x32xbf16, #tpu.memory_space<vmem>>) attributes {dimension_semantics = [#tpu.dimension_semantics<parallel>, #tpu.dimension_semantics<arbitrary>], iteration_bounds = array<i64: 2, 2>, scalar_prefetch = 0 : i64, scratch_operands = 2 : i64, tpu.core_type = #tpu.core_type<tc>, window_params = [{transform_indices = @transform_0, window_bounds = array<i64: 1, 16, 128>}, {pipeline_mode = #tpu.pipeline_mode<synchronous>, transform_indices = @transform_1, window_bounds = array<i64: 1, 128>}, {pipeline_mode = #tpu.pipeline_mode<synchronous>, transform_indices = @transform_2, window_bounds = array<i64: 1, 128>}, {pipeline_mode = #tpu.pipeline_mode<synchronous>, transform_indices = @transform_3, window_bounds = array<i64: 128, 128>}, {pipeline_mode = #tpu.pipeline_mode<synchronous>, transform_indices = @transform_4, window_bounds = array<i64: 128, 256>}, {pipeline_mode = #tpu.pipeline_mode<synchronous>, transform_indices = @transform_5, window_bounds = array<i64: 128, 128>}, {pipeline_mode = #tpu.pipeline_mode<synchronous>, transform_indices = @transform_6, window_bounds = array<i64: 1, 128>}, {pipeline_mode = #tpu.pipeline_mode<synchronous>, transform_indices = @transform_7, window_bounds = array<i64: 1, 128>}, {pipeline_mode = #tpu.pipeline_mode<synchronous>, transform_indices = @transform_8, window_bounds = array<i64: 1, 128>}, {pipeline_mode = #tpu.pipeline_mode<synchronous>, transform_indices = @transform_9, window_bounds = array<i64: 128, 512>}, {pipeline_mode = #tpu.pipeline_mode<synchronous>, transform_indices = @transform_10, window_bounds = array<i64: 1, 512>}, {pipeline_mode = #tpu.pipeline_mode<synchronous>, transform_indices = @transform_11, window_bounds = array<i64: 512, 128>}, {pipeline_mode = #tpu.pipeline_mode<synchronous>, transform_indices = @transform_12, window_bounds = array<i64: 1, 128>}, {transform_indices = @transform_13, window_bounds = array<i64: 1, 8, 128>}]} {
    %c0_i32 = arith.constant 0 : i32
    %0 = arith.cmpi eq, %arg1, %c0_i32 : i32
    %1 = arith.extui %0 : i1 to i32
    %c0_i32_0 = arith.constant 0 : i32
    %2 = arith.cmpi ne, %1, %c0_i32_0 : i32
    scf.if %2 {
      %c0_51 = arith.constant 0 : index
      %c0_52 = arith.constant 0 : index
      %c0_53 = arith.constant 0 : index
      %118 = vector.load %arg2[%c0_51, %c0_52, %c0_53] : memref<1x16x128xf32, #tpu.memory_space<vmem>>, vector<1x16x128xf32>
      %119 = vector.shape_cast %118 : vector<1x16x128xf32> to vector<16x128xf32>
      %c0_54 = arith.constant 0 : index
      %c0_55 = arith.constant 0 : index
      %120 = vector.load %arg3[%c0_54, %c0_55] : memref<1x128xf32, #tpu.memory_space<vmem>>, vector<1x128xf32>
      %c0_56 = arith.constant 0 : index
      %c0_57 = arith.constant 0 : index
      %121 = vector.load %arg4[%c0_56, %c0_57] : memref<1x128xf32, #tpu.memory_space<vmem>>, vector<1x128xf32>
      %cst_58 = arith.constant dense<0.000000e+00> : vector<16xf32>
      %122 = vector.multi_reduction <add>, %119, %cst_58 [1] : vector<16x128xf32> to vector<16xf32>
      %123 = vector.shape_cast %122 : vector<16xf32> to vector<16x1xf32>
      %cst_59 = arith.constant 1.280000e+02 : f32
      %124 = vector.broadcast %cst_59 : f32 to vector<16x1xf32>
      %125 = arith.divf %123, %124 : vector<16x1xf32>
      %126 = vector.broadcast %125 : vector<16x1xf32> to vector<16x128xf32>
      %127 = arith.subf %119, %126 : vector<16x128xf32>
      %128 = arith.mulf %127, %127 : vector<16x128xf32>
      %cst_60 = arith.constant dense<0.000000e+00> : vector<16xf32>
      %129 = vector.multi_reduction <add>, %128, %cst_60 [1] : vector<16x128xf32> to vector<16xf32>
      %130 = vector.shape_cast %129 : vector<16xf32> to vector<16x1xf32>
      %cst_61 = arith.constant 1.280000e+02 : f32
      %131 = vector.broadcast %cst_61 : f32 to vector<16x1xf32>
      %132 = arith.divf %130, %131 : vector<16x1xf32>
      %133 = vector.broadcast %125 : vector<16x1xf32> to vector<16x128xf32>
      %134 = arith.subf %119, %133 : vector<16x128xf32>
      %cst_62 = arith.constant 9.99999974E-6 : f32
      %135 = vector.broadcast %cst_62 : f32 to vector<16x1xf32>
      %136 = arith.addf %132, %135 : vector<16x1xf32>
      %137 = math.rsqrt %136 : vector<16x1xf32>
      %138 = vector.broadcast %137 : vector<16x1xf32> to vector<16x128xf32>
      %139 = arith.mulf %134, %138 : vector<16x128xf32>
      %140 = vector.broadcast %120 : vector<1x128xf32> to vector<16x128xf32>
      %141 = arith.mulf %139, %140 : vector<16x128xf32>
      %142 = vector.broadcast %121 : vector<1x128xf32> to vector<16x128xf32>
      %143 = arith.addf %141, %142 : vector<16x128xf32>
      %144 = arith.truncf %143 : vector<16x128xf32> to vector<16x128xbf16>
      %c0_63 = arith.constant 0 : index
      %c0_64 = arith.constant 0 : index
      %145 = vector.load %arg6[%c0_63, %c0_64] : memref<128x256xbf16, #tpu.memory_space<vmem>>, vector<128x256xbf16>
      %cst_65 = arith.constant dense<0.000000e+00> : vector<16x256xf32>
      %146 = tpu.matmul %144, %145, %cst_65 {dimension_numbers = #tpu.dot_dimension_numbers<[1], [0], [0], [1], [0, 0, 1, 1], [], []>} : vector<16x128xbf16>, vector<128x256xbf16>, vector<16x256xf32> -> vector<16x256xf32>
      %147 = arith.truncf %146 : vector<16x256xf32> to vector<16x256xbf16>
      %148 = vector.extract_strided_slice %147 {offsets = [0, 0], sizes = [16, 32], strides = [1, 1]} : vector<16x256xbf16> to vector<16x32xbf16>
      %149 = vector.extract_strided_slice %147 {offsets = [0, 32], sizes = [16, 32], strides = [1, 1]} : vector<16x256xbf16> to vector<16x32xbf16>
      %150 = vector.extract_strided_slice %147 {offsets = [0, 64], sizes = [16, 32], strides = [1, 1]} : vector<16x256xbf16> to vector<16x32xbf16>
      %151 = vector.extract_strided_slice %147 {offsets = [0, 96], sizes = [16, 32], strides = [1, 1]} : vector<16x256xbf16> to vector<16x32xbf16>
      %152 = vector.shape_cast %148 : vector<16x32xbf16> to vector<1x16x32xbf16>
      %153 = vector.shape_cast %149 : vector<16x32xbf16> to vector<1x16x32xbf16>
      %154 = vector.shape_cast %150 : vector<16x32xbf16> to vector<1x16x32xbf16>
      %155 = vector.shape_cast %151 : vector<16x32xbf16> to vector<1x16x32xbf16>
      %156 = tpu.concatenate %152, %153, %154, %155 in 0 : vector<1x16x32xbf16>, vector<1x16x32xbf16>, vector<1x16x32xbf16>, vector<1x16x32xbf16> -> vector<4x16x32xbf16>
      %c0_66 = arith.constant 0 : index
      %c0_67 = arith.constant 0 : index
      %c0_68 = arith.constant 0 : index
      %157 = vector.load %arg16[%c0_66, %c0_67, %c0_68] : memref<4x16x32xbf16, #tpu.memory_space<vmem>>, vector<4x16x32xbf16>
      tpu.vector_store %arg16[%c0_66, %c0_67, %c0_68], %156 {strides = array<i32>} : memref<4x16x32xbf16, #tpu.memory_space<vmem>>, vector<4x16x32xbf16>,
      %158 = vector.extract_strided_slice %147 {offsets = [0, 128], sizes = [16, 32], strides = [1, 1]} : vector<16x256xbf16> to vector<16x32xbf16>
      %159 = vector.extract_strided_slice %147 {offsets = [0, 160], sizes = [16, 32], strides = [1, 1]} : vector<16x256xbf16> to vector<16x32xbf16>
      %160 = vector.extract_strided_slice %147 {offsets = [0, 192], sizes = [16, 32], strides = [1, 1]} : vector<16x256xbf16> to vector<16x32xbf16>
      %161 = vector.extract_strided_slice %147 {offsets = [0, 224], sizes = [16, 32], strides = [1, 1]} : vector<16x256xbf16> to vector<16x32xbf16>
      %162 = vector.shape_cast %158 : vector<16x32xbf16> to vector<1x16x32xbf16>
      %163 = vector.shape_cast %159 : vector<16x32xbf16> to vector<1x16x32xbf16>
      %164 = vector.shape_cast %160 : vector<16x32xbf16> to vector<1x16x32xbf16>
      %165 = vector.shape_cast %161 : vector<16x32xbf16> to vector<1x16x32xbf16>
      %166 = tpu.concatenate %162, %163, %164, %165 in 0 : vector<1x16x32xbf16>, vector<1x16x32xbf16>, vector<1x16x32xbf16>, vector<1x16x32xbf16> -> vector<4x16x32xbf16>
      %c0_69 = arith.constant 0 : index
      %c0_70 = arith.constant 0 : index
      %c0_71 = arith.constant 0 : index
      %167 = vector.load %arg17[%c0_69, %c0_70, %c0_71] : memref<4x16x32xbf16, #tpu.memory_space<vmem>>, vector<4x16x32xbf16>
      tpu.vector_store %arg17[%c0_69, %c0_70, %c0_71], %166 {strides = array<i32>} : memref<4x16x32xbf16, #tpu.memory_space<vmem>>, vector<4x16x32xbf16>,
    } else {
    }
    %c8_i32 = arith.constant 8 : i32
    %3 = arith.muli %arg1, %c8_i32 : i32
    %4 = tpu.assume_multiple %3, 8 : i32
    %c0 = arith.constant 0 : index
    %5 = arith.index_cast %4 : i32 to index
    %c0_1 = arith.constant 0 : index
    %6 = vector.load %arg2[%c0, %5, %c0_1] : memref<1x16x128xf32, #tpu.memory_space<vmem>>, vector<1x8x128xf32>
    %7 = vector.shape_cast %6 : vector<1x8x128xf32> to vector<8x128xf32>
    %c0_2 = arith.constant 0 : index
    %c0_3 = arith.constant 0 : index
    %8 = vector.load %arg3[%c0_2, %c0_3] : memref<1x128xf32, #tpu.memory_space<vmem>>, vector<1x128xf32>
    %c0_4 = arith.constant 0 : index
    %c0_5 = arith.constant 0 : index
    %9 = vector.load %arg4[%c0_4, %c0_5] : memref<1x128xf32, #tpu.memory_space<vmem>>, vector<1x128xf32>
    %cst = arith.constant dense<0.000000e+00> : vector<8xf32>
    %10 = vector.multi_reduction <add>, %7, %cst [1] : vector<8x128xf32> to vector<8xf32>
    %11 = vector.shape_cast %10 : vector<8xf32> to vector<8x1xf32>
    %cst_6 = arith.constant 1.280000e+02 : f32
    %12 = vector.broadcast %cst_6 : f32 to vector<8x1xf32>
    %13 = arith.divf %11, %12 : vector<8x1xf32>
    %14 = vector.broadcast %13 : vector<8x1xf32> to vector<8x128xf32>
    %15 = arith.subf %7, %14 : vector<8x128xf32>
    %16 = arith.mulf %15, %15 : vector<8x128xf32>
    %cst_7 = arith.constant dense<0.000000e+00> : vector<8xf32>
    %17 = vector.multi_reduction <add>, %16, %cst_7 [1] : vector<8x128xf32> to vector<8xf32>
    %18 = vector.shape_cast %17 : vector<8xf32> to vector<8x1xf32>
    %cst_8 = arith.constant 1.280000e+02 : f32
    %19 = vector.broadcast %cst_8 : f32 to vector<8x1xf32>
    %20 = arith.divf %18, %19 : vector<8x1xf32>
    %21 = vector.broadcast %13 : vector<8x1xf32> to vector<8x128xf32>
    %22 = arith.subf %7, %21 : vector<8x128xf32>
    %cst_9 = arith.constant 9.99999974E-6 : f32
    %23 = vector.broadcast %cst_9 : f32 to vector<8x1xf32>
    %24 = arith.addf %20, %23 : vector<8x1xf32>
    %25 = math.rsqrt %24 : vector<8x1xf32>
    %26 = vector.broadcast %25 : vector<8x1xf32> to vector<8x128xf32>
    %27 = arith.mulf %22, %26 : vector<8x128xf32>
    %28 = vector.broadcast %8 : vector<1x128xf32> to vector<8x128xf32>
    %29 = arith.mulf %27, %28 : vector<8x128xf32>
    %30 = vector.broadcast %9 : vector<1x128xf32> to vector<8x128xf32>
    %31 = arith.addf %29, %30 : vector<8x128xf32>
    %32 = arith.truncf %31 : vector<8x128xf32> to vector<8x128xbf16>
    %c0_10 = arith.constant 0 : index
    %c0_11 = arith.constant 0 : index
    %33 = vector.load %arg5[%c0_10, %c0_11] : memref<128x128xbf16, #tpu.memory_space<vmem>>, vector<128x128xbf16>
    %cst_12 = arith.constant dense<0.000000e+00> : vector<8x128xf32>
    %34 = tpu.matmul %32, %33, %cst_12 {dimension_numbers = #tpu.dot_dimension_numbers<[1], [0], [0], [1], [0, 0, 1, 1], [], []>} : vector<8x128xbf16>, vector<128x128xbf16>, vector<8x128xf32> -> vector<8x128xf32>
    %35 = arith.truncf %34 : vector<8x128xf32> to vector<8x128xbf16>
    %36 = vector.extract_strided_slice %35 {offsets = [0, 0], sizes = [8, 32], strides = [1, 1]} : vector<8x128xbf16> to vector<8x32xbf16>
    %37 = vector.extract_strided_slice %35 {offsets = [0, 32], sizes = [8, 32], strides = [1, 1]} : vector<8x128xbf16> to vector<8x32xbf16>
    %38 = vector.extract_strided_slice %35 {offsets = [0, 64], sizes = [8, 32], strides = [1, 1]} : vector<8x128xbf16> to vector<8x32xbf16>
    %39 = vector.extract_strided_slice %35 {offsets = [0, 96], sizes = [8, 32], strides = [1, 1]} : vector<8x128xbf16> to vector<8x32xbf16>
    %40 = vector.shape_cast %36 : vector<8x32xbf16> to vector<1x8x32xbf16>
    %41 = vector.shape_cast %37 : vector<8x32xbf16> to vector<1x8x32xbf16>
    %42 = vector.shape_cast %38 : vector<8x32xbf16> to vector<1x8x32xbf16>
    %43 = vector.shape_cast %39 : vector<8x32xbf16> to vector<1x8x32xbf16>
    %44 = tpu.concatenate %40, %41, %42, %43 in 0 : vector<1x8x32xbf16>, vector<1x8x32xbf16>, vector<1x8x32xbf16>, vector<1x8x32xbf16> -> vector<4x8x32xbf16>
    %c0_13 = arith.constant 0 : index
    %c0_14 = arith.constant 0 : index
    %c0_15 = arith.constant 0 : index
    %45 = vector.load %arg16[%c0_13, %c0_14, %c0_15] : memref<4x16x32xbf16, #tpu.memory_space<vmem>>, vector<4x16x32xbf16>
    %cst_16 = arith.constant dense<0.000000e+00> : vector<4x8x16xf32>
    %46 = tpu.matmul %44, %45, %cst_16 {dimension_numbers = #tpu.dot_dimension_numbers<[2], [2], [1], [1], [0, 0, 0, 1, 1, 1], [0], [0]>} : vector<4x8x32xbf16>, vector<4x16x32xbf16>, vector<4x8x16xf32> -> vector<4x8x16xf32>
    %cst_17 = arith.constant dense<0xFF800000> : vector<4x8xf32>
    %47 = vector.multi_reduction <maximumf>, %46, %cst_17 [2] : vector<4x8x16xf32> to vector<4x8xf32>
    %48 = vector.shape_cast %47 : vector<4x8xf32> to vector<4x8x1xf32>
    %49 = vector.broadcast %48 : vector<4x8x1xf32> to vector<4x8x16xf32>
    %50 = arith.subf %46, %49 : vector<4x8x16xf32>
    %51 = math.exp %50 : vector<4x8x16xf32>
    %cst_18 = arith.constant dense<0.000000e+00> : vector<4x8xf32>
    %52 = vector.multi_reduction <add>, %51, %cst_18 [2] : vector<4x8x16xf32> to vector<4x8xf32>
    %53 = vector.shape_cast %52 : vector<4x8xf32> to vector<4x8x1xf32>
    %54 = tpu.reciprocal %53 {approx = true} : vector<4x8x1xf32> -> vector<4x8x1xf32>
    %55 = vector.broadcast %54 : vector<4x8x1xf32> to vector<4x8x16xf32>
    %56 = arith.mulf %51, %55 : vector<4x8x16xf32>
    %57 = arith.truncf %56 : vector<4x8x16xf32> to vector<4x8x16xbf16>
    %c0_19 = arith.constant 0 : index
    %c0_20 = arith.constant 0 : index
    %c0_21 = arith.constant 0 : index
    %58 = vector.load %arg17[%c0_19, %c0_20, %c0_21] : memref<4x16x32xbf16, #tpu.memory_space<vmem>>, vector<4x16x32xbf16>
    %cst_22 = arith.constant dense<0.000000e+00> : vector<4x8x32xf32>
    %59 = tpu.matmul %57, %58, %cst_22 {dimension_numbers = #tpu.dot_dimension_numbers<[2], [1], [1], [2], [0, 0, 0, 1, 1, 2], [0], [0]>} : vector<4x8x16xbf16>, vector<4x16x32xbf16>, vector<4x8x32xf32> -> vector<4x8x32xf32>
    %60 = vector.extract_strided_slice %59 {offsets = [0, 0, 0], sizes = [1, 8, 32], strides = [1, 1, 1]} : vector<4x8x32xf32> to vector<1x8x32xf32>
    %61 = vector.shape_cast %60 : vector<1x8x32xf32> to vector<8x32xf32>
    %62 = vector.extract_strided_slice %59 {offsets = [1, 0, 0], sizes = [1, 8, 32], strides = [1, 1, 1]} : vector<4x8x32xf32> to vector<1x8x32xf32>
    %63 = vector.shape_cast %62 : vector<1x8x32xf32> to vector<8x32xf32>
    %64 = vector.extract_strided_slice %59 {offsets = [2, 0, 0], sizes = [1, 8, 32], strides = [1, 1, 1]} : vector<4x8x32xf32> to vector<1x8x32xf32>
    %65 = vector.shape_cast %64 : vector<1x8x32xf32> to vector<8x32xf32>
    %66 = vector.extract_strided_slice %59 {offsets = [3, 0, 0], sizes = [1, 8, 32], strides = [1, 1, 1]} : vector<4x8x32xf32> to vector<1x8x32xf32>
    %67 = vector.shape_cast %66 : vector<1x8x32xf32> to vector<8x32xf32>
    %68 = tpu.concatenate %61, %63, %65, %67 in 1 : vector<8x32xf32>, vector<8x32xf32>, vector<8x32xf32>, vector<8x32xf32> -> vector<8x128xf32>
    %69 = arith.truncf %68 : vector<8x128xf32> to vector<8x128xbf16>
    %c0_23 = arith.constant 0 : index
    %c0_24 = arith.constant 0 : index
    %70 = vector.load %arg7[%c0_23, %c0_24] : memref<128x128xbf16, #tpu.memory_space<vmem>>, vector<128x128xbf16>
    %cst_25 = arith.constant dense<0.000000e+00> : vector<8x128xf32>
    %71 = tpu.matmul %69, %70, %cst_25 {dimension_numbers = #tpu.dot_dimension_numbers<[1], [0], [0], [1], [0, 0, 1, 1], [], []>} : vector<8x128xbf16>, vector<128x128xbf16>, vector<8x128xf32> -> vector<8x128xf32>
    %c0_26 = arith.constant 0 : index
    %c0_27 = arith.constant 0 : index
    %72 = vector.load %arg8[%c0_26, %c0_27] : memref<1x128xf32, #tpu.memory_space<vmem>>, vector<1x128xf32>
    %73 = vector.broadcast %72 : vector<1x128xf32> to vector<8x128xf32>
    %74 = arith.addf %71, %73 : vector<8x128xf32>
    %75 = arith.addf %7, %74 : vector<8x128xf32>
    %c0_28 = arith.constant 0 : index
    %c0_29 = arith.constant 0 : index
    %76 = vector.load %arg9[%c0_28, %c0_29] : memref<1x128xf32, #tpu.memory_space<vmem>>, vector<1x128xf32>
    %c0_30 = arith.constant 0 : index
    %c0_31 = arith.constant 0 : index
    %77 = vector.load %arg10[%c0_30, %c0_31] : memref<1x128xf32, #tpu.memory_space<vmem>>, vector<1x128xf32>
    %cst_32 = arith.constant dense<0.000000e+00> : vector<8xf32>
    %78 = vector.multi_reduction <add>, %75, %cst_32 [1] : vector<8x128xf32> to vector<8xf32>
    %79 = vector.shape_cast %78 : vector<8xf32> to vector<8x1xf32>
    %cst_33 = arith.constant 1.280000e+02 : f32
    %80 = vector.broadcast %cst_33 : f32 to vector<8x1xf32>
    %81 = arith.divf %79, %80 : vector<8x1xf32>
    %82 = vector.broadcast %81 : vector<8x1xf32> to vector<8x128xf32>
    %83 = arith.subf %75, %82 : vector<8x128xf32>
    %84 = arith.mulf %83, %83 : vector<8x128xf32>
    %cst_34 = arith.constant dense<0.000000e+00> : vector<8xf32>
    %85 = vector.multi_reduction <add>, %84, %cst_34 [1] : vector<8x128xf32> to vector<8xf32>
    %86 = vector.shape_cast %85 : vector<8xf32> to vector<8x1xf32>
    %cst_35 = arith.constant 1.280000e+02 : f32
    %87 = vector.broadcast %cst_35 : f32 to vector<8x1xf32>
    %88 = arith.divf %86, %87 : vector<8x1xf32>
    %89 = vector.broadcast %81 : vector<8x1xf32> to vector<8x128xf32>
    %90 = arith.subf %75, %89 : vector<8x128xf32>
    %cst_36 = arith.constant 9.99999974E-6 : f32
    %91 = vector.broadcast %cst_36 : f32 to vector<8x1xf32>
    %92 = arith.addf %88, %91 : vector<8x1xf32>
    %93 = math.rsqrt %92 : vector<8x1xf32>
    %94 = vector.broadcast %93 : vector<8x1xf32> to vector<8x128xf32>
    %95 = arith.mulf %90, %94 : vector<8x128xf32>
    %96 = vector.broadcast %76 : vector<1x128xf32> to vector<8x128xf32>
    %97 = arith.mulf %95, %96 : vector<8x128xf32>
    %98 = vector.broadcast %77 : vector<1x128xf32> to vector<8x128xf32>
    %99 = arith.addf %97, %98 : vector<8x128xf32>
    %100 = arith.truncf %99 : vector<8x128xf32> to vector<8x128xbf16>
    %c0_37 = arith.constant 0 : index
    %c0_38 = arith.constant 0 : index
    %101 = vector.load %arg11[%c0_37, %c0_38] : memref<128x512xbf16, #tpu.memory_space<vmem>>, vector<128x512xbf16>
    %cst_39 = arith.constant dense<0.000000e+00> : vector<8x512xf32>
    %102 = tpu.matmul %100, %101, %cst_39 {dimension_numbers = #tpu.dot_dimension_numbers<[1], [0], [0], [1], [0, 0, 1, 1], [], []>} : vector<8x128xbf16>, vector<128x512xbf16>, vector<8x512xf32> -> vector<8x512xf32>
    %c0_40 = arith.constant 0 : index
    %c0_41 = arith.constant 0 : index
    %103 = vector.load %arg12[%c0_40, %c0_41] : memref<1x512xf32, #tpu.memory_space<vmem>>, vector<1x512xf32>
    %104 = vector.broadcast %103 : vector<1x512xf32> to vector<8x512xf32>
    %105 = arith.addf %102, %104 : vector<8x512xf32>
    %cst_42 = arith.constant 0.000000e+00 : f32
    %106 = vector.broadcast %cst_42 : f32 to vector<8x512xf32>
    %107 = arith.maximumf %105, %106 : vector<8x512xf32>
    %108 = arith.truncf %107 : vector<8x512xf32> to vector<8x512xbf16>
    %c0_43 = arith.constant 0 : index
    %c0_44 = arith.constant 0 : index
    %109 = vector.load %arg13[%c0_43, %c0_44] : memref<512x128xbf16, #tpu.memory_space<vmem>>, vector<512x128xbf16>
    %cst_45 = arith.constant dense<0.000000e+00> : vector<8x128xf32>
    %110 = tpu.matmul %108, %109, %cst_45 {dimension_numbers = #tpu.dot_dimension_numbers<[1], [0], [0], [1], [0, 0, 1, 1], [], []>} : vector<8x512xbf16>, vector<512x128xbf16>, vector<8x128xf32> -> vector<8x128xf32>
    %c0_46 = arith.constant 0 : index
    %c0_47 = arith.constant 0 : index
    %111 = vector.load %arg14[%c0_46, %c0_47] : memref<1x128xf32, #tpu.memory_space<vmem>>, vector<1x128xf32>
    %112 = vector.broadcast %111 : vector<1x128xf32> to vector<8x128xf32>
    %113 = arith.addf %110, %112 : vector<8x128xf32>
    %114 = arith.addf %75, %113 : vector<8x128xf32>
    %c0_48 = arith.constant 0 : index
    %c0_49 = arith.constant 0 : index
    %c0_50 = arith.constant 0 : index
    %115 = vector.load %arg15[%c0_48, %c0_49, %c0_50] : memref<1x8x128xf32, #tpu.memory_space<vmem>>, vector<1x8x128xf32>
    %116 = vector.shape_cast %115 : vector<1x8x128xf32> to vector<8x128xf32>
    %117 = vector.shape_cast %114 : vector<8x128xf32> to vector<1x8x128xf32>
    tpu.vector_store %arg15[%c0_48, %c0_49, %c0_50], %117 {strides = array<i32>} : memref<1x8x128xf32, #tpu.memory_space<vmem>>, vector<1x8x128xf32>,
    return
  }
  func.func @transform_0(%arg0: i32, %arg1: i32) -> (i32, i32, i32) {
    %c0_i32 = arith.constant 0 : i32
    %c0_i32_0 = arith.constant 0 : i32
    %c0_i32_1 = arith.constant 0 : i32
    return %arg0, %c0_i32, %c0_i32_0 : i32, i32, i32
  }
  func.func @transform_1(%arg0: i32, %arg1: i32) -> (i32, i32) {
    %c0_i32 = arith.constant 0 : i32
    %c0_i32_0 = arith.constant 0 : i32
    %c0_i32_1 = arith.constant 0 : i32
    return %c0_i32, %c0_i32_0 : i32, i32
  }
  func.func @transform_2(%arg0: i32, %arg1: i32) -> (i32, i32) {
    %c0_i32 = arith.constant 0 : i32
    %c0_i32_0 = arith.constant 0 : i32
    %c0_i32_1 = arith.constant 0 : i32
    return %c0_i32, %c0_i32_0 : i32, i32
  }
  func.func @transform_3(%arg0: i32, %arg1: i32) -> (i32, i32) {
    %c0_i32 = arith.constant 0 : i32
    %c0_i32_0 = arith.constant 0 : i32
    %c0_i32_1 = arith.constant 0 : i32
    return %c0_i32, %c0_i32_0 : i32, i32
  }
  func.func @transform_4(%arg0: i32, %arg1: i32) -> (i32, i32) {
    %c0_i32 = arith.constant 0 : i32
    %c0_i32_0 = arith.constant 0 : i32
    %c0_i32_1 = arith.constant 0 : i32
    return %c0_i32, %c0_i32_0 : i32, i32
  }
  func.func @transform_5(%arg0: i32, %arg1: i32) -> (i32, i32) {
    %c0_i32 = arith.constant 0 : i32
    %c0_i32_0 = arith.constant 0 : i32
    %c0_i32_1 = arith.constant 0 : i32
    return %c0_i32, %c0_i32_0 : i32, i32
  }
  func.func @transform_6(%arg0: i32, %arg1: i32) -> (i32, i32) {
    %c0_i32 = arith.constant 0 : i32
    %c0_i32_0 = arith.constant 0 : i32
    %c0_i32_1 = arith.constant 0 : i32
    return %c0_i32, %c0_i32_0 : i32, i32
  }
  func.func @transform_7(%arg0: i32, %arg1: i32) -> (i32, i32) {
    %c0_i32 = arith.constant 0 : i32
    %c0_i32_0 = arith.constant 0 : i32
    %c0_i32_1 = arith.constant 0 : i32
    return %c0_i32, %c0_i32_0 : i32, i32
  }
  func.func @transform_8(%arg0: i32, %arg1: i32) -> (i32, i32) {
    %c0_i32 = arith.constant 0 : i32
    %c0_i32_0 = arith.constant 0 : i32
    %c0_i32_1 = arith.constant 0 : i32
    return %c0_i32, %c0_i32_0 : i32, i32
  }
  func.func @transform_9(%arg0: i32, %arg1: i32) -> (i32, i32) {
    %c0_i32 = arith.constant 0 : i32
    %c0_i32_0 = arith.constant 0 : i32
    %c0_i32_1 = arith.constant 0 : i32
    return %c0_i32, %c0_i32_0 : i32, i32
  }
  func.func @transform_10(%arg0: i32, %arg1: i32) -> (i32, i32) {
    %c0_i32 = arith.constant 0 : i32
    %c0_i32_0 = arith.constant 0 : i32
    %c0_i32_1 = arith.constant 0 : i32
    return %c0_i32, %c0_i32_0 : i32, i32
  }
  func.func @transform_11(%arg0: i32, %arg1: i32) -> (i32, i32) {
    %c0_i32 = arith.constant 0 : i32
    %c0_i32_0 = arith.constant 0 : i32
    %c0_i32_1 = arith.constant 0 : i32
    return %c0_i32, %c0_i32_0 : i32, i32
  }
  func.func @transform_12(%arg0: i32, %arg1: i32) -> (i32, i32) {
    %c0_i32 = arith.constant 0 : i32
    %c0_i32_0 = arith.constant 0 : i32
    %c0_i32_1 = arith.constant 0 : i32
    return %c0_i32, %c0_i32_0 : i32, i32
  }
  func.func @transform_13(%arg0: i32, %arg1: i32) -> (i32, i32, i32) {
    %c0_i32 = arith.constant 0 : i32
    %c0_i32_0 = arith.constant 0 : i32
    return %arg0, %arg1, %c0_i32 : i32, i32, i32
  }
}

module attributes {stable_mosaic.version = 11 : i64} {
  func.func @transformer_layer_kernel(%arg0: i32, %arg1: i32, %arg2: memref<1x16x128xf32, #tpu.memory_space<vmem>>, %arg3: memref<1x128xf32, #tpu.memory_space<vmem>>, %arg4: memref<1x128xf32, #tpu.memory_space<vmem>>, %arg5: memref<128x128xbf16, #tpu.memory_space<vmem>>, %arg6: memref<128x256xbf16, #tpu.memory_space<vmem>>, %arg7: memref<128x128xbf16, #tpu.memory_space<vmem>>, %arg8: memref<1x128xf32, #tpu.memory_space<vmem>>, %arg9: memref<1x128xf32, #tpu.memory_space<vmem>>, %arg10: memref<1x128xf32, #tpu.memory_space<vmem>>, %arg11: memref<128x512xbf16, #tpu.memory_space<vmem>>, %arg12: memref<1x512xf32, #tpu.memory_space<vmem>>, %arg13: memref<512x128xbf16, #tpu.memory_space<vmem>>, %arg14: memref<1x128xf32, #tpu.memory_space<vmem>>, %arg15: memref<1x8x128xf32, #tpu.memory_space<vmem>>, %arg16: memref<4x16x32xbf16, #tpu.memory_space<vmem>>, %arg17: memref<4x16x32xbf16, #tpu.memory_space<vmem>>) attributes {dimension_semantics = [#tpu.dimension_semantics<parallel>, #tpu.dimension_semantics<arbitrary>], iteration_bounds = array<i64: 2, 2>, scalar_prefetch = 0 : i64, scratch_operands = 2 : i64, tpu.core_type = #tpu.core_type<tc>, window_params = [{transform_indices = @transform_0, window_bounds = array<i64: 1, 16, 128>}, {pipeline_mode = #tpu.pipeline_mode<synchronous>, transform_indices = @transform_1, window_bounds = array<i64: 1, 128>}, {pipeline_mode = #tpu.pipeline_mode<synchronous>, transform_indices = @transform_2, window_bounds = array<i64: 1, 128>}, {pipeline_mode = #tpu.pipeline_mode<synchronous>, transform_indices = @transform_3, window_bounds = array<i64: 128, 128>}, {pipeline_mode = #tpu.pipeline_mode<synchronous>, transform_indices = @transform_4, window_bounds = array<i64: 128, 256>}, {pipeline_mode = #tpu.pipeline_mode<synchronous>, transform_indices = @transform_5, window_bounds = array<i64: 128, 128>}, {pipeline_mode = #tpu.pipeline_mode<synchronous>, transform_indices = @transform_6, window_bounds = array<i64: 1, 128>}, {pipeline_mode = #tpu.pipeline_mode<synchronous>, transform_indices = @transform_7, window_bounds = array<i64: 1, 128>}, {pipeline_mode = #tpu.pipeline_mode<synchronous>, transform_indices = @transform_8, window_bounds = array<i64: 1, 128>}, {pipeline_mode = #tpu.pipeline_mode<synchronous>, transform_indices = @transform_9, window_bounds = array<i64: 128, 512>}, {pipeline_mode = #tpu.pipeline_mode<synchronous>, transform_indices = @transform_10, window_bounds = array<i64: 1, 512>}, {pipeline_mode = #tpu.pipeline_mode<synchronous>, transform_indices = @transform_11, window_bounds = array<i64: 512, 128>}, {pipeline_mode = #tpu.pipeline_mode<synchronous>, transform_indices = @transform_12, window_bounds = array<i64: 1, 128>}, {transform_indices = @transform_13, window_bounds = array<i64: 1, 8, 128>}]} {
    %c0_i32 = arith.constant 0 : i32
    %0 = arith.cmpi eq, %arg1, %c0_i32 : i32
    %1 = arith.extui %0 : i1 to i32
    %c0_i32_0 = arith.constant 0 : i32
    %2 = arith.cmpi ne, %1, %c0_i32_0 : i32
    scf.if %2 {
      %c0_51 = arith.constant 0 : index
      %c0_52 = arith.constant 0 : index
      %c0_53 = arith.constant 0 : index
      %118 = vector.load %arg2[%c0_51, %c0_52, %c0_53] : memref<1x16x128xf32, #tpu.memory_space<vmem>>, vector<1x16x128xf32>
      %119 = vector.shape_cast %118 : vector<1x16x128xf32> to vector<16x128xf32>
      %c0_54 = arith.constant 0 : index
      %c0_55 = arith.constant 0 : index
      %120 = vector.load %arg3[%c0_54, %c0_55] : memref<1x128xf32, #tpu.memory_space<vmem>>, vector<1x128xf32>
      %c0_56 = arith.constant 0 : index
      %c0_57 = arith.constant 0 : index
      %121 = vector.load %arg4[%c0_56, %c0_57] : memref<1x128xf32, #tpu.memory_space<vmem>>, vector<1x128xf32>
      %cst_58 = arith.constant dense<0.000000e+00> : vector<16xf32>
      %122 = vector.multi_reduction <add>, %119, %cst_58 [1] : vector<16x128xf32> to vector<16xf32>
      %123 = vector.shape_cast %122 : vector<16xf32> to vector<16x1xf32>
      %cst_59 = arith.constant 1.280000e+02 : f32
      %124 = vector.broadcast %cst_59 : f32 to vector<16x1xf32>
      %125 = arith.divf %123, %124 : vector<16x1xf32>
      %126 = vector.broadcast %125 : vector<16x1xf32> to vector<16x128xf32>
      %127 = arith.subf %119, %126 : vector<16x128xf32>
      %128 = arith.mulf %127, %127 : vector<16x128xf32>
      %cst_60 = arith.constant dense<0.000000e+00> : vector<16xf32>
      %129 = vector.multi_reduction <add>, %128, %cst_60 [1] : vector<16x128xf32> to vector<16xf32>
      %130 = vector.shape_cast %129 : vector<16xf32> to vector<16x1xf32>
      %cst_61 = arith.constant 1.280000e+02 : f32
      %131 = vector.broadcast %cst_61 : f32 to vector<16x1xf32>
      %132 = arith.divf %130, %131 : vector<16x1xf32>
      %133 = vector.broadcast %125 : vector<16x1xf32> to vector<16x128xf32>
      %134 = arith.subf %119, %133 : vector<16x128xf32>
      %cst_62 = arith.constant 9.99999974E-6 : f32
      %135 = vector.broadcast %cst_62 : f32 to vector<16x1xf32>
      %136 = arith.addf %132, %135 : vector<16x1xf32>
      %137 = math.rsqrt %136 : vector<16x1xf32>
      %138 = vector.broadcast %137 : vector<16x1xf32> to vector<16x128xf32>
      %139 = arith.mulf %134, %138 : vector<16x128xf32>
      %140 = vector.broadcast %120 : vector<1x128xf32> to vector<16x128xf32>
      %141 = arith.mulf %139, %140 : vector<16x128xf32>
      %142 = vector.broadcast %121 : vector<1x128xf32> to vector<16x128xf32>
      %143 = arith.addf %141, %142 : vector<16x128xf32>
      %144 = arith.truncf %143 : vector<16x128xf32> to vector<16x128xbf16>
      %c0_63 = arith.constant 0 : index
      %c0_64 = arith.constant 0 : index
      %145 = vector.load %arg6[%c0_63, %c0_64] : memref<128x256xbf16, #tpu.memory_space<vmem>>, vector<128x256xbf16>
      %cst_65 = arith.constant dense<0.000000e+00> : vector<16x256xf32>
      %146 = tpu.matmul %144, %145, %cst_65 {dimension_numbers = #tpu.dot_dimension_numbers<[1], [0], [0], [1], [0, 0, 1, 1], [], []>} : vector<16x128xbf16>, vector<128x256xbf16>, vector<16x256xf32> -> vector<16x256xf32>
      %147 = arith.truncf %146 : vector<16x256xf32> to vector<16x256xbf16>
      %148 = vector.extract_strided_slice %147 {offsets = [0, 0], sizes = [16, 32], strides = [1, 1]} : vector<16x256xbf16> to vector<16x32xbf16>
      %149 = vector.extract_strided_slice %147 {offsets = [0, 32], sizes = [16, 32], strides = [1, 1]} : vector<16x256xbf16> to vector<16x32xbf16>
      %150 = vector.extract_strided_slice %147 {offsets = [0, 64], sizes = [16, 32], strides = [1, 1]} : vector<16x256xbf16> to vector<16x32xbf16>
      %151 = vector.extract_strided_slice %147 {offsets = [0, 96], sizes = [16, 32], strides = [1, 1]} : vector<16x256xbf16> to vector<16x32xbf16>
      %152 = vector.shape_cast %148 : vector<16x32xbf16> to vector<1x16x32xbf16>
      %153 = vector.shape_cast %149 : vector<16x32xbf16> to vector<1x16x32xbf16>
      %154 = vector.shape_cast %150 : vector<16x32xbf16> to vector<1x16x32xbf16>
      %155 = vector.shape_cast %151 : vector<16x32xbf16> to vector<1x16x32xbf16>
      %156 = tpu.concatenate %152, %153, %154, %155 in 0 : vector<1x16x32xbf16>, vector<1x16x32xbf16>, vector<1x16x32xbf16>, vector<1x16x32xbf16> -> vector<4x16x32xbf16>
      %c0_66 = arith.constant 0 : index
      %c0_67 = arith.constant 0 : index
      %c0_68 = arith.constant 0 : index
      %157 = vector.load %arg16[%c0_66, %c0_67, %c0_68] : memref<4x16x32xbf16, #tpu.memory_space<vmem>>, vector<4x16x32xbf16>
      tpu.vector_store %arg16[%c0_66, %c0_67, %c0_68], %156 {strides = array<i32>} : memref<4x16x32xbf16, #tpu.memory_space<vmem>>, vector<4x16x32xbf16>,
      %158 = vector.extract_strided_slice %147 {offsets = [0, 128], sizes = [16, 32], strides = [1, 1]} : vector<16x256xbf16> to vector<16x32xbf16>
      %159 = vector.extract_strided_slice %147 {offsets = [0, 160], sizes = [16, 32], strides = [1, 1]} : vector<16x256xbf16> to vector<16x32xbf16>
      %160 = vector.extract_strided_slice %147 {offsets = [0, 192], sizes = [16, 32], strides = [1, 1]} : vector<16x256xbf16> to vector<16x32xbf16>
      %161 = vector.extract_strided_slice %147 {offsets = [0, 224], sizes = [16, 32], strides = [1, 1]} : vector<16x256xbf16> to vector<16x32xbf16>
      %162 = vector.shape_cast %158 : vector<16x32xbf16> to vector<1x16x32xbf16>
      %163 = vector.shape_cast %159 : vector<16x32xbf16> to vector<1x16x32xbf16>
      %164 = vector.shape_cast %160 : vector<16x32xbf16> to vector<1x16x32xbf16>
      %165 = vector.shape_cast %161 : vector<16x32xbf16> to vector<1x16x32xbf16>
      %166 = tpu.concatenate %162, %163, %164, %165 in 0 : vector<1x16x32xbf16>, vector<1x16x32xbf16>, vector<1x16x32xbf16>, vector<1x16x32xbf16> -> vector<4x16x32xbf16>
      %c0_69 = arith.constant 0 : index
      %c0_70 = arith.constant 0 : index
      %c0_71 = arith.constant 0 : index
      %167 = vector.load %arg17[%c0_69, %c0_70, %c0_71] : memref<4x16x32xbf16, #tpu.memory_space<vmem>>, vector<4x16x32xbf16>
      tpu.vector_store %arg17[%c0_69, %c0_70, %c0_71], %166 {strides = array<i32>} : memref<4x16x32xbf16, #tpu.memory_space<vmem>>, vector<4x16x32xbf16>,
    } else {
    }
    %c8_i32 = arith.constant 8 : i32
    %3 = arith.muli %arg1, %c8_i32 : i32
    %4 = tpu.assume_multiple %3, 8 : i32
    %c0 = arith.constant 0 : index
    %5 = arith.index_cast %4 : i32 to index
    %c0_1 = arith.constant 0 : index
    %6 = vector.load %arg2[%c0, %5, %c0_1] : memref<1x16x128xf32, #tpu.memory_space<vmem>>, vector<1x8x128xf32>
    %7 = vector.shape_cast %6 : vector<1x8x128xf32> to vector<8x128xf32>
    %c0_2 = arith.constant 0 : index
    %c0_3 = arith.constant 0 : index
    %8 = vector.load %arg3[%c0_2, %c0_3] : memref<1x128xf32, #tpu.memory_space<vmem>>, vector<1x128xf32>
    %c0_4 = arith.constant 0 : index
    %c0_5 = arith.constant 0 : index
    %9 = vector.load %arg4[%c0_4, %c0_5] : memref<1x128xf32, #tpu.memory_space<vmem>>, vector<1x128xf32>
    %cst = arith.constant dense<0.000000e+00> : vector<8xf32>
    %10 = vector.multi_reduction <add>, %7, %cst [1] : vector<8x128xf32> to vector<8xf32>
    %11 = vector.shape_cast %10 : vector<8xf32> to vector<8x1xf32>
    %cst_6 = arith.constant 1.280000e+02 : f32
    %12 = vector.broadcast %cst_6 : f32 to vector<8x1xf32>
    %13 = arith.divf %11, %12 : vector<8x1xf32>
    %14 = vector.broadcast %13 : vector<8x1xf32> to vector<8x128xf32>
    %15 = arith.subf %7, %14 : vector<8x128xf32>
    %16 = arith.mulf %15, %15 : vector<8x128xf32>
    %cst_7 = arith.constant dense<0.000000e+00> : vector<8xf32>
    %17 = vector.multi_reduction <add>, %16, %cst_7 [1] : vector<8x128xf32> to vector<8xf32>
    %18 = vector.shape_cast %17 : vector<8xf32> to vector<8x1xf32>
    %cst_8 = arith.constant 1.280000e+02 : f32
    %19 = vector.broadcast %cst_8 : f32 to vector<8x1xf32>
    %20 = arith.divf %18, %19 : vector<8x1xf32>
    %21 = vector.broadcast %13 : vector<8x1xf32> to vector<8x128xf32>
    %22 = arith.subf %7, %21 : vector<8x128xf32>
    %cst_9 = arith.constant 9.99999974E-6 : f32
    %23 = vector.broadcast %cst_9 : f32 to vector<8x1xf32>
    %24 = arith.addf %20, %23 : vector<8x1xf32>
    %25 = math.rsqrt %24 : vector<8x1xf32>
    %26 = vector.broadcast %25 : vector<8x1xf32> to vector<8x128xf32>
    %27 = arith.mulf %22, %26 : vector<8x128xf32>
    %28 = vector.broadcast %8 : vector<1x128xf32> to vector<8x128xf32>
    %29 = arith.mulf %27, %28 : vector<8x128xf32>
    %30 = vector.broadcast %9 : vector<1x128xf32> to vector<8x128xf32>
    %31 = arith.addf %29, %30 : vector<8x128xf32>
    %32 = arith.truncf %31 : vector<8x128xf32> to vector<8x128xbf16>
    %c0_10 = arith.constant 0 : index
    %c0_11 = arith.constant 0 : index
    %33 = vector.load %arg5[%c0_10, %c0_11] : memref<128x128xbf16, #tpu.memory_space<vmem>>, vector<128x128xbf16>
    %cst_12 = arith.constant dense<0.000000e+00> : vector<8x128xf32>
    %34 = tpu.matmul %32, %33, %cst_12 {dimension_numbers = #tpu.dot_dimension_numbers<[1], [0], [0], [1], [0, 0, 1, 1], [], []>} : vector<8x128xbf16>, vector<128x128xbf16>, vector<8x128xf32> -> vector<8x128xf32>
    %35 = arith.truncf %34 : vector<8x128xf32> to vector<8x128xbf16>
    %36 = vector.extract_strided_slice %35 {offsets = [0, 0], sizes = [8, 32], strides = [1, 1]} : vector<8x128xbf16> to vector<8x32xbf16>
    %37 = vector.extract_strided_slice %35 {offsets = [0, 32], sizes = [8, 32], strides = [1, 1]} : vector<8x128xbf16> to vector<8x32xbf16>
    %38 = vector.extract_strided_slice %35 {offsets = [0, 64], sizes = [8, 32], strides = [1, 1]} : vector<8x128xbf16> to vector<8x32xbf16>
    %39 = vector.extract_strided_slice %35 {offsets = [0, 96], sizes = [8, 32], strides = [1, 1]} : vector<8x128xbf16> to vector<8x32xbf16>
    %40 = vector.shape_cast %36 : vector<8x32xbf16> to vector<1x8x32xbf16>
    %41 = vector.shape_cast %37 : vector<8x32xbf16> to vector<1x8x32xbf16>
    %42 = vector.shape_cast %38 : vector<8x32xbf16> to vector<1x8x32xbf16>
    %43 = vector.shape_cast %39 : vector<8x32xbf16> to vector<1x8x32xbf16>
    %44 = tpu.concatenate %40, %41, %42, %43 in 0 : vector<1x8x32xbf16>, vector<1x8x32xbf16>, vector<1x8x32xbf16>, vector<1x8x32xbf16> -> vector<4x8x32xbf16>
    %c0_13 = arith.constant 0 : index
    %c0_14 = arith.constant 0 : index
    %c0_15 = arith.constant 0 : index
    %45 = vector.load %arg16[%c0_13, %c0_14, %c0_15] : memref<4x16x32xbf16, #tpu.memory_space<vmem>>, vector<4x16x32xbf16>
    %cst_16 = arith.constant dense<0.000000e+00> : vector<4x8x16xf32>
    %46 = tpu.matmul %44, %45, %cst_16 {dimension_numbers = #tpu.dot_dimension_numbers<[2], [2], [1], [1], [0, 0, 0, 1, 1, 1], [0], [0]>} : vector<4x8x32xbf16>, vector<4x16x32xbf16>, vector<4x8x16xf32> -> vector<4x8x16xf32>
    %cst_17 = arith.constant dense<0xFF800000> : vector<4x8xf32>
    %47 = vector.multi_reduction <maximumf>, %46, %cst_17 [2] : vector<4x8x16xf32> to vector<4x8xf32>
    %48 = vector.shape_cast %47 : vector<4x8xf32> to vector<4x8x1xf32>
    %49 = vector.broadcast %48 : vector<4x8x1xf32> to vector<4x8x16xf32>
    %50 = arith.subf %46, %49 : vector<4x8x16xf32>
    %51 = math.exp %50 : vector<4x8x16xf32>
    %cst_18 = arith.constant dense<0.000000e+00> : vector<4x8xf32>
    %52 = vector.multi_reduction <add>, %51, %cst_18 [2] : vector<4x8x16xf32> to vector<4x8xf32>
    %53 = vector.shape_cast %52 : vector<4x8xf32> to vector<4x8x1xf32>
    %54 = tpu.reciprocal %53 {approx = true} : vector<4x8x1xf32> -> vector<4x8x1xf32>
    %55 = vector.broadcast %54 : vector<4x8x1xf32> to vector<4x8x16xf32>
    %56 = arith.mulf %51, %55 : vector<4x8x16xf32>
    %57 = arith.truncf %56 : vector<4x8x16xf32> to vector<4x8x16xbf16>
    %c0_19 = arith.constant 0 : index
    %c0_20 = arith.constant 0 : index
    %c0_21 = arith.constant 0 : index
    %58 = vector.load %arg17[%c0_19, %c0_20, %c0_21] : memref<4x16x32xbf16, #tpu.memory_space<vmem>>, vector<4x16x32xbf16>
    %cst_22 = arith.constant dense<0.000000e+00> : vector<4x8x32xf32>
    %59 = tpu.matmul %57, %58, %cst_22 {dimension_numbers = #tpu.dot_dimension_numbers<[2], [1], [1], [2], [0, 0, 0, 1, 1, 2], [0], [0]>} : vector<4x8x16xbf16>, vector<4x16x32xbf16>, vector<4x8x32xf32> -> vector<4x8x32xf32>
    %60 = vector.extract_strided_slice %59 {offsets = [0, 0, 0], sizes = [1, 8, 32], strides = [1, 1, 1]} : vector<4x8x32xf32> to vector<1x8x32xf32>
    %61 = vector.shape_cast %60 : vector<1x8x32xf32> to vector<8x32xf32>
    %62 = vector.extract_strided_slice %59 {offsets = [1, 0, 0], sizes = [1, 8, 32], strides = [1, 1, 1]} : vector<4x8x32xf32> to vector<1x8x32xf32>
    %63 = vector.shape_cast %62 : vector<1x8x32xf32> to vector<8x32xf32>
    %64 = vector.extract_strided_slice %59 {offsets = [2, 0, 0], sizes = [1, 8, 32], strides = [1, 1, 1]} : vector<4x8x32xf32> to vector<1x8x32xf32>
    %65 = vector.shape_cast %64 : vector<1x8x32xf32> to vector<8x32xf32>
    %66 = vector.extract_strided_slice %59 {offsets = [3, 0, 0], sizes = [1, 8, 32], strides = [1, 1, 1]} : vector<4x8x32xf32> to vector<1x8x32xf32>
    %67 = vector.shape_cast %66 : vector<1x8x32xf32> to vector<8x32xf32>
    %68 = tpu.concatenate %61, %63, %65, %67 in 1 : vector<8x32xf32>, vector<8x32xf32>, vector<8x32xf32>, vector<8x32xf32> -> vector<8x128xf32>
    %69 = arith.truncf %68 : vector<8x128xf32> to vector<8x128xbf16>
    %c0_23 = arith.constant 0 : index
    %c0_24 = arith.constant 0 : index
    %70 = vector.load %arg7[%c0_23, %c0_24] : memref<128x128xbf16, #tpu.memory_space<vmem>>, vector<128x128xbf16>
    %cst_25 = arith.constant dense<0.000000e+00> : vector<8x128xf32>
    %71 = tpu.matmul %69, %70, %cst_25 {dimension_numbers = #tpu.dot_dimension_numbers<[1], [0], [0], [1], [0, 0, 1, 1], [], []>} : vector<8x128xbf16>, vector<128x128xbf16>, vector<8x128xf32> -> vector<8x128xf32>
    %c0_26 = arith.constant 0 : index
    %c0_27 = arith.constant 0 : index
    %72 = vector.load %arg8[%c0_26, %c0_27] : memref<1x128xf32, #tpu.memory_space<vmem>>, vector<1x128xf32>
    %73 = vector.broadcast %72 : vector<1x128xf32> to vector<8x128xf32>
    %74 = arith.addf %71, %73 : vector<8x128xf32>
    %75 = arith.addf %7, %74 : vector<8x128xf32>
    %c0_28 = arith.constant 0 : index
    %c0_29 = arith.constant 0 : index
    %76 = vector.load %arg9[%c0_28, %c0_29] : memref<1x128xf32, #tpu.memory_space<vmem>>, vector<1x128xf32>
    %c0_30 = arith.constant 0 : index
    %c0_31 = arith.constant 0 : index
    %77 = vector.load %arg10[%c0_30, %c0_31] : memref<1x128xf32, #tpu.memory_space<vmem>>, vector<1x128xf32>
    %cst_32 = arith.constant dense<0.000000e+00> : vector<8xf32>
    %78 = vector.multi_reduction <add>, %75, %cst_32 [1] : vector<8x128xf32> to vector<8xf32>
    %79 = vector.shape_cast %78 : vector<8xf32> to vector<8x1xf32>
    %cst_33 = arith.constant 1.280000e+02 : f32
    %80 = vector.broadcast %cst_33 : f32 to vector<8x1xf32>
    %81 = arith.divf %79, %80 : vector<8x1xf32>
    %82 = vector.broadcast %81 : vector<8x1xf32> to vector<8x128xf32>
    %83 = arith.subf %75, %82 : vector<8x128xf32>
    %84 = arith.mulf %83, %83 : vector<8x128xf32>
    %cst_34 = arith.constant dense<0.000000e+00> : vector<8xf32>
    %85 = vector.multi_reduction <add>, %84, %cst_34 [1] : vector<8x128xf32> to vector<8xf32>
    %86 = vector.shape_cast %85 : vector<8xf32> to vector<8x1xf32>
    %cst_35 = arith.constant 1.280000e+02 : f32
    %87 = vector.broadcast %cst_35 : f32 to vector<8x1xf32>
    %88 = arith.divf %86, %87 : vector<8x1xf32>
    %89 = vector.broadcast %81 : vector<8x1xf32> to vector<8x128xf32>
    %90 = arith.subf %75, %89 : vector<8x128xf32>
    %cst_36 = arith.constant 9.99999974E-6 : f32
    %91 = vector.broadcast %cst_36 : f32 to vector<8x1xf32>
    %92 = arith.addf %88, %91 : vector<8x1xf32>
    %93 = math.rsqrt %92 : vector<8x1xf32>
    %94 = vector.broadcast %93 : vector<8x1xf32> to vector<8x128xf32>
    %95 = arith.mulf %90, %94 : vector<8x128xf32>
    %96 = vector.broadcast %76 : vector<1x128xf32> to vector<8x128xf32>
    %97 = arith.mulf %95, %96 : vector<8x128xf32>
    %98 = vector.broadcast %77 : vector<1x128xf32> to vector<8x128xf32>
    %99 = arith.addf %97, %98 : vector<8x128xf32>
    %100 = arith.truncf %99 : vector<8x128xf32> to vector<8x128xbf16>
    %c0_37 = arith.constant 0 : index
    %c0_38 = arith.constant 0 : index
    %101 = vector.load %arg11[%c0_37, %c0_38] : memref<128x512xbf16, #tpu.memory_space<vmem>>, vector<128x512xbf16>
    %cst_39 = arith.constant dense<0.000000e+00> : vector<8x512xf32>
    %102 = tpu.matmul %100, %101, %cst_39 {dimension_numbers = #tpu.dot_dimension_numbers<[1], [0], [0], [1], [0, 0, 1, 1], [], []>} : vector<8x128xbf16>, vector<128x512xbf16>, vector<8x512xf32> -> vector<8x512xf32>
    %c0_40 = arith.constant 0 : index
    %c0_41 = arith.constant 0 : index
    %103 = vector.load %arg12[%c0_40, %c0_41] : memref<1x512xf32, #tpu.memory_space<vmem>>, vector<1x512xf32>
    %104 = vector.broadcast %103 : vector<1x512xf32> to vector<8x512xf32>
    %105 = arith.addf %102, %104 : vector<8x512xf32>
    %cst_42 = arith.constant 0.000000e+00 : f32
    %106 = vector.broadcast %cst_42 : f32 to vector<8x512xf32>
    %107 = arith.maximumf %105, %106 : vector<8x512xf32>
    %108 = arith.truncf %107 : vector<8x512xf32> to vector<8x512xbf16>
    %c0_43 = arith.constant 0 : index
    %c0_44 = arith.constant 0 : index
    %109 = vector.load %arg13[%c0_43, %c0_44] : memref<512x128xbf16, #tpu.memory_space<vmem>>, vector<512x128xbf16>
    %cst_45 = arith.constant dense<0.000000e+00> : vector<8x128xf32>
    %110 = tpu.matmul %108, %109, %cst_45 {dimension_numbers = #tpu.dot_dimension_numbers<[1], [0], [0], [1], [0, 0, 1, 1], [], []>} : vector<8x512xbf16>, vector<512x128xbf16>, vector<8x128xf32> -> vector<8x128xf32>
    %c0_46 = arith.constant 0 : index
    %c0_47 = arith.constant 0 : index
    %111 = vector.load %arg14[%c0_46, %c0_47] : memref<1x128xf32, #tpu.memory_space<vmem>>, vector<1x128xf32>
    %112 = vector.broadcast %111 : vector<1x128xf32> to vector<8x128xf32>
    %113 = arith.addf %110, %112 : vector<8x128xf32>
    %114 = arith.addf %75, %113 : vector<8x128xf32>
    %c0_48 = arith.constant 0 : index
    %c0_49 = arith.constant 0 : index
    %c0_50 = arith.constant 0 : index
    %115 = vector.load %arg15[%c0_48, %c0_49, %c0_50] : memref<1x8x128xf32, #tpu.memory_space<vmem>>, vector<1x8x128xf32>
    %116 = vector.shape_cast %115 : vector<1x8x128xf32> to vector<8x128xf32>
    %117 = vector.shape_cast %114 : vector<8x128xf32> to vector<1x8x128xf32>
    tpu.vector_store %arg15[%c0_48, %c0_49, %c0_50], %117 {strides = array<i32>} : memref<1x8x128xf32, #tpu.memory_space<vmem>>, vector<1x8x128xf32>,
    return
  }
  func.func @transform_0(%arg0: i32, %arg1: i32) -> (i32, i32, i32) {
    %c0_i32 = arith.constant 0 : i32
    %c0_i32_0 = arith.constant 0 : i32
    %c0_i32_1 = arith.constant 0 : i32
    return %arg0, %c0_i32, %c0_i32_0 : i32, i32, i32
  }
  func.func @transform_1(%arg0: i32, %arg1: i32) -> (i32, i32) {
    %c0_i32 = arith.constant 0 : i32
    %c0_i32_0 = arith.constant 0 : i32
    %c0_i32_1 = arith.constant 0 : i32
    return %c0_i32, %c0_i32_0 : i32, i32
  }
  func.func @transform_2(%arg0: i32, %arg1: i32) -> (i32, i32) {
    %c0_i32 = arith.constant 0 : i32
    %c0_i32_0 = arith.constant 0 : i32
    %c0_i32_1 = arith.constant 0 : i32
    return %c0_i32, %c0_i32_0 : i32, i32
  }
  func.func @transform_3(%arg0: i32, %arg1: i32) -> (i32, i32) {
    %c0_i32 = arith.constant 0 : i32
    %c0_i32_0 = arith.constant 0 : i32
    %c0_i32_1 = arith.constant 0 : i32
    return %c0_i32, %c0_i32_0 : i32, i32
  }
  func.func @transform_4(%arg0: i32, %arg1: i32) -> (i32, i32) {
    %c0_i32 = arith.constant 0 : i32
    %c0_i32_0 = arith.constant 0 : i32
    %c0_i32_1 = arith.constant 0 : i32
    return %c0_i32, %c0_i32_0 : i32, i32
  }
  func.func @transform_5(%arg0: i32, %arg1: i32) -> (i32, i32) {
    %c0_i32 = arith.constant 0 : i32
    %c0_i32_0 = arith.constant 0 : i32
    %c0_i32_1 = arith.constant 0 : i32
    return %c0_i32, %c0_i32_0 : i32, i32
  }
  func.func @transform_6(%arg0: i32, %arg1: i32) -> (i32, i32) {
    %c0_i32 = arith.constant 0 : i32
    %c0_i32_0 = arith.constant 0 : i32
    %c0_i32_1 = arith.constant 0 : i32
    return %c0_i32, %c0_i32_0 : i32, i32
  }
  func.func @transform_7(%arg0: i32, %arg1: i32) -> (i32, i32) {
    %c0_i32 = arith.constant 0 : i32
    %c0_i32_0 = arith.constant 0 : i32
    %c0_i32_1 = arith.constant 0 : i32
    return %c0_i32, %c0_i32_0 : i32, i32
  }
  func.func @transform_8(%arg0: i32, %arg1: i32) -> (i32, i32) {
    %c0_i32 = arith.constant 0 : i32
    %c0_i32_0 = arith.constant 0 : i32
    %c0_i32_1 = arith.constant 0 : i32
    return %c0_i32, %c0_i32_0 : i32, i32
  }
  func.func @transform_9(%arg0: i32, %arg1: i32) -> (i32, i32) {
    %c0_i32 = arith.constant 0 : i32
    %c0_i32_0 = arith.constant 0 : i32
    %c0_i32_1 = arith.constant 0 : i32
    return %c0_i32, %c0_i32_0 : i32, i32
  }
  func.func @transform_10(%arg0: i32, %arg1: i32) -> (i32, i32) {
    %c0_i32 = arith.constant 0 : i32
    %c0_i32_0 = arith.constant 0 : i32
    %c0_i32_1 = arith.constant 0 : i32
    return %c0_i32, %c0_i32_0 : i32, i32
  }
  func.func @transform_11(%arg0: i32, %arg1: i32) -> (i32, i32) {
    %c0_i32 = arith.constant 0 : i32
    %c0_i32_0 = arith.constant 0 : i32
    %c0_i32_1 = arith.constant 0 : i32
    return %c0_i32, %c0_i32_0 : i32, i32
  }
  func.func @transform_12(%arg0: i32, %arg1: i32) -> (i32, i32) {
    %c0_i32 = arith.constant 0 : i32
    %c0_i32_0 = arith.constant 0 : i32
    %c0_i32_1 = arith.constant 0 : i32
    return %c0_i32, %c0_i32_0 : i32, i32
  }
  func.func @transform_13(%arg0: i32, %arg1: i32) -> (i32, i32, i32) {
    %c0_i32 = arith.constant 0 : i32
    %c0_i32_0 = arith.constant 0 : i32
    return %arg0, %arg1, %c0_i32 : i32, i32, i32
  }
}

</mosaic_0001>

<bundles_post_ra>
// kernel: tpu_custom_call.1
= control target key start
LH: loop header
LB: loop body
LE: loop exit
PB: predicated region body
PF: predicated region fallthrough
CT: control target
= control target key end

     0   :  { %s3821_s0 = inlined_call_operand.hbm [shape: f32[2,16,128], index: 0, kind: input, shape index: {}]   ;;  %s3822_s1 = inlined_call_operand.vmem [shape: f32[1,128], index: 1, kind: input, shape index: {}]   ;;  %s3823_s2 = inlined_call_operand.vmem [shape: f32[1,128], index: 2, kind: input, shape index: {}]   ;;  %s3824_s3 = inlined_call_operand.hbm [shape: bf16[128,128], index: 3, kind: input, shape index: {}]   ;;  %s3825_s4 = inlined_call_operand.hbm [shape: bf16[128,256], index: 4, kind: input, shape index: {}]   ;;  %s3826_s5 = inlined_call_operand.hbm [shape: bf16[128,128], index: 5, kind: input, shape index: {}]   ;;  %s3827_s6 = inlined_call_operand.vmem [shape: f32[1,128], index: 6, kind: input, shape index: {}]   ;;  %s3828_s7 = inlined_call_operand.vmem [shape: f32[1,128], index: 7, kind: input, shape index: {}]   ;;  %s3829_s8 = inlined_call_operand.vmem [shape: f32[1,128], index: 8, kind: input, shape index: {}]   ;;  %s3830_s9 = inlined_call_operand.hbm [shape: bf16[128,512], index: 9, kind: input, shape index: {}]   ;;  %s3831_s10 = inlined_call_operand.vmem [shape: f32[1,512], index: 10, kind: input, shape index: {}]   ;;  %s3832_s11 = inlined_call_operand.hbm [shape: bf16[512,128], index: 11, kind: input, shape index: {}]   ;;  %s3833_s12 = inlined_call_operand.vmem [shape: f32[1,128], index: 12, kind: input, shape index: {}]   ;;  %s3834_s13 = inlined_call_operand.hbm [shape: f32[2,16,128], index: 13, kind: output, shape index: {}]  }
   0x1   :  { %3848 = sst [smem:[#allocation25_spill]] %s3821_s0 }
   0x2   :  { %3849 = sst [smem:[#allocation26_spill]] %s3822_s1 }
   0x3   :  { %3850 = sst [smem:[#allocation27_spill]] %s3823_s2 }
   0x4   :  { %3851 = sst [smem:[#allocation28_spill]] %s3824_s3 }
   0x5   :  { %3852 = sst [smem:[#allocation29_spill]] %s3825_s4 }
   0x6   :  { %3853 = sst [smem:[#allocation30_spill]] %s3826_s5 }
   0x7   :  { %3854 = sst [smem:[#allocation31_spill]] %s3827_s6 }
   0x8   :  { %3855 = sst [smem:[#allocation32_spill]] %s3828_s7 }
   0x9   :  { %3856 = sst [smem:[#allocation33_spill]] %s3829_s8 }
   0xa   :  { %3857 = sst [smem:[#allocation34_spill]] %s3830_s9 }
   0xb   :  { %3858 = sst [smem:[#allocation35_spill]] %s3831_s10 }
   0xc   :  { %3859 = sst [smem:[#allocation36_spill]] %s3833_s12 }
   0xd   :  { %3860 = sst [smem:[#allocation37_spill]] %s3834_s13 }
   0xe   :  { %18 = vsyncpa [#allocation5], 0 }
   0xf   :  { %20 = vsyncpa [#allocation5 + $0x1], 0 }
  0x10   :  { %21 = vsyncpa [#allocation8], 0 }
  0x11   :  { %22 = vsyncpa [#allocation11], 0 }
  0x12   :  { %23 = vsyncpa [#allocation14], 0 }
  0x13   :  { %24 = vsyncpa [#allocation6], 0 }
  0x14   :  { %26 = vsyncpa [#allocation6 + $0x1], 0  ;;  %s3297_s25 = smov 0   ;;  %s3299_s26 = smov 0  }
  0x15   :  { %s3301_s27 = smov 0   ;;  %s3303_s28 = smov 0  }
  0x16   :  { %s3305_s29 = smov 0   ;;  %s3307_s30 = smov 0  }
  0x17   :  { %s3309_s14 = smov 0   ;;  %s3311_s15 = smov 0  }
  0x18   :  { %s3313_s16 = smov 0   ;;  %s3315_s17 = smov 0  }
  0x19   :  { %s3317_s18 = smov 0  }
  0x1a LB: > { %3861 = sst [smem:[#allocation21_spill]] %s3186_s14  ;;  %s2279_s19 = sadd.s32 4294967295, %s3202_s18   ;;  %s3202_s18 = sphi %s3317_s18, %s32_s18   ;;  %s3198_s17 = sphi %s3315_s17, %s3914_s17   ;;  %s3194_s16 = sphi %s3313_s16, %s3913_s16   ;;  %s3190_s15 = sphi %s3311_s15, %s3912_s15   ;;  %s3186_s14 = sphi %s3309_s14, %s3911_s14   ;;  %s3182_s30 = sphi %s3307_s30, %s3910_s30   ;;  %s3178_s29 = sphi %s3305_s29, %s3909_s29   ;;  %s3174_s28 = sphi %s3303_s28, %s3908_s28   ;;  %s3170_s27 = sphi %s3301_s27, %s3907_s27   ;;  %s3166_s26 = sphi %s3299_s26, %s3906_s26   ;;  %s3162_s25 = sphi %s3297_s25, %s3905_s25  }
  0x1b   : > { %3862 = sst [smem:[#allocation22_spill]] %s3190_s15  ;;  %p2281_p0 = scmp.ge.s32.totalorder %s3202_s18, 1 }
  0x1c   : > { %p3354_p1 = scmp.eq.s32.totalorder %s2279_s19, 0  ;;  %p3358_p2 = scmp.eq.s32.totalorder %s2279_s19, 3 }
  0x1d   : > { %p355_p3 = scmp.lt.s32.totalorder %s3202_s18, 5  ;;  %s3204_s23 = smov [#allocation7]  }
  0x1e   : > { %s3863_s20 = scalar_select %p3354_p1, 1, 0 }
  0x1f   : > { %s3864_s21 = scalar_select %p3358_p2, 1, 0 }
  0x20   : > { %p3363_p4 = pnand %p2281_p0, %p355_p3  ;;  %s373_s24 = sshll.u32 %s3204_s23, 4  ;;  %s3367_s24 = int_to_ptr.vmem [resolvable:$true] %s373_s24 }
  0x21   : > { %3865 = sst [smem:[#allocation23_spill]] %s3864_s21  ;;  %s3205_s19 = smov [#allocation10]  }
  0x22   : > { %s3866_s22 = scalar_select %p3363_p4, 1, 0 }
  0x23   : > { %p2609_p5 = pneg %p3363_p4  ;;  %s399_s12 = sshll.u32 %s3205_s19, 4  ;;  %s3377_s12 = int_to_ptr.vmem [resolvable:$true] %s399_s12 }
  0x24   : > { %3867 = sst [smem:[#allocation24_spill]] %s3866_s22  ;;  %s3206_s15 = smov [#allocation9]  }
  0x25   : > { %p3373_p6 = pnand %p2609_p5, %p3354_p1  ;;  %s386_s10 = sshll.u32 %s3206_s15, 4  ;;  %s3379_s10 = int_to_ptr.vmem [resolvable:$true] %s386_s10 }
  0x26   : > { %s3869_s3 = sld [smem:[#allocation28_spill]] }
  0x27   : > { %p3389_p8 = pneg %p3373_p6 }
  0x2c   : > { %s2898_s7 = scalar_lea.hbm %s3869_s3, 1024 }
  0x2d   : > { %p2899_p7 = scmp.ne.s32.totalorder %s3869_s3, %s2898_s7  ;;  %p2905_p11 = scmp.lt.u32.totalorder %s2898_s7, %s3869_s3 }
  0x2f   : > { %p2901_p9 = pnand %p3389_p8, %p2899_p7 }
  0x31   : > { %p2902_p10 = pneg %p2901_p9 }
  0x33   : > { %p2907_p12 = pnand %p2905_p11, %p2902_p10 }
  0x35   : > { %2910 = shalt.err (!%p2907_p12)
}
  0x36   : > { %s2911_s2 = scalar_lea.vmem %s3367_s24, 1024  ;;  %p2919_p5 = scmp.lt.s32.totalorder %s3367_s24, %s3367_s24 }
  0x37   : > { %p2912_p13 = scmp.ne.s32.totalorder %s3367_s24, %s2911_s2  ;;  %p2920_p4 = scmp.lt.s32.totalorder %s2911_s2, %s2911_s2 }
  0x39   : > { %p2914_p0 = pnand %p2912_p13, %p3389_p8  ;;  %p2921_p7 = por %p2920_p4, %p2919_p5 }
  0x3b   : > { %p2915_p3 = pneg %p2914_p0 }
  0x3d   : > { %p2922_p9 = pnand %p2921_p7, %p2915_p3 }
  0x3f   : > { %2925 = shalt.err (!%p2922_p9)
}
  0x40   : > { %s3841_s6 = smov 64   ;;  %s3842_s7 = smov 4  }
  0x41   : > { %2612 = dma.hbm_to_vmem [thread:$0]  (!%p3373_p6), %s3869_s3, 1024, %s3367_s24, [#allocation8], %s3841_s6, %s3841_s6, %s3842_s7  }
  0x42   : > { %s3871_s5 = sld [smem:[#allocation30_spill]] }
  0x48   : > { %s2926_s2 = scalar_lea.hbm %s3871_s5, 1024 }
  0x49   : > { %p2927_p4 = scmp.ne.s32.totalorder %s3871_s5, %s2926_s2  ;;  %p2933_p12 = scmp.lt.u32.totalorder %s2926_s2, %s3871_s5 }
  0x4b   : > { %p2929_p10 = pnand %p2927_p4, %p3389_p8 }
  0x4d   : > { %p2930_p11 = pneg %p2929_p10 }
  0x4f   : > { %p2935_p13 = pnand %p2933_p12, %p2930_p11 }
  0x51   : > { %2938 = shalt.err (!%p2935_p13)
}
  0x52   : > { %s2939_s24 = scalar_lea.vmem %s3377_s12, 1024  ;;  %p2947_p7 = scmp.lt.s32.totalorder %s3377_s12, %s3377_s12 }
  0x53   : > { %p2940_p0 = scmp.ne.s32.totalorder %s3377_s12, %s2939_s24  ;;  %p2948_p9 = scmp.lt.s32.totalorder %s2939_s24, %s2939_s24 }
  0x55   : > { %p2942_p3 = pnand %p2940_p0, %p3389_p8  ;;  %p2949_p4 = por %p2948_p9, %p2947_p7 }
  0x57   : > { %p2943_p5 = pneg %p2942_p3 }
  0x59   : > { %p2950_p10 = pnand %p2949_p4, %p2943_p5 }
  0x5b   : > { %2953 = shalt.err (!%p2950_p10)
}
  0x5c   : > { %2618 = dma.hbm_to_vmem [thread:$0]  (!%p3373_p6), %s3871_s5, 1024, %s3377_s12, [#allocation11], %s3841_s6, %s3841_s6, %s3842_s7  }
  0x5d   : > { %s3872_s4 = sld [smem:[#allocation29_spill]] }
  0x63   : > { %s2954_s8 = scalar_lea.hbm %s3872_s4, 2048 }
  0x64   : > { %p2955_p11 = scmp.ne.s32.totalorder %s3872_s4, %s2954_s8  ;;  %p2961_p0 = scmp.lt.u32.totalorder %s2954_s8, %s3872_s4 }
  0x66   : > { %p2957_p12 = pnand %p2955_p11, %p3389_p8 }
  0x68   : > { %p2958_p13 = pneg %p2957_p12 }
  0x6a   : > { %p2963_p3 = pnand %p2961_p0, %p2958_p13 }
  0x6c   : > { %2966 = shalt.err (!%p2963_p3)
}
  0x6d   : > { %s2967_s12 = scalar_lea.vmem %s3379_s10, 2048  ;;  %p2975_p4 = scmp.lt.s32.totalorder %s3379_s10, %s3379_s10 }
  0x6e   : > { %p2968_p5 = scmp.ne.s32.totalorder %s3379_s10, %s2967_s12  ;;  %p2976_p10 = scmp.lt.s32.totalorder %s2967_s12, %s2967_s12 }
  0x70   : > { %p2970_p7 = pnand %p2968_p5, %p3389_p8  ;;  %p2977_p11 = por %p2976_p10, %p2975_p4 }
  0x72   : > { %p2971_p9 = pneg %p2970_p7 }
  0x74   : > { %p2978_p12 = pnand %p2977_p11, %p2971_p9 }
  0x76   : > { %2981 = shalt.err (!%p2978_p12)
}
  0x77   : > { %s3845_s24 = smov 128   ;;  %s3846_s0 = smov 8  }
  0x78   : > { %2615 = dma.hbm_to_vmem [thread:$0]  (!%p3373_p6), %s3872_s4, 2048, %s3379_s10, [#allocation8], %s3845_s24, %s3845_s24, %s3846_s0  }
  0x79   : > { %s3211_s22 = smov [#allocation12]   ;;  %s3873_s9 = sld [smem:[#allocation34_spill]] }
  0x7a   : > { %s421_s8 = sshll.u32 %s3211_s22, 4  ;;  %s422_s8 = int_to_ptr.vmem [resolvable:$true] %s421_s8 }
  0x7f   : > { %s2982_s19 = scalar_lea.hbm %s3873_s9, 4096 }
  0x80   : > { %p2983_p13 = scmp.ne.s32.totalorder %s3873_s9, %s2982_s19  ;;  %p2989_p5 = scmp.lt.u32.totalorder %s2982_s19, %s3873_s9 }
  0x82   : > { %p2985_p0 = pnand %p2983_p13, %p3389_p8 }
  0x84   : > { %p2986_p3 = pneg %p2985_p0 }
  0x86   : > { %p2991_p7 = pnand %p2989_p5, %p2986_p3 }
  0x88   : > { %2994 = shalt.err (!%p2991_p7)
}
  0x89   : > { %s2995_s10 = scalar_lea.vmem %s422_s8, 4096  ;;  %p3003_p11 = scmp.lt.s32.totalorder %s422_s8, %s422_s8 }
  0x8a   : > { %p2996_p9 = scmp.ne.s32.totalorder %s422_s8, %s2995_s10  ;;  %p3004_p12 = scmp.lt.s32.totalorder %s2995_s10, %s2995_s10 }
  0x8c   : > { %p2998_p4 = pnand %p2996_p9, %p3389_p8  ;;  %p3005_p2 = por %p3004_p12, %p3003_p11 }
  0x8e   : > { %p2999_p10 = pneg %p2998_p4 }
  0x90   : > { %p3006_p1 = pnand %p3005_p2, %p2999_p10 }
  0x92   : > { %3009 = shalt.err (!%p3006_p1)
}
  0x93   : > { %s3212_s14 = smov 256   ;;  %s3213_s21 = smov 16  }
  0x94   : > { %2621 = dma.hbm_to_vmem [thread:$0]  (!%p3373_p6), %s3873_s9, 4096, %s422_s8, [#allocation11], %s3212_s14, %s3212_s14, %s3213_s21  }
  0x95   : > { %s3214_s22 = smov [#allocation13]   ;;  %s3010_s2 = scalar_lea.hbm %s3832_s11, 4096 }
  0x96   : > { %s437_s23 = sshll.u32 %s3214_s22, 4  ;;  %p3011_p1 = scmp.ne.s32.totalorder %s3832_s11, %s3010_s2  ;;  %s438_s23 = int_to_ptr.vmem [resolvable:$true] %s437_s23 }
  0x97   : > { %p3017_p0 = scmp.lt.u32.totalorder %s3010_s2, %s3832_s11 }
  0x98   : > { %p3013_p2 = pnand %p3011_p1, %p3389_p8 }
  0x9a   : > { %p3014_p13 = pneg %p3013_p2 }
  0x9c   : > { %p3019_p3 = pnand %p3017_p0, %p3014_p13 }
  0x9e   : > { %3022 = shalt.err (!%p3019_p3)
}
  0x9f   : > { %s3023_s8 = scalar_lea.vmem %s438_s23, 4096  ;;  %p3031_p4 = scmp.lt.s32.totalorder %s438_s23, %s438_s23 }
  0xa0   : > { %p3024_p5 = scmp.ne.s32.totalorder %s438_s23, %s3023_s8  ;;  %p3032_p10 = scmp.lt.s32.totalorder %s3023_s8, %s3023_s8 }
  0xa2   : > { %p3026_p7 = pnand %p3024_p5, %p3389_p8  ;;  %p3033_p11 = por %p3032_p10, %p3031_p4 }
  0xa4   : > { %p3027_p9 = pneg %p3026_p7 }
  0xa6   : > { %p3034_p12 = pnand %p3033_p11, %p3027_p9 }
  0xa8   : > { %3037 = shalt.err (!%p3034_p12)
}
  0xa9   : > { %s3874_s14 = smov 4   ;;  %s3875_s21 = smov 64  }
  0xaa   : > { %2624 = dma.hbm_to_vmem [thread:$0]  (!%p3373_p6), %s3832_s11, 4096, %s438_s23, [#allocation14], %s3875_s21, %s3875_s21, %s3874_s14  }
  0xab   : > { %s2280_s1 = sadd.s32 4294967294, %s3202_s18   ;;  %s41_s13 = sadd.s32 1, %s3194_s16 }
  0xac   : > { %p42_p8 = scmp.ge.s32.totalorder %s41_s13, 2  ;;  %s44_s6 = sadd.s32 1, %s3198_s17 }
  0xad   : > { %s51_s7 = sadd.s32 1, %s3182_s30  ;;  %p58_p1 = scmp.ne.s32.totalorder %s3182_s30, %s3178_s29 }
  0xae   : > { %s3916_s13 = smov (%p42_p8, %s41_s13), 0  ;;  %s3876_s22 = sld [smem:[#allocation23_spill]] }
  0xaf   : > { %s3918_s6 = smov (!%p42_p8, %s44_s6), %s3198_s17  ;;  %p59_p2 = scmp.eq.s32.totalorder %s3202_s18, 0 }
  0xb0   : > { %p64_p6 = scmp.ne.s32.totalorder %s3178_s29, %s3174_s28  ;;  %p46_p13 = scmp.ge.s32.totalorder %s3918_s6, 2 }
  0xb1   : > { %s327_s23 = ssub.s32 %s3194_s16, %s3916_s13  ;;  %p3518_p0 = por %p59_p2, %p58_p1 }
  0xb2   : > { %p3878_p3 = scmp.ne.s32.totalorder %s3863_s20, 0  ;;  %s3920_s6 = smov (%p46_p13, %s3918_s6), 0 }
  0xb3   : > { %s331_s2 = sadd.s32 1, %s3170_s27  ;;  %p341_p7 = scmp.ne.s32.totalorder %s3170_s27, %s3166_s26 }
  0xb4   : > { %p3524_p5 = por %p3878_p3, %p64_p6  ;;  %s48_s28 = ssub.s32 %s3198_s17, %s3920_s6 }
  0xb5   : > { %p347_p9 = scmp.ne.s32.totalorder %s3166_s26, %s3162_s25  ;;  %p49_p4 = scmp.eq.s32.totalorder %s48_s28, 0 }
  0xb6   : > { %s328_s12 = sor.u32 %s327_s23, %s48_s28  ;;  %p3880_p11 = scmp.ne.s32.totalorder %s3876_s22, 0 }
  0xb7   : > { %p329_p10 = scmp.eq.s32.totalorder %s328_s12, 0  ;;  %p348_p8 = scmp.eq.s32.totalorder %s2280_s1, 3 }
  0xb8   : > { %p3539_p12 = por %p3880_p11, %p341_p7  ;;  %p2638_p1 = scmp.lt.s32.totalorder %s3202_s18, 4 }
  0xb9   : > { %s3544_s8 = scalar_select %p49_p4, %s3182_s30, %s51_s7  }
  0xba   : > { %s3881_s10 = scalar_select %p3539_p12, 1, 0 }
  0xbb   : > { %s3547_s14 = scalar_select %p329_p10, %s3170_s27, %s331_s2  }
  0xbc   : > { %s454_s21 = sand.u32 1, %s3182_s30   ;;  %s2418_s24 = sshll.u32 %s3198_s17, 8 }
  0xbd   : > { %p3552_p2 = por %p348_p8, %p347_p9  ;;  %s2288_s3 = sshll.u32 %s454_s21, 4 }
  0xbe   : > { %s3883_s22 = sld [smem:[#allocation25_spill]]  ;;  %p3563_p6 = pnand %p2638_p1, %p3518_p0 }
  0xbf   : > { %s3882_s0 = scalar_select %p3552_p2, 1, 0 }
  0xc0   : > { %s458_s7 = scalar_lea.vmem [#allocation4], %s2288_s3  ;;  %s3569_s4 = scalar_lea.sflag [#allocation5], %s454_s21 }
  0xc1   : > { %s465_s2 = sshll.u32 %s458_s7, 4  ;;  %p3040_p3 = pneg %p3563_p6  ;;  %s3567_s2 = int_to_ptr.vmem [resolvable:$true] %s465_s2 }
  0xc4   : > { %s3559_s12 = scalar_lea.hbm %s3883_s22, %s2418_s24  ;;  %s3043_s28 = scalar_lea.hbm %s3883_s22, 512 }
  0xc5   : > { %s3038_s23 = scalar_lea.hbm %s3559_s12, 256  ;;  %p3044_p0 = scmp.lt.u32.totalorder %s3559_s12, %s3883_s22 }
  0xc6   : > { %p3039_p13 = scmp.ne.s32.totalorder %s3559_s12, %s3038_s23  ;;  %p3045_p4 = scmp.lt.u32.totalorder %s3043_s28, %s3038_s23 }
  0xc7   : > { %p3047_p11 = scmp.lt.u32.totalorder %s3038_s23, %s3559_s12 }
  0xc8   : > { %p3041_p7 = pnand %p3040_p3, %p3039_p13  ;;  %p3046_p10 = por %p3045_p4, %p3044_p0 }
  0xca   : > { %p3042_p9 = pneg %p3041_p7  ;;  %p3048_p8 = por %p3047_p11, %p3046_p10 }
  0xcc   : > { %p3049_p1 = pnand %p3048_p8, %p3042_p9 }
  0xce   : > { %3052 = shalt.err (!%p3049_p1)
}
  0xcf   : > { %s3053_s3 = scalar_lea.vmem %s3567_s2, 256  ;;  %s3215_s21 = smov [#allocation4]  }
  0xd0   : > { %p3054_p13 = scmp.ne.s32.totalorder %s3567_s2, %s3053_s3  ;;  %s3058_s7 = sshll.u32 %s3215_s21, 4  ;;  %s3059_s7 = int_to_ptr.vmem [resolvable:$false] %s3058_s7 }
  0xd1   : > { %s3060_s5 = scalar_lea.vmem %s3059_s7, 512  ;;  %p3061_p12 = scmp.lt.s32.totalorder %s3567_s2, %s3059_s7 }
  0xd2   : > { %p3056_p7 = pnand %p3054_p13, %p3040_p3  ;;  %p3062_p0 = scmp.lt.s32.totalorder %s3060_s5, %s3053_s3 }
  0xd4   : > { %p3057_p2 = pneg %p3056_p7  ;;  %p3063_p4 = por %p3062_p0, %p3061_p12 }
  0xd6   : > { %p3064_p10 = pnand %p3063_p4, %p3057_p2 }
  0xd8   : > { %3067 = shalt.err (!%p3064_p10)
}
  0xd9   : > { %s3885_s9 = smov 8   ;;  %s3886_s23 = smov 128  }
  0xda   : > { %2628 = dma.hbm_to_vmem [thread:$0]  (!%p3563_p6), %s3559_s12, 256, %s3567_s2, %s3569_s4, %s3886_s23, %s3886_s23, %s3885_s9  }
  0xdb   : > { %s3887_s15 = sld [smem:[#allocation24_spill]] }
  0xe1   : > { %p3888_p3 = scmp.ne.s32.totalorder %s3887_s15, 0 }
  0xe2   : > { %s479_s24 = sand.u32 (!%p3888_p3), 1, %s3178_s29  }
  0xe3   : > { %477 = sbr.rel (%p3888_p3) target bundleno = 3420 (0xd5c), region = 72  ;;  %s2292_s28 = sshll.u32 (!%p3888_p3), %s479_s24, 4 }
  0xe4   : > { %s480_s3 = scalar_lea.sflag (!%p3888_p3), [#allocation5], %s479_s24  ;;  %s3603_s21 = scalar_lea.vmem (!%p3888_p3), [#allocation4], %s2292_s28 }
  0xea   : > { %3141 = dma.done.wait (%p3524_p5), %s480_s3, 256  }
  0xeb   : > { %3143 = vsyncadd (%p3524_p5), %s480_s3, 4294967040  ;;  %p3889_p12 = scmp.ne.s32.totalorder %s3863_s20, 0 }
  0xed   : > { %3145 = dma.done.wait (%p3889_p12), [#allocation8], 3072  }
  0xee   : > { %3147 = vsyncadd (%p3889_p12), [#allocation8], 4294964224 }
  0xef   : > { %3149 = dma.done.wait (%p3889_p12), [#allocation11], 5120  }
  0xf0   : > { %3151 = vsyncadd (%p3889_p12), [#allocation11], 4294962176 }
  0xf1   : > { %3153 = dma.done.wait (%p3889_p12), [#allocation14], 4096  }
  0xf2   : > { %3155 = vsyncadd (%p3889_p12), [#allocation14], 4294963200  ;;  %s543_s4 = sand.u32 1, %s3166_s26   ;;  %s3890_s1 = sld [smem:[#allocation21_spill]] }
  0xf3   : > { %s3624_s19 = sshll.u32 %s543_s4, 3 }
  0xf4   : > { %s545_s12 = scalar_lea.vmem [#allocation15], %s3624_s19 }
  0xf8   : > { %p2299_p5 = scmp.ne.s32.totalorder %s3890_s1, 0 }
  0xf9   : > { %v551_v0 = vld [vmem:[%s3603_s21] sm:$0xff] (!%p2299_p5)  ;;  %v552_v1 = vld [vmem:[%s3603_s21 + $0x8] sm:$0xff] (!%p2299_p5)  ;;  %v3216_v21 = vmov (!%p2299_p5), 0   ;;  %s3891_s7 = sld [smem:[#allocation26_spill]] (!%p2299_p5)  ;;  %s3892_s23 = sld [smem:[#allocation27_spill]] (!%p2299_p5)  ;;  %vm746_vm0 = vcmask (!%p2299_p5), 261120  }
  0xfa   : > { %550 = sbr.rel (%p2299_p5) target bundleno = 911 (0x38f), region = 100  ;;  %555 = vadd.xlane.f32.xlu0 (!%p2299_p5), %v551_v0  ;;  %v2754_v2 = vld [vmem:[#allocation9 + $0x4] ss:$8 sps:$4 sm:$0xff] (!%p2299_p5)   ;;  %v2756_v3 = vld [vmem:[#allocation9] ss:$8 sps:$4 sm:$0xff] (!%p2299_p5)   ;;  %723 = vmatprep.mubr.bf16.mxu0 (!%p2299_p5), %v3216_v21  ;;  %s3217_s15 = smov (!%p2299_p5), 64  }
  0xfb   : > { %v2757_v4 = vld [vmem:[#allocation9 + $0x14] ss:$8 sps:$4 sm:$0xff] (!%p2299_p5)   ;;  %691 = vmatprep.subr.bf16.mxu0 (!%p2299_p5), %v2754_v2  ;;  %v2759_v13 = vld [vmem:[#allocation9 + $0x10] ss:$8 sps:$4 sm:$0xff] (!%p2299_p5)   ;;  %v2760_v14 = vld [vmem:[#allocation9 + $0x24] ss:$8 sps:$4 sm:$0xff] (!%p2299_p5)  }
  0xfc   : > { %692 = vmatpush1.bf16.msra.mxu0 (!%p2299_p5), %v2756_v3  ;;  %v2762_v15 = vld [vmem:[#allocation9 + $0x20] ss:$8 sps:$4 sm:$0xff] (!%p2299_p5)   ;;  %v2763_v16 = vld [vmem:[#allocation9 + $0x34] ss:$8 sps:$4 sm:$0xff] (!%p2299_p5)   ;;  %v2765_v17 = vld [vmem:[#allocation9 + $0x30] ss:$8 sps:$4 sm:$0xff] (!%p2299_p5)  }
  0xfd   : > { %693 = vmatprep.subr.bf16.mxu0 (!%p2299_p5), %v2757_v4  ;;  %v2766_v18 = vld [vmem:[#allocation9 + $0x44] ss:$8 sps:$4 sm:$0xff] (!%p2299_p5)   ;;  %v2768_v19 = vld [vmem:[#allocation9 + $0x40] ss:$8 sps:$4 sm:$0xff] (!%p2299_p5)   ;;  %v2769_v20 = vld [vmem:[#allocation9 + $0x54] ss:$8 sps:$4 sm:$0xff] (!%p2299_p5)  }
  0xfe   : > { %557 = vadd.xlane.f32.xlu0 (!%p2299_p5), %v552_v1  ;;  %v2771_v22 = vld [vmem:[#allocation9 + $0x50] ss:$8 sps:$4 sm:$0xff] (!%p2299_p5)   ;;  %v2772_v23 = vld [vmem:[#allocation9 + $0x64] ss:$8 sps:$4 sm:$0xff] (!%p2299_p5)   ;;  %v2774_v24 = vld [vmem:[#allocation9 + $0x60] ss:$8 sps:$4 sm:$0xff] (!%p2299_p5)  }
  0xff   : > { %v2775_v25 = vld [vmem:[#allocation9 + $0x74] ss:$8 sps:$4 sm:$0xff] (!%p2299_p5)   ;;  %v2777_v26 = vld [vmem:[#allocation9 + $0x70] ss:$8 sps:$4 sm:$0xff] (!%p2299_p5)   ;;  %v2300_v35 = vld [vmem:[%s3891_s7] ss:$0 sm:$0xff] (!%p2299_p5) }
 0x100   : > { %694 = vmatpush1.bf16.msra.mxu0 (!%p2299_p5), %v2759_v13  ;;  %v2301_v39 = vld [vmem:[%s3892_s23] ss:$0 sm:$0xff] (!%p2299_p5)  ;;  %s3218_s24 = smov (!%p2299_p5), 96   ;;  %s3219_s28 = smov (!%p2299_p5), 32  }
 0x101   : > { %695 = vmatprep.subr.bf16.mxu0 %v2760_v14 }
 0x104   : > { %696 = vmatpush1.bf16.msra.mxu0 %v2762_v15 }
 0x105   : > { %697 = vmatprep.subr.bf16.mxu0 %v2763_v16 }
 0x108   : > { %698 = vmatpush1.bf16.msra.mxu0 %v2765_v17 }
 0x109   : > { %699 = vmatprep.subr.bf16.mxu0 %v2766_v18 }
 0x10c   : > { %700 = vmatpush1.bf16.msra.mxu0 %v2768_v19 }
 0x10d   : > { %701 = vmatprep.subr.bf16.mxu0 %v2769_v20 }
 0x110   : > { %702 = vmatpush1.bf16.msra.mxu0 %v2771_v22 }
 0x111   : > { %703 = vmatprep.subr.bf16.mxu0 %v2772_v23 }
 0x114   : > { %704 = vmatpush1.bf16.msra.mxu0 %v2774_v24 }
 0x115   : > { %705 = vmatprep.subr.bf16.mxu0 %v2775_v25 }
 0x118   : > { %706 = vmatpush1.bf16.msra.mxu0 %v2777_v26 }
 0x187   : > { %v556_v5 = vpop.xlane.xlu0 %555 }
 0x188   : > { %v560_v6 = vmul.f32 0.0078125, %v556_v5 }
 0x18a   : > { %v562_v7 = vsub.f32 %v551_v0, %v560_v6 }
 0x18b   : > { %v558_v8 = vpop.xlane.xlu0 %557 }
 0x18c   : > { %v561_v9 = vmul.f32 0.0078125, %v558_v8  ;;  %v564_v10 = vmul.f32 %v562_v7, %v562_v7 }
 0x18e   : > { %v563_v11 = vsub.f32 %v552_v1, %v561_v9  ;;  %566 = vadd.xlane.f32.xlu1 %v564_v10 }
 0x190   : > { %v565_v12 = vmul.f32 %v563_v11, %v563_v11 }
 0x192   : > { %568 = vadd.xlane.f32.xlu1 %v565_v12 }
 0x21b   : > { %v567_v27 = vpop.xlane.xlu1 %566 }
 0x21c   : > { %v570_v28 = vmul.f32 0.0078125, %v567_v27 }
 0x21e   : > { %v572_v29 = vadd.f32 1e-05, %v570_v28 }
 0x21f   : > { %v569_v30 = vpop.xlane.xlu1 %568 }
 0x220   : > { %2778 = vrsqrt.f32 %v572_v29  ;;  %v571_v31 = vmul.f32 0.0078125, %v569_v30 }
 0x222   : > { %v573_v32 = vadd.f32 1e-05, %v571_v31 }
 0x224   : > { %2780 = vrsqrt.f32 %v573_v32 }
 0x22a   : > { %v2779_v33 = vpop.eup %2778 }
 0x22b   : > { %v576_v34 = vmul.f32 %v2779_v33, %v562_v7 }
 0x22d   : > { %v584_v38 = vmul.f32 %v2300_v35, %v576_v34 }
 0x22e   : > { %v2781_v36 = vpop.eup %2780 }
 0x22f   : > { %v577_v37 = vmul.f32 %v2781_v36, %v563_v11  ;;  %v592_v41 = vadd.f32 %v2301_v39, %v584_v38 }
 0x231   : > { %v585_v40 = vmul.f32 %v2300_v35, %v577_v37 }
 0x233   : > { %v593_v42 = vadd.f32 %v2301_v39, %v585_v40 }
 0x235   : > { %v594_v43 = vpack.c.bf16 %v593_v42, %v592_v41 }
 0x237   : > { %724 = vmatmul.mubr.bf16.vlgmr.msra.gmra.mrb[0].mxu0 %v594_v43 }
 0x30a   : > { %v725_v44 = vpop.f32.mrb[0].mxu0 }
 0x30b   : > { %v727_v45 = vpop.f32.mrb[1].mxu0 }
 0x30c   : > { %v729_v46 = vpop.f32.mrb[2].mxu0 }
 0x30d   : > { %v734_v47 = vpack.c.bf16 %v729_v46, %v725_v44  ;;  %v731_v48 = vpop.f32.mrb[3].mxu0 }
 0x30e   : > { %v735_v49 = vpack.c.bf16 %v731_v48, %v727_v45 }
 0x30f   : > { %747 = vst.msk [vmem:[#allocation2] sm:$0xff] %vm746_vm0, %v734_v47  ;;  %740 = vrot.lane.b32.xlu1 %v734_v47, %s3217_s15  ;;  %737 = vrot.lane.b32.xlu0 %v734_v47, %s3218_s24 }
 0x310   : > { %761 = vst.msk [vmem:[#allocation3] sm:$0xff] %vm746_vm0, %v735_v49 }
 0x313   : > { %743 = vrot.lane.b32.xlu1 %v734_v47, %s3219_s28  ;;  %755 = vrot.lane.b32.xlu0 %v735_v49, %s3217_s15 }
 0x317   : > { %752 = vrot.lane.b32.xlu1 %v735_v49, %s3218_s24 }
 0x31b   : > { %758 = vrot.lane.b32.xlu1 %v735_v49, %s3219_s28 }
 0x381   : > { %v741_v50 = vpop.permute.xlu1 %740  ;;  %v738_v51 = vpop.permute.xlu0 %737 }
 0x382   : > { %749 = vst.msk [vmem:[#allocation2 + $0x10] sm:$0xff] %vm746_vm0, %v741_v50  ;;  %748 = vst.msk [vmem:[#allocation2 + $0x8] sm:$0xff] %vm746_vm0, %v738_v51 }
 0x385   : > { %v744_v52 = vpop.permute.xlu1 %743  ;;  %v756_v53 = vpop.permute.xlu0 %755 }
 0x386   : > { %750 = vst.msk [vmem:[#allocation2 + $0x18] sm:$0xff] %vm746_vm0, %v744_v52  ;;  %763 = vst.msk [vmem:[#allocation3 + $0x10] sm:$0xff] %vm746_vm0, %v756_v53 }
 0x389   : > { %v753_v54 = vpop.permute.xlu1 %752 }
 0x38a   : > { %762 = vst.msk [vmem:[#allocation3 + $0x8] sm:$0xff] %vm746_vm0, %v753_v54 }
 0x38d   : > { %v759_v55 = vpop.permute.xlu1 %758 }
 0x38e   : > { %764 = vst.msk [vmem:[#allocation3 + $0x18] sm:$0xff] %vm746_vm0, %v759_v55 }
 0x38f PF: > { %s3893_s3 = sld [smem:[#allocation21_spill]]  ;;  %v2782_v57 = vld [vmem:[#allocation7] sm:$0xff]   ;;  %v2783_v58 = vld [vmem:[#allocation7 + $0x8] sm:$0xff]   ;;  %v3220_v59 = vmov 0.0   ;;  %v2784_v0 = vld [vmem:[#allocation7 + $0x10] sm:$0xff]   ;;  %vm3221_vm1 = vmmov 0  }
 0x390   : > { %2497 = vmatprep.subr.bf16.mxu0 %v3220_v59  ;;  %2517 = vmatprep.subr.bf16.mxu1 %v3220_v59  ;;  %v2785_v1 = vld [vmem:[#allocation7 + $0x18] sm:$0xff]   ;;  %v2786_v2 = vld [vmem:[#allocation7 + $0x20] sm:$0xff]   ;;  %v2787_v3 = vld [vmem:[#allocation7 + $0x28] sm:$0xff]   ;;  %vm913_vm2 = vcmask 261120   ;;  %s3894_s7 = sld [smem:[#allocation26_spill]]  ;;  %s3895_s23 = sld [smem:[#allocation27_spill]] }
 0x391   : > { %2498 = vmatpush3.bf16.msra.mxu0 %v2782_v57  ;;  %2513 = vmatprep.mubr.msk.bf16.mxu0 %vm3221_vm1, %v3220_v59  ;;  %v2788_v4 = vld [vmem:[#allocation7 + $0x30] sm:$0xff]   ;;  %v2789_v5 = vld [vmem:[#allocation7 + $0x38] sm:$0xff]   ;;  %v909_v6 = vld [vmem:[#allocation2] sm:$0xff]  ;;  %s3222_s15 = smov 32   ;;  %s3223_s24 = smov 96   ;;  %vm1098_vm3 = vcmask 130048  }
 0x392   : > { %2499 = vmatprep.subr.bf16.mxu0 %v3220_v59  ;;  %2519 = vmatprep.mubr.msk.bf16.mxu1 %vm3221_vm1, %v3220_v59  ;;  %v918_v7 = vsel %vm913_vm2, %v909_v6, 0  ;;  %v910_v18 = vld [vmem:[#allocation2 + $0x8] sm:$0xff]  ;;  %s3224_s28 = smov 64   ;;  %v911_v25 = vld [vmem:[#allocation2 + $0x10] sm:$0xff]  ;;  %v912_v28 = vld [vmem:[#allocation2 + $0x18] sm:$0xff]  ;;  %vm1336_vm4 = vcmask 523264  }
 0x393   : > { %2518 = vmatpush3.bf16.xpose.msra.mxu1 %v918_v7  ;;  %v964_v23 = vsel %vm913_vm2, %v910_v18, 0  ;;  %v1010_v26 = vsel %vm913_vm2, %v911_v25, 0  ;;  %v1056_v29 = vsel %vm913_vm2, %v912_v28, 0  ;;  %vm1338_vm5 = vcmask 785408   ;;  %s3897_s5 = sld [smem:[#allocation32_spill]]  ;;  %p3903_p6 = scmp.ne.s32.totalorder %s3881_s10, 0 }
 0x394   : > { %2523 = vmatprep.subr.bf16.mxu1 %v3220_v59  ;;  %s3226_s2 = smov [#allocation15]  }
 0x395   : > { %s2318_s1 = sshll.u32 %s3893_s3, 3  ;;  %2500 = vmatpush3.bf16.msra.mxu0 %v2783_v58  ;;  %v1147_v58 = vld [vmem:[#allocation3] sm:$0xff] }
 0x396   : > { %s766_s20 = scalar_lea.vmem %s3603_s21, %s2318_s1 [#allocation4]  ;;  %2501 = vmatprep.subr.bf16.mxu0 %v3220_v59  ;;  %v2319_v12 = vld [vmem:[%s3894_s7] ss:$0 sm:$0xff]  ;;  %s3896_s21 = sld [smem:[#allocation31_spill]] }
 0x397   : > { %v3646_v56 = vld [vmem:[%s766_s20] sm:$0xff]  ;;  %s3899_s1 = sld [smem:[#allocation35_spill]]  ;;  %s3900_s20 = sld [smem:[#allocation22_spill]] }
 0x398   : > { %770 = vadd.xlane.f32.xlu0 %v3646_v56  ;;  %v2320_v14 = vld [vmem:[%s3895_s23] ss:$0 sm:$0xff]  ;;  %s3072_s7 = sshll.u32 %s3226_s2, 4  ;;  %s3073_s7 = int_to_ptr.vmem [resolvable:$false] %s3072_s7 }
 0x399   : > { %2502 = vmatpush3.bf16.msra.mxu0 %v2784_v0 }
 0x39a   : > { %2503 = vmatprep.subr.bf16.mxu0 %v3220_v59 }
 0x39d   : > { %2504 = vmatpush3.bf16.msra.mxu0 %v2785_v1 }
 0x39e   : > { %2505 = vmatprep.subr.bf16.mxu0 %v3220_v59 }
 0x3a1   : > { %2506 = vmatpush3.bf16.msra.mxu0 %v2786_v2 }
 0x3a2   : > { %2507 = vmatprep.subr.bf16.mxu0 %v3220_v59 }
 0x3a5   : > { %2508 = vmatpush3.bf16.msra.mxu0 %v2787_v3 }
 0x3a6   : > { %2509 = vmatprep.subr.bf16.mxu0 %v3220_v59 }
 0x3a9   : > { %2510 = vmatpush3.bf16.msra.mxu0 %v2788_v4 }
 0x3aa   : > { %2511 = vmatprep.subr.bf16.mxu0 %v3220_v59 }
 0x3ad   : > { %2512 = vmatpush3.bf16.msra.mxu0 %v2789_v5 }
 0x3ae   : > { %2565 = vmatprep.subr.bf16.mxu0 %v3220_v59 }
 0x425   : > { %v771_v60 = vpop.xlane.xlu0 %770 }
 0x426   : > { %v773_v61 = vmul.f32 0.0078125, %v771_v60 }
 0x428   : > { %v774_v62 = vsub.f32 %v3646_v56, %v773_v61 }
 0x42a   : > { %v775_v63 = vmul.f32 %v774_v62, %v774_v62 }
 0x42c   : > { %776 = vadd.xlane.f32.xlu0 %v775_v63 }
 0x4b9   : > { %v777_v8 = vpop.xlane.xlu0 %776 }
 0x4ba   : > { %v778_v9 = vmul.f32 0.0078125, %v777_v8 }
 0x4bc   : > { %v779_v10 = vadd.f32 1e-05, %v778_v9 }
 0x4be   : > { %2878 = vrsqrt.f32 %v779_v10 }
 0x4c8   : > { %v2879_v11 = vpop.eup %2878 }
 0x4c9   : > { %v781_v13 = vmul.f32 %v2879_v11, %v774_v62 }
 0x4cb   : > { %v788_v15 = vmul.f32 %v2319_v12, %v781_v13 }
 0x4cd   : > { %v795_v16 = vadd.f32 %v2320_v14, %v788_v15  ;;  %v1148_v15 = vld [vmem:[#allocation3 + $0x8] sm:$0xff] }
 0x4cf   : > { %v796_v17 = vpack.c.bf16 %v795_v16, %v795_v16 }
 0x4d1   : > { %2514 = vmatmul.mubr.bf16.vlgmr.msra.gmra.mrb[0].mxu0 %v796_v17 }
 0x4d2   : > { %2581 = vmatprep.mubr.msk.bf16.mxu0 %vm3221_vm1, %v3220_v59 }
 0x5a4   : > { %v895_v19 = vpop.f32.mrb[0].mxu0 }
 0x5a5   : > { %v901_v20 = vpack.c.bf16 %v895_v19, %v895_v19  ;;  %v2515_v21 = vpop.f32.mrb[1].mxu0 }
 0x5a6   : > { %v898_v22 = vpop.f32.mrb[2].mxu0  ;;  %v1149_v21 = vld [vmem:[#allocation3 + $0x10] sm:$0xff] }
 0x5a7   : > { %907 = vrot.lane.b32.xlu0 %v901_v20, %s3222_s15  ;;  %903 = vrot.lane.b32.xlu1 %v901_v20, %s3223_s24  ;;  %v2516_v24 = vpop.f32.mrb[3].mxu0 }
 0x5a8   : > { %2520 = vmatmul.mubr.msk.bf16.vlgmr.msra.gmra.mrb[0].mxu1 %vm913_vm2, %v901_v20 }
 0x5a9   : > { %2524 = vmatpush3.bf16.xpose.msra.mxu1 %v964_v23  ;;  %2525 = vmatprep.mubr.msk.bf16.mxu1 %vm3221_vm1, %v3220_v59 }
 0x5aa   : > { %2529 = vmatprep.subr.bf16.mxu1 %v3220_v59 }
 0x5ab   : > { %905 = vrot.lane.b32.xlu1 %v901_v20, %s3224_s28 }
 0x619   : > { %v904_v27 = vpop.permute.xlu1 %903  ;;  %v908_v31 = vpop.permute.xlu0 %907 }
 0x61a   : > { %2526 = vmatmul.mubr.msk.bf16.vlgmr.msra.gmra.mrb[4].mxu1 %vm913_vm2, %v904_v27 }
 0x61b   : > { %2530 = vmatpush3.bf16.xpose.msra.mxu1 %v1010_v26  ;;  %2531 = vmatprep.mubr.msk.bf16.mxu1 %vm3221_vm1, %v3220_v59  ;;  %v1150_v26 = vld [vmem:[#allocation3 + $0x18] sm:$0xff] }
 0x61c   : > { %2535 = vmatprep.subr.bf16.mxu1 %v3220_v59 }
 0x61d   : > { %v906_v30 = vpop.permute.xlu1 %905 }
 0x622   : > { %2532 = vmatmul.mubr.msk.bf16.vlgmr.msra.gmra.mrb[8].mxu1 %vm913_vm2, %v906_v30 }
 0x623   : > { %2536 = vmatpush3.bf16.xpose.msra.mxu1 %v1056_v29  ;;  %2537 = vmatprep.mubr.msk.bf16.mxu1 %vm3221_vm1, %v3220_v59 }
 0x624   : > { %2541 = vmatprep.subr.bf16.mxu1 %v3220_v59 }
 0x62a   : > { %2538 = vmatmul.mubr.msk.bf16.vlgmr.msra.gmra.mrb[12].mxu1 %vm913_vm2, %v908_v31 }
 0x62b   : > { %2543 = vmatprep.mubr.msk.bf16.mxu1 %vm3221_vm1, %v3220_v59  ;;  %2542 = vmatpush3.bf16.msra.mxu1 %v1147_v58 }
 0x62c   : > { %2547 = vmatprep.subr.bf16.mxu1 %v3220_v59 }
 0x67b   : > { %v954_v32 = vpop.f32.mrb[0].mxu1 }
 0x67c   : > { %v2521_v33 = vpop.f32.mrb[1].mxu1  ;;  %v1099_v34 = vsel %vm1098_vm3, %v954_v32, -inf }
 0x67d   : > { %1100 = vmax.xlane.f32.xlu1 %v1099_v34  ;;  %v957_v35 = vpop.f32.mrb[2].mxu1  ;;  %v2790_v34 = vld [vmem:[#allocation10] sm:$0xff]  }
 0x67e   : > { %v2522_v36 = vpop.f32.mrb[3].mxu1  ;;  %2566 = vmatpush3.bf16.msra.mxu0 %v2790_v34  ;;  %v2791_v35 = vld [vmem:[#allocation10 + $0x8] sm:$0xff]   ;;  %v2834_v34 = vld [vmem:[#allocation12 + $0xc0] ss:$16 sps:$4 sm:$0xff]  }
 0x67f   : > { %2567 = vmatprep.subr.bf16.mxu0 %v3220_v59  ;;  %v2792_v36 = vld [vmem:[#allocation10 + $0x10] sm:$0xff]  }
 0x682   : > { %2568 = vmatpush3.bf16.msra.mxu0 %v2791_v35  ;;  %v2837_v35 = vld [vmem:[#allocation12 + $0xc8] ss:$16 sps:$4 sm:$0xff]  }
 0x683   : > { %2569 = vmatprep.subr.bf16.mxu0 %v3220_v59 }
 0x686   : > { %2570 = vmatpush3.bf16.msra.mxu0 %v2792_v36  ;;  %v2842_v36 = vld [vmem:[#allocation12 + $0xe4] ss:$16 sps:$4 sm:$0xff]  }
 0x687   : > { %2571 = vmatprep.subr.bf16.mxu0 %v3220_v59 }
 0x6ed   : > { %v1000_v37 = vpop.f32.mrb[4].mxu1 }
 0x6ee   : > { %v2527_v38 = vpop.f32.mrb[5].mxu1  ;;  %v1102_v39 = vsel %vm1098_vm3, %v1000_v37, -inf }
 0x6ef   : > { %1103 = vmax.xlane.f32.xlu0 %v1102_v39  ;;  %v1003_v40 = vpop.f32.mrb[6].mxu1  ;;  %v2794_v38 = vld [vmem:[#allocation10 + $0x20] sm:$0xff]   ;;  %v2795_v39 = vld [vmem:[#allocation10 + $0x28] sm:$0xff]  }
 0x6f0   : > { %v2528_v41 = vpop.f32.mrb[7].mxu1  ;;  %v2796_v40 = vld [vmem:[#allocation10 + $0x30] sm:$0xff]  }
 0x6f5   : > { %v1046_v42 = vpop.f32.mrb[8].mxu1 }
 0x6f6   : > { %v2533_v43 = vpop.f32.mrb[9].mxu1  ;;  %v1105_v44 = vsel %vm1098_vm3, %v1046_v42, -inf }
 0x6f7   : > { %1106 = vmax.xlane.f32.xlu1 %v1105_v44  ;;  %v1049_v45 = vpop.f32.mrb[10].mxu1 }
 0x6f8   : > { %v2534_v46 = vpop.f32.mrb[11].mxu1  ;;  %v2797_v45 = vld [vmem:[#allocation10 + $0x38] sm:$0xff]  }
 0x6fd   : > { %v1092_v47 = vpop.f32.mrb[12].mxu1 }
 0x6fe   : > { %v2539_v48 = vpop.f32.mrb[13].mxu1  ;;  %v1108_v49 = vsel %vm1098_vm3, %v1092_v47, -inf }
 0x6ff   : > { %1109 = vmax.xlane.f32.xlu1 %v1108_v49  ;;  %v1095_v50 = vpop.f32.mrb[14].mxu1 }
 0x700   : > { %v2540_v51 = vpop.f32.mrb[15].mxu1 }
 0x70a   : > { %v1101_v52 = vpop.xlane.xlu1 %1100 }
 0x70b   : > { %v1111_v53 = vsub.f32 %v954_v32, %v1101_v52 }
 0x70d   : > { %v1115_v54 = vmul.f32 1.442695, %v1111_v53 }
 0x70f   : > { %2880 = vpow2.f32 %v1115_v54 }
 0x719   : > { %v2881_v55 = vpop.eup %2880 }
 0x71a   : > { %v1123_v57 = vsel %vm1098_vm3, %v2881_v55, 0.0 }
 0x71b   : > { %1124 = vadd.xlane.f32.xlu1 %v1123_v57 }
 0x77c   : > { %v1104_v60 = vpop.xlane.xlu0 %1103 }
 0x77d   : > { %v1112_v61 = vsub.f32 %v1000_v37, %v1104_v60  ;;  %v2793_v37 = vld [vmem:[#allocation10 + $0x18] sm:$0xff]  }
 0x77e   : > { %2572 = vmatpush3.bf16.msra.mxu0 %v2793_v37  ;;  %v2845_v37 = vld [vmem:[#allocation12 + $0xec] ss:$16 sps:$4 sm:$0xff]  }
 0x77f   : > { %v1117_v62 = vmul.f32 1.442695, %v1112_v61  ;;  %2573 = vmatprep.subr.bf16.mxu0 %v3220_v59 }
 0x781   : > { %2882 = vpow2.f32 %v1117_v62  ;;  %v2337_v62 = vld [vmem:[%s3896_s21] ss:$0 sm:$0xff]  ;;  %s2414_s21 = sshll.u32 %s3900_s20, 1 }
 0x782   : > { %2574 = vmatpush3.bf16.msra.mxu0 %v2794_v38  ;;  %v2840_v38 = vld [vmem:[#allocation12 + $0xe0] ss:$16 sps:$4 sm:$0xff]   ;;  %s2142_s9 = sadd.s32 %s3893_s3, %s2414_s21  ;;  %s2131_s3 = scalar_lea.sflag [#allocation6], %s543_s4 }
 0x783   : > { %2575 = vmatprep.subr.bf16.mxu0 %v3220_v59  ;;  %s2415_s23 = sshll.u32 %s2142_s9, 7 }
 0x784   : > { %v1107_v63 = vpop.xlane.xlu1 %1106 }
 0x785   : > { %v1113_v0 = vsub.f32 %v1046_v42, %v1107_v63 }
 0x786   : > { %2576 = vmatpush3.bf16.msra.mxu0 %v2795_v39  ;;  %v2843_v39 = vld [vmem:[#allocation12 + $0xe8] ss:$16 sps:$4 sm:$0xff]  }
 0x787   : > { %v1119_v1 = vmul.f32 1.442695, %v1113_v0  ;;  %2577 = vmatprep.subr.bf16.mxu0 %v3220_v59 }
 0x789   : > { %2884 = vpow2.f32 %v1119_v1 }
 0x78a   : > { %2578 = vmatpush3.bf16.msra.mxu0 %v2796_v40  ;;  %v3225_v40 = vmov 0  }
 0x78b   : > { %v2883_v2 = vpop.eup %2882  ;;  %2579 = vmatprep.subr.bf16.mxu0 %v3220_v59 }
 0x78c   : > { %v1110_v3 = vpop.xlane.xlu1 %1109  ;;  %v1126_v4 = vsel %vm1098_vm3, %v2883_v2, 0.0 }
 0x78d   : > { %v1114_v5 = vsub.f32 %v1092_v47, %v1110_v3  ;;  %1127 = vadd.xlane.f32.xlu1 %v1126_v4 }
 0x78e   : > { %2580 = vmatpush3.bf16.msra.mxu0 %v2797_v45 }
 0x78f   : > { %v1121_v6 = vmul.f32 1.442695, %v1114_v5  ;;  %v2798_v5 = vld [vmem:[#allocation12] ss:$16 sps:$4 sm:$0xff]  }
 0x791   : > { %2886 = vpow2.f32 %v1121_v6  ;;  %v2800_v6 = vld [vmem:[#allocation12 + $0x4] ss:$16 sps:$4 sm:$0xff]  }
 0x793   : > { %v2885_v7 = vpop.eup %2884 }
 0x794   : > { %v1129_v8 = vsel %vm1098_vm3, %v2885_v7, 0.0 }
 0x795   : > { %1130 = vadd.xlane.f32.xlu1 %v1129_v8  ;;  %v2803_v8 = vld [vmem:[#allocation12 + $0xc] ss:$16 sps:$4 sm:$0xff]  }
 0x796   : > { %1736 = vmatprep.subr.bf16.mxu0 %v2803_v8  ;;  %v2865_v8 = vld [vmem:[#allocation13 + $0xa0] sm:$0xff]  }
 0x79b   : > { %v2887_v9 = vpop.eup %2886 }
 0x79c   : > { %v1132_v10 = vsel %vm1098_vm3, %v2887_v9, 0.0 }
 0x79d   : > { %1133 = vadd.xlane.f32.xlu0 %v1132_v10  ;;  %v2809_v10 = vld [vmem:[#allocation12 + $0x2c] ss:$16 sps:$4 sm:$0xff]  }
 0x7a8   : > { %v1125_v11 = vpop.xlane.xlu1 %1124 }
 0x7a9   : > { %2888 = vrcp.f32 %v1125_v11  ;;  %v2804_v11 = vld [vmem:[#allocation12 + $0x20] ss:$16 sps:$4 sm:$0xff]  }
 0x7b3   : > { %v2889_v12 = vpop.eup %2888 }
 0x7b4   : > { %v1139_v13 = vmul.f32 %v2889_v12, %v2881_v55  ;;  %v2807_v12 = vld [vmem:[#allocation12 + $0x28] ss:$16 sps:$4 sm:$0xff]  }
 0x7b6   : > { %v1143_v14 = vpack.c.bf16 %v1139_v13, %v1139_v13  ;;  %v2812_v13 = vld [vmem:[#allocation12 + $0x44] ss:$16 sps:$4 sm:$0xff]  }
 0x7b8   : > { %2544 = vmatmul.mubr.msk.bf16.vlgmr.msra.gmra.mrb[16].mxu1 %vm1098_vm3, %v1143_v14  ;;  %v2810_v14 = vld [vmem:[#allocation12 + $0x40] ss:$16 sps:$4 sm:$0xff]  }
 0x7b9   : > { %2548 = vmatpush3.bf16.msra.mxu1 %v1148_v15  ;;  %2549 = vmatprep.mubr.msk.bf16.mxu1 %vm3221_vm1, %v3220_v59  ;;  %v2813_v15 = vld [vmem:[#allocation12 + $0x48] ss:$16 sps:$4 sm:$0xff]  }
 0x7ba   : > { %2553 = vmatprep.subr.bf16.mxu1 %v3220_v59 }
 0x81a   : > { %v1128_v16 = vpop.xlane.xlu1 %1127 }
 0x81b   : > { %2890 = vrcp.f32 %v1128_v16 }
 0x822   : > { %v1131_v17 = vpop.xlane.xlu1 %1130 }
 0x823   : > { %2892 = vrcp.f32 %v1131_v17 }
 0x825   : > { %v2891_v18 = vpop.eup %2890 }
 0x826   : > { %v1140_v19 = vmul.f32 %v2891_v18, %v2883_v2 }
 0x828   : > { %v1144_v20 = vpack.c.bf16 %v1140_v19, %v1140_v19 }
 0x82a   : > { %v1134_v22 = vpop.xlane.xlu0 %1133  ;;  %2550 = vmatmul.mubr.msk.bf16.vlgmr.msra.gmra.mrb[20].mxu1 %vm1098_vm3, %v1144_v20  ;;  %v2818_v20 = vld [vmem:[#allocation12 + $0x64] ss:$16 sps:$4 sm:$0xff]  }
 0x82b   : > { %2894 = vrcp.f32 %v1134_v22  ;;  %2554 = vmatpush3.bf16.msra.mxu1 %v1149_v21  ;;  %2555 = vmatprep.mubr.msk.bf16.mxu1 %vm3221_vm1, %v3220_v59  ;;  %v2821_v21 = vld [vmem:[#allocation12 + $0x6c] ss:$16 sps:$4 sm:$0xff]   ;;  %v2816_v22 = vld [vmem:[#allocation12 + $0x60] ss:$16 sps:$4 sm:$0xff]  }
 0x82c   : > { %2559 = vmatprep.subr.bf16.mxu1 %v3220_v59 }
 0x82d   : > { %v2893_v23 = vpop.eup %2892 }
 0x82e   : > { %v1141_v24 = vmul.f32 %v2893_v23, %v2885_v7  ;;  %v2801_v7 = vld [vmem:[#allocation12 + $0x8] ss:$16 sps:$4 sm:$0xff]  }
 0x82f   : > { %v2819_v23 = vld [vmem:[#allocation12 + $0x68] ss:$16 sps:$4 sm:$0xff]  }
 0x830   : > { %v1145_v25 = vpack.c.bf16 %v1141_v24, %v1141_v24  ;;  %v2824_v24 = vld [vmem:[#allocation12 + $0x84] ss:$16 sps:$4 sm:$0xff]  }
 0x832   : > { %2556 = vmatmul.mubr.msk.bf16.vlgmr.msra.gmra.mrb[24].mxu1 %vm1098_vm3, %v1145_v25  ;;  %v2827_v25 = vld [vmem:[#allocation12 + $0x8c] ss:$16 sps:$4 sm:$0xff]  }
 0x833   : > { %2560 = vmatpush3.bf16.msra.mxu1 %v1150_v26  ;;  %2561 = vmatprep.mubr.msk.bf16.mxu1 %vm3221_vm1, %v3220_v59  ;;  %v2822_v26 = vld [vmem:[#allocation12 + $0x80] ss:$16 sps:$4 sm:$0xff]  }
 0x834   : > { %1695 = vmatprep.subr.bf16.mxu1 %v2800_v6  ;;  %v2863_v6 = vld [vmem:[#allocation13 + $0xe0] sm:$0xff]  }
 0x835   : > { %v2895_v27 = vpop.eup %2894 }
 0x836   : > { %v1142_v28 = vmul.f32 %v2895_v27, %v2887_v9  ;;  %v2806_v9 = vld [vmem:[#allocation12 + $0x24] ss:$16 sps:$4 sm:$0xff]   ;;  %v2825_v27 = vld [vmem:[#allocation12 + $0x88] ss:$16 sps:$4 sm:$0xff]  }
 0x838   : > { %v1146_v29 = vpack.c.bf16 %v1142_v28, %v1142_v28  ;;  %v2830_v28 = vld [vmem:[#allocation12 + $0xa4] ss:$16 sps:$4 sm:$0xff]  }
 0x83a   : > { %2562 = vmatmul.mubr.msk.bf16.vlgmr.msra.gmra.mrb[28].mxu1 %vm1098_vm3, %v1146_v29  ;;  %v2833_v29 = vld [vmem:[#allocation12 + $0xac] ss:$16 sps:$4 sm:$0xff]  }
 0x83b   : > { %1696 = vmatpush1.bf16.msra.mxu1 %v2798_v5  ;;  %1727 = vmatprep.mubr.bf16.mxu1 %v3225_v40  ;;  %v2862_v5 = vld [vmem:[#allocation13 + $0x60] sm:$0xff]  }
 0x83c   : > { %1697 = vmatprep.subr.bf16.mxu1 %v2806_v9  ;;  %v2866_v9 = vld [vmem:[#allocation13 + $0x68] sm:$0xff]  }
 0x83f   : > { %1698 = vmatpush1.bf16.msra.mxu1 %v2804_v11  ;;  %v2868_v11 = vld [vmem:[#allocation13 + $0x28] sm:$0xff]  }
 0x840   : > { %1699 = vmatprep.subr.bf16.mxu1 %v2812_v13  ;;  %v2870_v13 = vld [vmem:[#allocation13 + $0x70] sm:$0xff]  }
 0x843   : > { %1700 = vmatpush1.bf16.msra.mxu1 %v2810_v14  ;;  %v2872_v14 = vld [vmem:[#allocation13 + $0x30] sm:$0xff]  }
 0x844   : > { %1701 = vmatprep.subr.bf16.mxu1 %v2818_v20  ;;  %v1515_v20 = vlaneseq }
 0x847   : > { %1702 = vmatpush1.bf16.msra.mxu1 %v2816_v22 }
 0x848   : > { %1703 = vmatprep.subr.bf16.mxu1 %v2824_v24  ;;  %v1513_v24 = vld [vmem:[%s3899_s1] sm:$0xf]  ;;  %s3902_s1 = sld [smem:[#allocation37_spill]] }
 0x84b   : > { %1704 = vmatpush1.bf16.msra.mxu1 %v2822_v26 }
 0x84c   : > { %1705 = vmatprep.subr.bf16.mxu1 %v2830_v28 }
 0x84e   : > { %s3755_s20 = scalar_lea.hbm %s3902_s1, %s2415_s23 }
 0x88b   : > { %v1188_v30 = vpop.f32.mrb[16].mxu1 }
 0x88c   : > { %v2545_v31 = vpop.f32.mrb[17].mxu1 }
 0x88d   : > { %v1191_v32 = vpop.f32.mrb[18].mxu1  ;;  %v2831_v31 = vld [vmem:[#allocation12 + $0xa8] ss:$16 sps:$4 sm:$0xff]  }
 0x88e   : > { %v2546_v33 = vpop.f32.mrb[19].mxu1  ;;  %v2836_v32 = vld [vmem:[#allocation12 + $0xc4] ss:$16 sps:$4 sm:$0xff]  }
 0x88f   : > { %v2839_v33 = vld [vmem:[#allocation12 + $0xcc] ss:$16 sps:$4 sm:$0xff]  }
 0x8fd   : > { %v1231_v41 = vpop.f32.mrb[20].mxu1 }
 0x8fe   : > { %1324 = vrot.lane.b32.xlu1 %v1231_v41, %s3222_s15  ;;  %v2551_v42 = vpop.f32.mrb[21].mxu1  ;;  %v2846_v41 = vld [vmem:[#allocation13 + $0x40] sm:$0xff]   ;;  %s3898_s15 = sld [smem:[#allocation33_spill]] }
 0x8ff   : > { %v1234_v43 = vpop.f32.mrb[22].mxu1  ;;  %v2847_v42 = vld [vmem:[#allocation13 + $0xc0] sm:$0xff]  }
 0x900   : > { %v2552_v44 = vpop.f32.mrb[23].mxu1 }
 0x905   : > { %v1274_v46 = vpop.f32.mrb[24].mxu1 }
 0x906   : > { %1328 = vrot.lane.b32.xlu0 %v1274_v46, %s3224_s28  ;;  %v2557_v47 = vpop.f32.mrb[25].mxu1 }
 0x907   : > { %v1277_v48 = vpop.f32.mrb[26].mxu1  ;;  %v2346_v47 = vld [vmem:[%s3897_s5] ss:$0 sm:$0xff]  ;;  %s3901_s5 = sld [smem:[#allocation36_spill]] }
 0x908   : > { %v2558_v49 = vpop.f32.mrb[27].mxu1 }
 0x909   : > { %v2347_v49 = vld [vmem:[%s3898_s15] ss:$0 sm:$0xff]  ;;  %s2146_s15 = sshll.u32 %s545_s12, 4  ;;  %s3757_s15 = int_to_ptr.vmem [resolvable:$true] %s2146_s15 }
 0x90a   : > { %s3068_s21 = scalar_lea.vmem %s3757_s15, 128  ;;  %p3075_p8 = scmp.lt.s32.totalorder %s3757_s15, %s3073_s7 }
 0x90b   : > { %p3069_p2 = scmp.ne.s32.totalorder %s3757_s15, %s3068_s21 }
 0x90d   : > { %v1317_v50 = vpop.f32.mrb[28].mxu1  ;;  %p3070_p9 = pnand %p3069_p2, %p3903_p6 }
 0x90e   : > { %1332 = vrot.lane.b32.xlu1 %v1317_v50, %s3223_s24  ;;  %v2563_v51 = vpop.f32.mrb[29].mxu1 }
 0x90f   : > { %v1320_v52 = vpop.f32.mrb[30].mxu1  ;;  %p3071_p11 = pneg %p3070_p9 }
 0x910   : > { %v2564_v53 = vpop.f32.mrb[31].mxu1  ;;  %v2848_v52 = vld [vmem:[#allocation13] sm:$0xff]  }
 0x911   : > { %v2849_v53 = vld [vmem:[#allocation13 + $0x80] sm:$0xff]  }
 0x970   : > { %v1325_v54 = vpop.permute.xlu1 %1324 }
 0x971   : > { %v1335_v59 = vsel %vm913_vm2, %v1188_v30, %v1325_v54  ;;  %v2828_v30 = vld [vmem:[#allocation12 + $0xa0] ss:$16 sps:$4 sm:$0xff]  }
 0x972   : > { %1706 = vmatpush1.bf16.msra.mxu1 %v2828_v30 }
 0x973   : > { %1707 = vmatprep.subr.bf16.mxu1 %v2836_v32 }
 0x976   : > { %1708 = vmatpush1.bf16.msra.mxu1 %v2834_v34 }
 0x977   : > { %1709 = vmatprep.subr.bf16.mxu1 %v2842_v36 }
 0x978   : > { %v1329_v55 = vpop.permute.xlu0 %1328 }
 0x979   : > { %v1337_v57 = vsel %vm1336_vm4, %v1335_v59, %v1329_v55  ;;  %v2850_v55 = vld [vmem:[#allocation13 + $0x48] sm:$0xff]  }
 0x97a   : > { %1710 = vmatpush1.bf16.msra.mxu1 %v2840_v38  ;;  %v2851_v59 = vld [vmem:[#allocation13 + $0xc8] sm:$0xff]  }
 0x97b   : > { %2453 = vmatprep.subr.bf16.mxu1 %v2846_v41 }
 0x980   : > { %v1333_v58 = vpop.permute.xlu1 %1332 }
 0x981   : > { %v1339_v60 = vsel %vm1338_vm5, %v1337_v57, %v1333_v58  ;;  %v2852_v57 = vld [vmem:[#allocation13 + $0x8] sm:$0xff]  }
 0x982   : > { %v1340_v61 = vpack.c.bf16 %v1339_v60, %v1339_v60  ;;  %v2853_v58 = vld [vmem:[#allocation13 + $0x88] sm:$0xff]   ;;  %v2854_v60 = vld [vmem:[#allocation13 + $0x50] sm:$0xff]  }
 0x984   : > { %2582 = vmatmul.mubr.bf16.vlgmr.msra.gmra.mrb[4].mxu0 %v1340_v61  ;;  %v2855_v61 = vld [vmem:[#allocation13 + $0xd0] sm:$0xff]  }
 0x985   : > { %1737 = vmatpush1.bf16.msra.mxu0 %v2801_v7  ;;  %1768 = vmatprep.mubr.bf16.mxu0 %v3225_v40  ;;  %v2864_v7 = vld [vmem:[#allocation13 + $0x20] sm:$0xff]  }
 0x986   : > { %1738 = vmatprep.subr.bf16.mxu0 %v2809_v10  ;;  %v2867_v10 = vld [vmem:[#allocation13 + $0xe8] sm:$0xff]  }
 0x989   : > { %1739 = vmatpush1.bf16.msra.mxu0 %v2807_v12  ;;  %v2869_v12 = vld [vmem:[#allocation13 + $0xa8] sm:$0xff]  }
 0xa57   : > { %v1446_v63 = vpop.f32.mrb[4].mxu0 }
 0xa58   : > { %v1447_v0 = vadd.f32 %v2337_v62, %v1446_v63  ;;  %v2583_v1 = vpop.f32.mrb[5].mxu0  ;;  %v2856_v62 = vld [vmem:[#allocation13 + $0x10] sm:$0xff]  }
 0xa59   : > { %v1449_v2 = vpop.f32.mrb[6].mxu0  ;;  %v2857_v63 = vld [vmem:[#allocation13 + $0x90] sm:$0xff]   ;;  %v2859_v1 = vld [vmem:[#allocation13 + $0xd8] sm:$0xff]  }
 0xa5a   : > { %v3731_v3 = vadd.f32 %v1447_v0, %v3646_v56  ;;  %v2584_v4 = vpop.f32.mrb[7].mxu0  ;;  %v2815_v56 = vld [vmem:[#allocation12 + $0x4c] ss:$16 sps:$4 sm:$0xff]  }
 0xa5b   : > { %1740 = vmatprep.subr.bf16.mxu0 %v2815_v56  ;;  %v2858_v0 = vld [vmem:[#allocation13 + $0x58] sm:$0xff]   ;;  %v2871_v56 = vld [vmem:[#allocation13 + $0xf0] sm:$0xff]  }
 0xa5c   : > { %1455 = vadd.xlane.f32.xlu1 %v3731_v3  ;;  %1741 = vmatpush1.bf16.msra.mxu0 %v2813_v15  ;;  %v2860_v2 = vld [vmem:[#allocation13 + $0x18] sm:$0xff]   ;;  %v2873_v15 = vld [vmem:[#allocation13 + $0xb0] sm:$0xff]  }
 0xa5d   : > { %1742 = vmatprep.subr.bf16.mxu0 %v2821_v21  ;;  %v2861_v4 = vld [vmem:[#allocation13 + $0x98] sm:$0xff]   ;;  %v1516_v21 = vshrl.u32 %v1515_v20, 7 }
 0xa5f   : > { %v1517_v22 = vsub.s32 0, %v1516_v21  ;;  %v1529_v26 = vsub.s32 3, %v1516_v21 }
 0xa60   : > { %1743 = vmatpush1.bf16.msra.mxu0 %v2819_v23  ;;  %v1525_v23 = vsub.s32 2, %v1516_v21 }
 0xa61   : > { %1744 = vmatprep.subr.bf16.mxu0 %v2827_v25  ;;  %v1521_v25 = vsub.s32 1, %v1516_v21  ;;  %v1530_v30 = vrot.slane %v1513_v24, %v1529_v26 }
 0xa62   : > { %v1526_v28 = vrot.slane %v1513_v24, %v1525_v23 }
 0xa64   : > { %1745 = vmatpush1.bf16.msra.mxu0 %v2825_v27  ;;  %v1518_v27 = vrot.slane %v1513_v24, %v1517_v22 }
 0xa65   : > { %1746 = vmatprep.subr.bf16.mxu0 %v2833_v29  ;;  %v1522_v29 = vrot.slane %v1513_v24, %v1521_v25 }
 0xa68   : > { %1747 = vmatpush1.bf16.msra.mxu0 %v2831_v31 }
 0xa69   : > { %1748 = vmatprep.subr.bf16.mxu0 %v2839_v33 }
 0xa6c   : > { %1749 = vmatpush1.bf16.msra.mxu0 %v2837_v35 }
 0xa6d   : > { %1750 = vmatprep.subr.bf16.mxu0 %v2845_v37 }
 0xa70   : > { %1751 = vmatpush1.bf16.msra.mxu0 %v2843_v39 }
 0xa71   : > { %2475 = vmatprep.subr.bf16.mxu0 %v2847_v42 }
 0xae9   : > { %v1456_v16 = vpop.xlane.xlu1 %1455 }
 0xaea   : > { %v1457_v17 = vmul.f32 0.0078125, %v1456_v16  ;;  %v2874_v16 = vld [vmem:[#allocation13 + $0x78] sm:$0xff]  }
 0xaec   : > { %v1458_v18 = vsub.f32 %v3731_v3, %v1457_v17  ;;  %v2875_v17 = vld [vmem:[#allocation13 + $0xf8] sm:$0xff]  }
 0xaee   : > { %v1459_v19 = vmul.f32 %v1458_v18, %v1458_v18 }
 0xaf0   : > { %1460 = vadd.xlane.f32.xlu0 %v1459_v19  ;;  %v2877_v19 = vld [vmem:[#allocation13 + $0xb8] sm:$0xff]  }
 0xb7d   : > { %v1461_v43 = vpop.xlane.xlu0 %1460 }
 0xb7e   : > { %v1462_v44 = vmul.f32 0.0078125, %v1461_v43 }
 0xb80   : > { %v1463_v45 = vadd.f32 1e-05, %v1462_v44 }
 0xb82   : > { %2896 = vrsqrt.f32 %v1463_v45 }
 0xb8c   : > { %v2897_v46 = vpop.eup %2896 }
 0xb8d   : > { %v1465_v48 = vmul.f32 %v2897_v46, %v1458_v18  ;;  %v2876_v18 = vld [vmem:[#allocation13 + $0x38] sm:$0xff]  }
 0xb8f   : > { %v1472_v50 = vmul.f32 %v2346_v47, %v1465_v48 }
 0xb91   : > { %v1479_v51 = vadd.f32 %v2347_v49, %v1472_v50 }
 0xb93   : > { %v1480_v54 = vpack.c.bf16 %v1479_v51, %v1479_v51 }
 0xb95   : > { %1728 = vmatmul.mubr.bf16.vlgmr.msra.gmra.mrb[32].mxu1 %v1480_v54  ;;  %1769 = vmatmul.mubr.bf16.vlgmr.msra.gmra.mrb[8].mxu0 %v1480_v54 }
 0xb96   : > { %2454 = vmatpush3.bf16.msra.mxu1 %v2848_v52  ;;  %2476 = vmatpush3.bf16.msra.mxu0 %v2849_v53  ;;  %v2380_v53 = vld [vmem:[%s3901_s5] ss:$0 sm:$0xff]  ;;  %s3074_s5 = scalar_lea.vmem %s3073_s7, 256 }
 0xb97   : > { %2455 = vmatprep.subr.bf16.mxu1 %v2850_v55  ;;  %2477 = vmatprep.subr.bf16.mxu0 %v2851_v59  ;;  %p3076_p1 = scmp.lt.s32.totalorder %s3074_s5, %s3068_s21 }
 0xb99   : > { %p3077_p13 = por %p3076_p1, %p3075_p8 }
 0xb9a   : > { %2456 = vmatpush3.bf16.msra.mxu1 %v2852_v57  ;;  %2478 = vmatpush3.bf16.msra.mxu0 %v2853_v58 }
 0xb9b   : > { %2457 = vmatprep.subr.bf16.mxu1 %v2854_v60  ;;  %2479 = vmatprep.subr.bf16.mxu0 %v2855_v61  ;;  %p3078_p7 = pnand %p3077_p13, %p3071_p11 }
 0xb9e   : > { %2458 = vmatpush3.bf16.msra.mxu1 %v2856_v62  ;;  %2480 = vmatpush3.bf16.msra.mxu0 %v2857_v63 }
 0xb9f   : > { %2459 = vmatprep.subr.bf16.mxu1 %v2858_v0  ;;  %2481 = vmatprep.subr.bf16.mxu0 %v2859_v1 }
 0xba2   : > { %2460 = vmatpush3.bf16.msra.mxu1 %v2860_v2  ;;  %2482 = vmatpush3.bf16.msra.mxu0 %v2861_v4 }
 0xba3   : > { %2461 = vmatprep.subr.bf16.mxu1 %v2862_v5  ;;  %2483 = vmatprep.subr.bf16.mxu0 %v2863_v6 }
 0xba6   : > { %2462 = vmatpush3.bf16.msra.mxu1 %v2864_v7  ;;  %2484 = vmatpush3.bf16.msra.mxu0 %v2865_v8 }
 0xba7   : > { %2463 = vmatprep.subr.bf16.mxu1 %v2866_v9  ;;  %2485 = vmatprep.subr.bf16.mxu0 %v2867_v10 }
 0xbaa   : > { %2464 = vmatpush3.bf16.msra.mxu1 %v2868_v11  ;;  %2486 = vmatpush3.bf16.msra.mxu0 %v2869_v12 }
 0xbab   : > { %2465 = vmatprep.subr.bf16.mxu1 %v2870_v13  ;;  %2487 = vmatprep.subr.bf16.mxu0 %v2871_v56 }
 0xbae   : > { %2466 = vmatpush3.bf16.msra.mxu1 %v2872_v14  ;;  %2488 = vmatpush3.bf16.msra.mxu0 %v2873_v15 }
 0xbaf   : > { %2467 = vmatprep.subr.bf16.mxu1 %v2874_v16  ;;  %2489 = vmatprep.subr.bf16.mxu0 %v2875_v17 }
 0xbb2   : > { %2468 = vmatpush3.bf16.msra.mxu1 %v2876_v18  ;;  %2490 = vmatpush3.bf16.msra.mxu0 %v2877_v19 }
 0xc68   : > { %v1729_v31 = vpop.f32.mrb[32].mxu1  ;;  %v1770_v32 = vpop.f32.mrb[8].mxu0 }
 0xc69   : > { %v1730_v33 = vadd.f32 %v1729_v31, %v1518_v27  ;;  %v1771_v34 = vadd.f32 %v1770_v32, %v1526_v28  ;;  %v1731_v35 = vpop.f32.mrb[33].mxu1  ;;  %v1772_v36 = vpop.f32.mrb[9].mxu0 }
 0xc6a   : > { %v1732_v37 = vadd.f32 %v1731_v35, %v1522_v29  ;;  %v1773_v38 = vadd.f32 %v1772_v36, %v1530_v30  ;;  %v1733_v39 = vpop.f32.mrb[34].mxu1  ;;  %v1774_v40 = vpop.f32.mrb[10].mxu0 }
 0xc6b   : > { %v1777_v41 = vmax.f32 %v1730_v33, 0.0  ;;  %v1779_v42 = vmax.f32 %v1771_v34, 0.0  ;;  %v1734_v43 = vpop.f32.mrb[35].mxu1  ;;  %v1775_v44 = vpop.f32.mrb[11].mxu0 }
 0xc6c   : > { %v1778_v45 = vmax.f32 %v1732_v37, 0.0  ;;  %v1780_v46 = vmax.f32 %v1773_v38, 0.0 }
 0xc6d   : > { %v1781_v49 = vpack.c.bf16 %v1777_v41, %v1777_v41  ;;  %v1783_v50 = vpack.c.bf16 %v1779_v42, %v1779_v42 }
 0xc6e   : > { %v1782_v47 = vpack.c.bf16 %v1778_v45, %v1778_v45  ;;  %v1784_v48 = vpack.c.bf16 %v1780_v46, %v1780_v46 }
 0xc70   : > { %2080 = vmatprep.mubr.bf16.mxu1 %v1782_v47  ;;  %2120 = vmatprep.mubr.bf16.mxu0 %v1784_v48 }
 0xc71   : > { %2081 = vmatmul.mubr.bf16.vlgmr.msra.gmra.mrb[36].mxu1 %v1781_v49  ;;  %2121 = vmatmul.mubr.bf16.vlgmr.msra.gmra.mrb[12].mxu0 %v1783_v50 }
 0xd44   : > { %v2469_v51 = vpop.f32.mrb[36].mxu1  ;;  %v2491_v52 = vpop.f32.mrb[12].mxu0 }
 0xd45   : > { %v2470_v54 = vpop.f32.mrb[37].mxu1  ;;  %v2492_v55 = vpop.f32.mrb[13].mxu0 }
 0xd46   : > { %v2471_v59 = vadd.f32 %v2470_v54, %v2469_v51  ;;  %v2493_v57 = vadd.f32 %v2492_v55, %v2491_v52  ;;  %v2472_v58 = vpop.f32.mrb[38].mxu1  ;;  %v2494_v60 = vpop.f32.mrb[14].mxu0 }
 0xd47   : > { %v2473_v61 = vpop.f32.mrb[39].mxu1  ;;  %v2495_v62 = vpop.f32.mrb[15].mxu0 }
 0xd48   : > { %v2083_v63 = vadd.f32 %v2471_v59, %v2380_v53 }
 0xd4a   : > { %v2123_v0 = vadd.f32 %v2493_v57, %v2083_v63 }
 0xd4c   : > { %v2128_v1 = vadd.f32 %v2123_v0, %v3731_v3 }
 0xd4e   : > { %2129 = vst [vmem:[%s545_s12] sm:$0xff] %v2128_v1 }
 0xd4f   : > { %3081 = shalt.err (!%p3078_p7)
}
 0xd50   : > { %s3082_s4 = scalar_lea.hbm %s3755_s20, 128  ;;  %s3086_s9 = scalar_lea.hbm %s3902_s1, 512 }
 0xd51   : > { %p3083_p0 = scmp.ne.s32.totalorder %s3755_s20, %s3082_s4  ;;  %p3087_p3 = scmp.lt.u32.totalorder %s3755_s20, %s3902_s1 }
 0xd52   : > { %p3088_p12 = scmp.lt.u32.totalorder %s3086_s9, %s3082_s4  ;;  %p3090_p2 = scmp.lt.u32.totalorder %s3082_s4, %s3755_s20 }
 0xd53   : > { %p3084_p4 = pnand %p3083_p0, %p3903_p6 }
 0xd54   : > { %p3089_p5 = por %p3088_p12, %p3087_p3 }
 0xd55   : > { %p3085_p10 = pneg %p3084_p4 }
 0xd56   : > { %p3091_p9 = por %p3090_p2, %p3089_p5 }
 0xd58   : > { %p3092_p11 = pnand %p3091_p9, %p3085_p10 }
 0xd5a   : > { %3095 = shalt.err (!%p3092_p11)
}
 0xd5b   : > { %2607 = dma.vmem_to_hbm [thread:$0]  (%p3903_p6), %s3757_s15, 128, %s3755_s20, %s2131_s3  }
 0xd5c PF: > { %p2644_p8 = scmp.ge.s32.totalorder %s3202_s18, 2  ;;  %s2158_s28 = sand.u32 1, %s3162_s25  }
 0xd5d   : > { %p3904_p1 = scmp.ne.s32.totalorder %s3882_s0, 0  ;;  %s2159_s21 = scalar_lea.sflag [#allocation6], %s2158_s28 }
 0xd5f   : > { %p2630_p13 = pnand %p2644_p8, %p3904_p1 }
 0xd61   : > { %3157 = dma.done.wait (!%p2630_p13), %s2159_s21, 128  }
 0xd62   : > { %3159 = vsyncadd (!%p2630_p13), %s2159_s21, 4294967168  ;;  %s32_s18 = sadd.s32 1, %s3202_s18   ;;  %s3905_s25 = smov %s3166_s26 }
 0xd63   : > { %p29_p7 = scmp.ge.s32.totalorder %s32_s18, 6   ;;  %s3906_s26 = smov %s3170_s27 }
 0xd64   : > { %s3907_s27 = smov %s3547_s14  ;;  %s3908_s28 = smov %s3178_s29 }
 0xd65   : > { %s3909_s29 = smov %s3182_s30  ;;  %s3910_s30 = smov %s3544_s8 }
 0xd66   : > { %s3911_s14 = smov %s3194_s16  ;;  %s3912_s15 = smov %s3198_s17 }
 0xd67   : > { %s3913_s16 = smov %s3916_s13  ;;  %s3914_s17 = smov %s3920_s6 }
 0xd68   :  { %31 = sbr.rel (!%p29_p7) target bundleno = 26 (0x1a), region = 142 }
 0xd6f   :  { %2164 = vsyncpa [#allocation5], 1 }
 0xd70   :  { %2166 = vsyncpa [#allocation5 + $0x1], 1 }
 0xd71   :  { %2167 = vsyncpa [#allocation8], 1 }
 0xd72   :  { %2168 = vsyncpa [#allocation11], 1 }
 0xd73   :  { %2169 = vsyncpa [#allocation14], 1 }
 0xd74   :  { %2170 = vsyncpa [#allocation6], 1 }
 0xd75   :  { %2172 = vsyncpa [#allocation6 + $0x1], 1 }

// kernel: tpu_custom_call.1
= control target key start
LH: loop header
LB: loop body
LE: loop exit
PB: predicated region body
PF: predicated region fallthrough
CT: control target
= control target key end

     0   :  { %s3821_s0 = inlined_call_operand.hbm [shape: f32[2,16,128], index: 0, kind: input, shape index: {}]   ;;  %s3822_s1 = inlined_call_operand.vmem [shape: f32[1,128], index: 1, kind: input, shape index: {}]   ;;  %s3823_s2 = inlined_call_operand.vmem [shape: f32[1,128], index: 2, kind: input, shape index: {}]   ;;  %s3824_s3 = inlined_call_operand.hbm [shape: bf16[128,128], index: 3, kind: input, shape index: {}]   ;;  %s3825_s4 = inlined_call_operand.hbm [shape: bf16[128,256], index: 4, kind: input, shape index: {}]   ;;  %s3826_s5 = inlined_call_operand.hbm [shape: bf16[128,128], index: 5, kind: input, shape index: {}]   ;;  %s3827_s6 = inlined_call_operand.vmem [shape: f32[1,128], index: 6, kind: input, shape index: {}]   ;;  %s3828_s7 = inlined_call_operand.vmem [shape: f32[1,128], index: 7, kind: input, shape index: {}]   ;;  %s3829_s8 = inlined_call_operand.vmem [shape: f32[1,128], index: 8, kind: input, shape index: {}]   ;;  %s3830_s9 = inlined_call_operand.hbm [shape: bf16[128,512], index: 9, kind: input, shape index: {}]   ;;  %s3831_s10 = inlined_call_operand.vmem [shape: f32[1,512], index: 10, kind: input, shape index: {}]   ;;  %s3832_s11 = inlined_call_operand.hbm [shape: bf16[512,128], index: 11, kind: input, shape index: {}]   ;;  %s3833_s12 = inlined_call_operand.vmem [shape: f32[1,128], index: 12, kind: input, shape index: {}]   ;;  %s3834_s13 = inlined_call_operand.hbm [shape: f32[2,16,128], index: 13, kind: output, shape index: {}]  }
   0x1   :  { %3848 = sst [smem:[#allocation25_spill]] %s3821_s0 }
   0x2   :  { %3849 = sst [smem:[#allocation26_spill]] %s3822_s1 }
   0x3   :  { %3850 = sst [smem:[#allocation27_spill]] %s3823_s2 }
   0x4   :  { %3851 = sst [smem:[#allocation28_spill]] %s3824_s3 }
   0x5   :  { %3852 = sst [smem:[#allocation29_spill]] %s3825_s4 }
   0x6   :  { %3853 = sst [smem:[#allocation30_spill]] %s3826_s5 }
   0x7   :  { %3854 = sst [smem:[#allocation31_spill]] %s3827_s6 }
   0x8   :  { %3855 = sst [smem:[#allocation32_spill]] %s3828_s7 }
   0x9   :  { %3856 = sst [smem:[#allocation33_spill]] %s3829_s8 }
   0xa   :  { %3857 = sst [smem:[#allocation34_spill]] %s3830_s9 }
   0xb   :  { %3858 = sst [smem:[#allocation35_spill]] %s3831_s10 }
   0xc   :  { %3859 = sst [smem:[#allocation36_spill]] %s3833_s12 }
   0xd   :  { %3860 = sst [smem:[#allocation37_spill]] %s3834_s13 }
   0xe   :  { %18 = vsyncpa [#allocation5], 0 }
   0xf   :  { %20 = vsyncpa [#allocation5 + $0x1], 0 }
  0x10   :  { %21 = vsyncpa [#allocation8], 0 }
  0x11   :  { %22 = vsyncpa [#allocation11], 0 }
  0x12   :  { %23 = vsyncpa [#allocation14], 0 }
  0x13   :  { %24 = vsyncpa [#allocation6], 0 }
  0x14   :  { %26 = vsyncpa [#allocation6 + $0x1], 0  ;;  %s3297_s25 = smov 0   ;;  %s3299_s26 = smov 0  }
  0x15   :  { %s3301_s27 = smov 0   ;;  %s3303_s28 = smov 0  }
  0x16   :  { %s3305_s29 = smov 0   ;;  %s3307_s30 = smov 0  }
  0x17   :  { %s3309_s14 = smov 0   ;;  %s3311_s15 = smov 0  }
  0x18   :  { %s3313_s16 = smov 0   ;;  %s3315_s17 = smov 0  }
  0x19   :  { %s3317_s18 = smov 0  }
  0x1a LB: > { %3861 = sst [smem:[#allocation21_spill]] %s3186_s14  ;;  %s2279_s19 = sadd.s32 4294967295, %s3202_s18   ;;  %s3202_s18 = sphi %s3317_s18, %s32_s18   ;;  %s3198_s17 = sphi %s3315_s17, %s3914_s17   ;;  %s3194_s16 = sphi %s3313_s16, %s3913_s16   ;;  %s3190_s15 = sphi %s3311_s15, %s3912_s15   ;;  %s3186_s14 = sphi %s3309_s14, %s3911_s14   ;;  %s3182_s30 = sphi %s3307_s30, %s3910_s30   ;;  %s3178_s29 = sphi %s3305_s29, %s3909_s29   ;;  %s3174_s28 = sphi %s3303_s28, %s3908_s28   ;;  %s3170_s27 = sphi %s3301_s27, %s3907_s27   ;;  %s3166_s26 = sphi %s3299_s26, %s3906_s26   ;;  %s3162_s25 = sphi %s3297_s25, %s3905_s25  }
  0x1b   : > { %3862 = sst [smem:[#allocation22_spill]] %s3190_s15  ;;  %p2281_p0 = scmp.ge.s32.totalorder %s3202_s18, 1 }
  0x1c   : > { %p3354_p1 = scmp.eq.s32.totalorder %s2279_s19, 0  ;;  %p3358_p2 = scmp.eq.s32.totalorder %s2279_s19, 3 }
  0x1d   : > { %p355_p3 = scmp.lt.s32.totalorder %s3202_s18, 5  ;;  %s3204_s23 = smov [#allocation7]  }
  0x1e   : > { %s3863_s20 = scalar_select %p3354_p1, 1, 0 }
  0x1f   : > { %s3864_s21 = scalar_select %p3358_p2, 1, 0 }
  0x20   : > { %p3363_p4 = pnand %p2281_p0, %p355_p3  ;;  %s373_s24 = sshll.u32 %s3204_s23, 4  ;;  %s3367_s24 = int_to_ptr.vmem [resolvable:$true] %s373_s24 }
  0x21   : > { %3865 = sst [smem:[#allocation23_spill]] %s3864_s21  ;;  %s3205_s19 = smov [#allocation10]  }
  0x22   : > { %s3866_s22 = scalar_select %p3363_p4, 1, 0 }
  0x23   : > { %p2609_p5 = pneg %p3363_p4  ;;  %s399_s12 = sshll.u32 %s3205_s19, 4  ;;  %s3377_s12 = int_to_ptr.vmem [resolvable:$true] %s399_s12 }
  0x24   : > { %3867 = sst [smem:[#allocation24_spill]] %s3866_s22  ;;  %s3206_s15 = smov [#allocation9]  }
  0x25   : > { %p3373_p6 = pnand %p2609_p5, %p3354_p1  ;;  %s386_s10 = sshll.u32 %s3206_s15, 4  ;;  %s3379_s10 = int_to_ptr.vmem [resolvable:$true] %s386_s10 }
  0x26   : > { %s3869_s3 = sld [smem:[#allocation28_spill]] }
  0x27   : > { %p3389_p8 = pneg %p3373_p6 }
  0x2c   : > { %s2898_s7 = scalar_lea.hbm %s3869_s3, 1024 }
  0x2d   : > { %p2899_p7 = scmp.ne.s32.totalorder %s3869_s3, %s2898_s7  ;;  %p2905_p11 = scmp.lt.u32.totalorder %s2898_s7, %s3869_s3 }
  0x2f   : > { %p2901_p9 = pnand %p3389_p8, %p2899_p7 }
  0x31   : > { %p2902_p10 = pneg %p2901_p9 }
  0x33   : > { %p2907_p12 = pnand %p2905_p11, %p2902_p10 }
  0x35   : > { %2910 = shalt.err (!%p2907_p12)
}
  0x36   : > { %s2911_s2 = scalar_lea.vmem %s3367_s24, 1024  ;;  %p2919_p5 = scmp.lt.s32.totalorder %s3367_s24, %s3367_s24 }
  0x37   : > { %p2912_p13 = scmp.ne.s32.totalorder %s3367_s24, %s2911_s2  ;;  %p2920_p4 = scmp.lt.s32.totalorder %s2911_s2, %s2911_s2 }
  0x39   : > { %p2914_p0 = pnand %p2912_p13, %p3389_p8  ;;  %p2921_p7 = por %p2920_p4, %p2919_p5 }
  0x3b   : > { %p2915_p3 = pneg %p2914_p0 }
  0x3d   : > { %p2922_p9 = pnand %p2921_p7, %p2915_p3 }
  0x3f   : > { %2925 = shalt.err (!%p2922_p9)
}
  0x40   : > { %s3841_s6 = smov 64   ;;  %s3842_s7 = smov 4  }
  0x41   : > { %2612 = dma.hbm_to_vmem [thread:$0]  (!%p3373_p6), %s3869_s3, 1024, %s3367_s24, [#allocation8], %s3841_s6, %s3841_s6, %s3842_s7  }
  0x42   : > { %s3871_s5 = sld [smem:[#allocation30_spill]] }
  0x48   : > { %s2926_s2 = scalar_lea.hbm %s3871_s5, 1024 }
  0x49   : > { %p2927_p4 = scmp.ne.s32.totalorder %s3871_s5, %s2926_s2  ;;  %p2933_p12 = scmp.lt.u32.totalorder %s2926_s2, %s3871_s5 }
  0x4b   : > { %p2929_p10 = pnand %p2927_p4, %p3389_p8 }
  0x4d   : > { %p2930_p11 = pneg %p2929_p10 }
  0x4f   : > { %p2935_p13 = pnand %p2933_p12, %p2930_p11 }
  0x51   : > { %2938 = shalt.err (!%p2935_p13)
}
  0x52   : > { %s2939_s24 = scalar_lea.vmem %s3377_s12, 1024  ;;  %p2947_p7 = scmp.lt.s32.totalorder %s3377_s12, %s3377_s12 }
  0x53   : > { %p2940_p0 = scmp.ne.s32.totalorder %s3377_s12, %s2939_s24  ;;  %p2948_p9 = scmp.lt.s32.totalorder %s2939_s24, %s2939_s24 }
  0x55   : > { %p2942_p3 = pnand %p2940_p0, %p3389_p8  ;;  %p2949_p4 = por %p2948_p9, %p2947_p7 }
  0x57   : > { %p2943_p5 = pneg %p2942_p3 }
  0x59   : > { %p2950_p10 = pnand %p2949_p4, %p2943_p5 }
  0x5b   : > { %2953 = shalt.err (!%p2950_p10)
}
  0x5c   : > { %2618 = dma.hbm_to_vmem [thread:$0]  (!%p3373_p6), %s3871_s5, 1024, %s3377_s12, [#allocation11], %s3841_s6, %s3841_s6, %s3842_s7  }
  0x5d   : > { %s3872_s4 = sld [smem:[#allocation29_spill]] }
  0x63   : > { %s2954_s8 = scalar_lea.hbm %s3872_s4, 2048 }
  0x64   : > { %p2955_p11 = scmp.ne.s32.totalorder %s3872_s4, %s2954_s8  ;;  %p2961_p0 = scmp.lt.u32.totalorder %s2954_s8, %s3872_s4 }
  0x66   : > { %p2957_p12 = pnand %p2955_p11, %p3389_p8 }
  0x68   : > { %p2958_p13 = pneg %p2957_p12 }
  0x6a   : > { %p2963_p3 = pnand %p2961_p0, %p2958_p13 }
  0x6c   : > { %2966 = shalt.err (!%p2963_p3)
}
  0x6d   : > { %s2967_s12 = scalar_lea.vmem %s3379_s10, 2048  ;;  %p2975_p4 = scmp.lt.s32.totalorder %s3379_s10, %s3379_s10 }
  0x6e   : > { %p2968_p5 = scmp.ne.s32.totalorder %s3379_s10, %s2967_s12  ;;  %p2976_p10 = scmp.lt.s32.totalorder %s2967_s12, %s2967_s12 }
  0x70   : > { %p2970_p7 = pnand %p2968_p5, %p3389_p8  ;;  %p2977_p11 = por %p2976_p10, %p2975_p4 }
  0x72   : > { %p2971_p9 = pneg %p2970_p7 }
  0x74   : > { %p2978_p12 = pnand %p2977_p11, %p2971_p9 }
  0x76   : > { %2981 = shalt.err (!%p2978_p12)
}
  0x77   : > { %s3845_s24 = smov 128   ;;  %s3846_s0 = smov 8  }
  0x78   : > { %2615 = dma.hbm_to_vmem [thread:$0]  (!%p3373_p6), %s3872_s4, 2048, %s3379_s10, [#allocation8], %s3845_s24, %s3845_s24, %s3846_s0  }
  0x79   : > { %s3211_s22 = smov [#allocation12]   ;;  %s3873_s9 = sld [smem:[#allocation34_spill]] }
  0x7a   : > { %s421_s8 = sshll.u32 %s3211_s22, 4  ;;  %s422_s8 = int_to_ptr.vmem [resolvable:$true] %s421_s8 }
  0x7f   : > { %s2982_s19 = scalar_lea.hbm %s3873_s9, 4096 }
  0x80   : > { %p2983_p13 = scmp.ne.s32.totalorder %s3873_s9, %s2982_s19  ;;  %p2989_p5 = scmp.lt.u32.totalorder %s2982_s19, %s3873_s9 }
  0x82   : > { %p2985_p0 = pnand %p2983_p13, %p3389_p8 }
  0x84   : > { %p2986_p3 = pneg %p2985_p0 }
  0x86   : > { %p2991_p7 = pnand %p2989_p5, %p2986_p3 }
  0x88   : > { %2994 = shalt.err (!%p2991_p7)
}
  0x89   : > { %s2995_s10 = scalar_lea.vmem %s422_s8, 4096  ;;  %p3003_p11 = scmp.lt.s32.totalorder %s422_s8, %s422_s8 }
  0x8a   : > { %p2996_p9 = scmp.ne.s32.totalorder %s422_s8, %s2995_s10  ;;  %p3004_p12 = scmp.lt.s32.totalorder %s2995_s10, %s2995_s10 }
  0x8c   : > { %p2998_p4 = pnand %p2996_p9, %p3389_p8  ;;  %p3005_p2 = por %p3004_p12, %p3003_p11 }
  0x8e   : > { %p2999_p10 = pneg %p2998_p4 }
  0x90   : > { %p3006_p1 = pnand %p3005_p2, %p2999_p10 }
  0x92   : > { %3009 = shalt.err (!%p3006_p1)
}
  0x93   : > { %s3212_s14 = smov 256   ;;  %s3213_s21 = smov 16  }
  0x94   : > { %2621 = dma.hbm_to_vmem [thread:$0]  (!%p3373_p6), %s3873_s9, 4096, %s422_s8, [#allocation11], %s3212_s14, %s3212_s14, %s3213_s21  }
  0x95   : > { %s3214_s22 = smov [#allocation13]   ;;  %s3010_s2 = scalar_lea.hbm %s3832_s11, 4096 }
  0x96   : > { %s437_s23 = sshll.u32 %s3214_s22, 4  ;;  %p3011_p1 = scmp.ne.s32.totalorder %s3832_s11, %s3010_s2  ;;  %s438_s23 = int_to_ptr.vmem [resolvable:$true] %s437_s23 }
  0x97   : > { %p3017_p0 = scmp.lt.u32.totalorder %s3010_s2, %s3832_s11 }
  0x98   : > { %p3013_p2 = pnand %p3011_p1, %p3389_p8 }
  0x9a   : > { %p3014_p13 = pneg %p3013_p2 }
  0x9c   : > { %p3019_p3 = pnand %p3017_p0, %p3014_p13 }
  0x9e   : > { %3022 = shalt.err (!%p3019_p3)
}
  0x9f   : > { %s3023_s8 = scalar_lea.vmem %s438_s23, 4096  ;;  %p3031_p4 = scmp.lt.s32.totalorder %s438_s23, %s438_s23 }
  0xa0   : > { %p3024_p5 = scmp.ne.s32.totalorder %s438_s23, %s3023_s8  ;;  %p3032_p10 = scmp.lt.s32.totalorder %s3023_s8, %s3023_s8 }
  0xa2   : > { %p3026_p7 = pnand %p3024_p5, %p3389_p8  ;;  %p3033_p11 = por %p3032_p10, %p3031_p4 }
  0xa4   : > { %p3027_p9 = pneg %p3026_p7 }
  0xa6   : > { %p3034_p12 = pnand %p3033_p11, %p3027_p9 }
  0xa8   : > { %3037 = shalt.err (!%p3034_p12)
}
  0xa9   : > { %s3874_s14 = smov 4   ;;  %s3875_s21 = smov 64  }
  0xaa   : > { %2624 = dma.hbm_to_vmem [thread:$0]  (!%p3373_p6), %s3832_s11, 4096, %s438_s23, [#allocation14], %s3875_s21, %s3875_s21, %s3874_s14  }
  0xab   : > { %s2280_s1 = sadd.s32 4294967294, %s3202_s18   ;;  %s41_s13 = sadd.s32 1, %s3194_s16 }
  0xac   : > { %p42_p8 = scmp.ge.s32.totalorder %s41_s13, 2  ;;  %s44_s6 = sadd.s32 1, %s3198_s17 }
  0xad   : > { %s51_s7 = sadd.s32 1, %s3182_s30  ;;  %p58_p1 = scmp.ne.s32.totalorder %s3182_s30, %s3178_s29 }
  0xae   : > { %s3916_s13 = smov (%p42_p8, %s41_s13), 0  ;;  %s3876_s22 = sld [smem:[#allocation23_spill]] }
  0xaf   : > { %s3918_s6 = smov (!%p42_p8, %s44_s6), %s3198_s17  ;;  %p59_p2 = scmp.eq.s32.totalorder %s3202_s18, 0 }
  0xb0   : > { %p64_p6 = scmp.ne.s32.totalorder %s3178_s29, %s3174_s28  ;;  %p46_p13 = scmp.ge.s32.totalorder %s3918_s6, 2 }
  0xb1   : > { %s327_s23 = ssub.s32 %s3194_s16, %s3916_s13  ;;  %p3518_p0 = por %p59_p2, %p58_p1 }
  0xb2   : > { %p3878_p3 = scmp.ne.s32.totalorder %s3863_s20, 0  ;;  %s3920_s6 = smov (%p46_p13, %s3918_s6), 0 }
  0xb3   : > { %s331_s2 = sadd.s32 1, %s3170_s27  ;;  %p341_p7 = scmp.ne.s32.totalorder %s3170_s27, %s3166_s26 }
  0xb4   : > { %p3524_p5 = por %p3878_p3, %p64_p6  ;;  %s48_s28 = ssub.s32 %s3198_s17, %s3920_s6 }
  0xb5   : > { %p347_p9 = scmp.ne.s32.totalorder %s3166_s26, %s3162_s25  ;;  %p49_p4 = scmp.eq.s32.totalorder %s48_s28, 0 }
  0xb6   : > { %s328_s12 = sor.u32 %s327_s23, %s48_s28  ;;  %p3880_p11 = scmp.ne.s32.totalorder %s3876_s22, 0 }
  0xb7   : > { %p329_p10 = scmp.eq.s32.totalorder %s328_s12, 0  ;;  %p348_p8 = scmp.eq.s32.totalorder %s2280_s1, 3 }
  0xb8   : > { %p3539_p12 = por %p3880_p11, %p341_p7  ;;  %p2638_p1 = scmp.lt.s32.totalorder %s3202_s18, 4 }
  0xb9   : > { %s3544_s8 = scalar_select %p49_p4, %s3182_s30, %s51_s7  }
  0xba   : > { %s3881_s10 = scalar_select %p3539_p12, 1, 0 }
  0xbb   : > { %s3547_s14 = scalar_select %p329_p10, %s3170_s27, %s331_s2  }
  0xbc   : > { %s454_s21 = sand.u32 1, %s3182_s30   ;;  %s2418_s24 = sshll.u32 %s3198_s17, 8 }
  0xbd   : > { %p3552_p2 = por %p348_p8, %p347_p9  ;;  %s2288_s3 = sshll.u32 %s454_s21, 4 }
  0xbe   : > { %s3883_s22 = sld [smem:[#allocation25_spill]]  ;;  %p3563_p6 = pnand %p2638_p1, %p3518_p0 }
  0xbf   : > { %s3882_s0 = scalar_select %p3552_p2, 1, 0 }
  0xc0   : > { %s458_s7 = scalar_lea.vmem [#allocation4], %s2288_s3  ;;  %s3569_s4 = scalar_lea.sflag [#allocation5], %s454_s21 }
  0xc1   : > { %s465_s2 = sshll.u32 %s458_s7, 4  ;;  %p3040_p3 = pneg %p3563_p6  ;;  %s3567_s2 = int_to_ptr.vmem [resolvable:$true] %s465_s2 }
  0xc4   : > { %s3559_s12 = scalar_lea.hbm %s3883_s22, %s2418_s24  ;;  %s3043_s28 = scalar_lea.hbm %s3883_s22, 512 }
  0xc5   : > { %s3038_s23 = scalar_lea.hbm %s3559_s12, 256  ;;  %p3044_p0 = scmp.lt.u32.totalorder %s3559_s12, %s3883_s22 }
  0xc6   : > { %p3039_p13 = scmp.ne.s32.totalorder %s3559_s12, %s3038_s23  ;;  %p3045_p4 = scmp.lt.u32.totalorder %s3043_s28, %s3038_s23 }
  0xc7   : > { %p3047_p11 = scmp.lt.u32.totalorder %s3038_s23, %s3559_s12 }
  0xc8   : > { %p3041_p7 = pnand %p3040_p3, %p3039_p13  ;;  %p3046_p10 = por %p3045_p4, %p3044_p0 }
  0xca   : > { %p3042_p9 = pneg %p3041_p7  ;;  %p3048_p8 = por %p3047_p11, %p3046_p10 }
  0xcc   : > { %p3049_p1 = pnand %p3048_p8, %p3042_p9 }
  0xce   : > { %3052 = shalt.err (!%p3049_p1)
}
  0xcf   : > { %s3053_s3 = scalar_lea.vmem %s3567_s2, 256  ;;  %s3215_s21 = smov [#allocation4]  }
  0xd0   : > { %p3054_p13 = scmp.ne.s32.totalorder %s3567_s2, %s3053_s3  ;;  %s3058_s7 = sshll.u32 %s3215_s21, 4  ;;  %s3059_s7 = int_to_ptr.vmem [resolvable:$false] %s3058_s7 }
  0xd1   : > { %s3060_s5 = scalar_lea.vmem %s3059_s7, 512  ;;  %p3061_p12 = scmp.lt.s32.totalorder %s3567_s2, %s3059_s7 }
  0xd2   : > { %p3056_p7 = pnand %p3054_p13, %p3040_p3  ;;  %p3062_p0 = scmp.lt.s32.totalorder %s3060_s5, %s3053_s3 }
  0xd4   : > { %p3057_p2 = pneg %p3056_p7  ;;  %p3063_p4 = por %p3062_p0, %p3061_p12 }
  0xd6   : > { %p3064_p10 = pnand %p3063_p4, %p3057_p2 }
  0xd8   : > { %3067 = shalt.err (!%p3064_p10)
}
  0xd9   : > { %s3885_s9 = smov 8   ;;  %s3886_s23 = smov 128  }
  0xda   : > { %2628 = dma.hbm_to_vmem [thread:$0]  (!%p3563_p6), %s3559_s12, 256, %s3567_s2, %s3569_s4, %s3886_s23, %s3886_s23, %s3885_s9  }
  0xdb   : > { %s3887_s15 = sld [smem:[#allocation24_spill]] }
  0xe1   : > { %p3888_p3 = scmp.ne.s32.totalorder %s3887_s15, 0 }
  0xe2   : > { %s479_s24 = sand.u32 (!%p3888_p3), 1, %s3178_s29  }
  0xe3   : > { %477 = sbr.rel (%p3888_p3) target bundleno = 3420 (0xd5c), region = 72  ;;  %s2292_s28 = sshll.u32 (!%p3888_p3), %s479_s24, 4 }
  0xe4   : > { %s480_s3 = scalar_lea.sflag (!%p3888_p3), [#allocation5], %s479_s24  ;;  %s3603_s21 = scalar_lea.vmem (!%p3888_p3), [#allocation4], %s2292_s28 }
  0xea   : > { %3141 = dma.done.wait (%p3524_p5), %s480_s3, 256  }
  0xeb   : > { %3143 = vsyncadd (%p3524_p5), %s480_s3, 4294967040  ;;  %p3889_p12 = scmp.ne.s32.totalorder %s3863_s20, 0 }
  0xed   : > { %3145 = dma.done.wait (%p3889_p12), [#allocation8], 3072  }
  0xee   : > { %3147 = vsyncadd (%p3889_p12), [#allocation8], 4294964224 }
  0xef   : > { %3149 = dma.done.wait (%p3889_p12), [#allocation11], 5120  }
  0xf0   : > { %3151 = vsyncadd (%p3889_p12), [#allocation11], 4294962176 }
  0xf1   : > { %3153 = dma.done.wait (%p3889_p12), [#allocation14], 4096  }
  0xf2   : > { %3155 = vsyncadd (%p3889_p12), [#allocation14], 4294963200  ;;  %s543_s4 = sand.u32 1, %s3166_s26   ;;  %s3890_s1 = sld [smem:[#allocation21_spill]] }
  0xf3   : > { %s3624_s19 = sshll.u32 %s543_s4, 3 }
  0xf4   : > { %s545_s12 = scalar_lea.vmem [#allocation15], %s3624_s19 }
  0xf8   : > { %p2299_p5 = scmp.ne.s32.totalorder %s3890_s1, 0 }
  0xf9   : > { %v551_v0 = vld [vmem:[%s3603_s21] sm:$0xff] (!%p2299_p5)  ;;  %v552_v1 = vld [vmem:[%s3603_s21 + $0x8] sm:$0xff] (!%p2299_p5)  ;;  %v3216_v21 = vmov (!%p2299_p5), 0   ;;  %s3891_s7 = sld [smem:[#allocation26_spill]] (!%p2299_p5)  ;;  %s3892_s23 = sld [smem:[#allocation27_spill]] (!%p2299_p5)  ;;  %vm746_vm0 = vcmask (!%p2299_p5), 261120  }
  0xfa   : > { %550 = sbr.rel (%p2299_p5) target bundleno = 911 (0x38f), region = 100  ;;  %555 = vadd.xlane.f32.xlu0 (!%p2299_p5), %v551_v0  ;;  %v2754_v2 = vld [vmem:[#allocation9 + $0x4] ss:$8 sps:$4 sm:$0xff] (!%p2299_p5)   ;;  %v2756_v3 = vld [vmem:[#allocation9] ss:$8 sps:$4 sm:$0xff] (!%p2299_p5)   ;;  %723 = vmatprep.mubr.bf16.mxu0 (!%p2299_p5), %v3216_v21  ;;  %s3217_s15 = smov (!%p2299_p5), 64  }
  0xfb   : > { %v2757_v4 = vld [vmem:[#allocation9 + $0x14] ss:$8 sps:$4 sm:$0xff] (!%p2299_p5)   ;;  %691 = vmatprep.subr.bf16.mxu0 (!%p2299_p5), %v2754_v2  ;;  %v2759_v13 = vld [vmem:[#allocation9 + $0x10] ss:$8 sps:$4 sm:$0xff] (!%p2299_p5)   ;;  %v2760_v14 = vld [vmem:[#allocation9 + $0x24] ss:$8 sps:$4 sm:$0xff] (!%p2299_p5)  }
  0xfc   : > { %692 = vmatpush1.bf16.msra.mxu0 (!%p2299_p5), %v2756_v3  ;;  %v2762_v15 = vld [vmem:[#allocation9 + $0x20] ss:$8 sps:$4 sm:$0xff] (!%p2299_p5)   ;;  %v2763_v16 = vld [vmem:[#allocation9 + $0x34] ss:$8 sps:$4 sm:$0xff] (!%p2299_p5)   ;;  %v2765_v17 = vld [vmem:[#allocation9 + $0x30] ss:$8 sps:$4 sm:$0xff] (!%p2299_p5)  }
  0xfd   : > { %693 = vmatprep.subr.bf16.mxu0 (!%p2299_p5), %v2757_v4  ;;  %v2766_v18 = vld [vmem:[#allocation9 + $0x44] ss:$8 sps:$4 sm:$0xff] (!%p2299_p5)   ;;  %v2768_v19 = vld [vmem:[#allocation9 + $0x40] ss:$8 sps:$4 sm:$0xff] (!%p2299_p5)   ;;  %v2769_v20 = vld [vmem:[#allocation9 + $0x54] ss:$8 sps:$4 sm:$0xff] (!%p2299_p5)  }
  0xfe   : > { %557 = vadd.xlane.f32.xlu0 (!%p2299_p5), %v552_v1  ;;  %v2771_v22 = vld [vmem:[#allocation9 + $0x50] ss:$8 sps:$4 sm:$0xff] (!%p2299_p5)   ;;  %v2772_v23 = vld [vmem:[#allocation9 + $0x64] ss:$8 sps:$4 sm:$0xff] (!%p2299_p5)   ;;  %v2774_v24 = vld [vmem:[#allocation9 + $0x60] ss:$8 sps:$4 sm:$0xff] (!%p2299_p5)  }
  0xff   : > { %v2775_v25 = vld [vmem:[#allocation9 + $0x74] ss:$8 sps:$4 sm:$0xff] (!%p2299_p5)   ;;  %v2777_v26 = vld [vmem:[#allocation9 + $0x70] ss:$8 sps:$4 sm:$0xff] (!%p2299_p5)   ;;  %v2300_v35 = vld [vmem:[%s3891_s7] ss:$0 sm:$0xff] (!%p2299_p5) }
 0x100   : > { %694 = vmatpush1.bf16.msra.mxu0 (!%p2299_p5), %v2759_v13  ;;  %v2301_v39 = vld [vmem:[%s3892_s23] ss:$0 sm:$0xff] (!%p2299_p5)  ;;  %s3218_s24 = smov (!%p2299_p5), 96   ;;  %s3219_s28 = smov (!%p2299_p5), 32  }
 0x101   : > { %695 = vmatprep.subr.bf16.mxu0 %v2760_v14 }
 0x104   : > { %696 = vmatpush1.bf16.msra.mxu0 %v2762_v15 }
 0x105   : > { %697 = vmatprep.subr.bf16.mxu0 %v2763_v16 }
 0x108   : > { %698 = vmatpush1.bf16.msra.mxu0 %v2765_v17 }
 0x109   : > { %699 = vmatprep.subr.bf16.mxu0 %v2766_v18 }
 0x10c   : > { %700 = vmatpush1.bf16.msra.mxu0 %v2768_v19 }
 0x10d   : > { %701 = vmatprep.subr.bf16.mxu0 %v2769_v20 }
 0x110   : > { %702 = vmatpush1.bf16.msra.mxu0 %v2771_v22 }
 0x111   : > { %703 = vmatprep.subr.bf16.mxu0 %v2772_v23 }
 0x114   : > { %704 = vmatpush1.bf16.msra.mxu0 %v2774_v24 }
 0x115   : > { %705 = vmatprep.subr.bf16.mxu0 %v2775_v25 }
 0x118   : > { %706 = vmatpush1.bf16.msra.mxu0 %v2777_v26 }
 0x187   : > { %v556_v5 = vpop.xlane.xlu0 %555 }
 0x188   : > { %v560_v6 = vmul.f32 0.0078125, %v556_v5 }
 0x18a   : > { %v562_v7 = vsub.f32 %v551_v0, %v560_v6 }
 0x18b   : > { %v558_v8 = vpop.xlane.xlu0 %557 }
 0x18c   : > { %v561_v9 = vmul.f32 0.0078125, %v558_v8  ;;  %v564_v10 = vmul.f32 %v562_v7, %v562_v7 }
 0x18e   : > { %v563_v11 = vsub.f32 %v552_v1, %v561_v9  ;;  %566 = vadd.xlane.f32.xlu1 %v564_v10 }
 0x190   : > { %v565_v12 = vmul.f32 %v563_v11, %v563_v11 }
 0x192   : > { %568 = vadd.xlane.f32.xlu1 %v565_v12 }
 0x21b   : > { %v567_v27 = vpop.xlane.xlu1 %566 }
 0x21c   : > { %v570_v28 = vmul.f32 0.0078125, %v567_v27 }
 0x21e   : > { %v572_v29 = vadd.f32 1e-05, %v570_v28 }
 0x21f   : > { %v569_v30 = vpop.xlane.xlu1 %568 }
 0x220   : > { %2778 = vrsqrt.f32 %v572_v29  ;;  %v571_v31 = vmul.f32 0.0078125, %v569_v30 }
 0x222   : > { %v573_v32 = vadd.f32 1e-05, %v571_v31 }
 0x224   : > { %2780 = vrsqrt.f32 %v573_v32 }
 0x22a   : > { %v2779_v33 = vpop.eup %2778 }
 0x22b   : > { %v576_v34 = vmul.f32 %v2779_v33, %v562_v7 }
 0x22d   : > { %v584_v38 = vmul.f32 %v2300_v35, %v576_v34 }
 0x22e   : > { %v2781_v36 = vpop.eup %2780 }
 0x22f   : > { %v577_v37 = vmul.f32 %v2781_v36, %v563_v11  ;;  %v592_v41 = vadd.f32 %v2301_v39, %v584_v38 }
 0x231   : > { %v585_v40 = vmul.f32 %v2300_v35, %v577_v37 }
 0x233   : > { %v593_v42 = vadd.f32 %v2301_v39, %v585_v40 }
 0x235   : > { %v594_v43 = vpack.c.bf16 %v593_v42, %v592_v41 }
 0x237   : > { %724 = vmatmul.mubr.bf16.vlgmr.msra.gmra.mrb[0].mxu0 %v594_v43 }
 0x30a   : > { %v725_v44 = vpop.f32.mrb[0].mxu0 }
 0x30b   : > { %v727_v45 = vpop.f32.mrb[1].mxu0 }
 0x30c   : > { %v729_v46 = vpop.f32.mrb[2].mxu0 }
 0x30d   : > { %v734_v47 = vpack.c.bf16 %v729_v46, %v725_v44  ;;  %v731_v48 = vpop.f32.mrb[3].mxu0 }
 0x30e   : > { %v735_v49 = vpack.c.bf16 %v731_v48, %v727_v45 }
 0x30f   : > { %747 = vst.msk [vmem:[#allocation2] sm:$0xff] %vm746_vm0, %v734_v47  ;;  %740 = vrot.lane.b32.xlu1 %v734_v47, %s3217_s15  ;;  %737 = vrot.lane.b32.xlu0 %v734_v47, %s3218_s24 }
 0x310   : > { %761 = vst.msk [vmem:[#allocation3] sm:$0xff] %vm746_vm0, %v735_v49 }
 0x313   : > { %743 = vrot.lane.b32.xlu1 %v734_v47, %s3219_s28  ;;  %755 = vrot.lane.b32.xlu0 %v735_v49, %s3217_s15 }
 0x317   : > { %752 = vrot.lane.b32.xlu1 %v735_v49, %s3218_s24 }
 0x31b   : > { %758 = vrot.lane.b32.xlu1 %v735_v49, %s3219_s28 }
 0x381   : > { %v741_v50 = vpop.permute.xlu1 %740  ;;  %v738_v51 = vpop.permute.xlu0 %737 }
 0x382   : > { %749 = vst.msk [vmem:[#allocation2 + $0x10] sm:$0xff] %vm746_vm0, %v741_v50  ;;  %748 = vst.msk [vmem:[#allocation2 + $0x8] sm:$0xff] %vm746_vm0, %v738_v51 }
 0x385   : > { %v744_v52 = vpop.permute.xlu1 %743  ;;  %v756_v53 = vpop.permute.xlu0 %755 }
 0x386   : > { %750 = vst.msk [vmem:[#allocation2 + $0x18] sm:$0xff] %vm746_vm0, %v744_v52  ;;  %763 = vst.msk [vmem:[#allocation3 + $0x10] sm:$0xff] %vm746_vm0, %v756_v53 }
 0x389   : > { %v753_v54 = vpop.permute.xlu1 %752 }
 0x38a   : > { %762 = vst.msk [vmem:[#allocation3 + $0x8] sm:$0xff] %vm746_vm0, %v753_v54 }
 0x38d   : > { %v759_v55 = vpop.permute.xlu1 %758 }
 0x38e   : > { %764 = vst.msk [vmem:[#allocation3 + $0x18] sm:$0xff] %vm746_vm0, %v759_v55 }
 0x38f PF: > { %s3893_s3 = sld [smem:[#allocation21_spill]]  ;;  %v2782_v57 = vld [vmem:[#allocation7] sm:$0xff]   ;;  %v2783_v58 = vld [vmem:[#allocation7 + $0x8] sm:$0xff]   ;;  %v3220_v59 = vmov 0.0   ;;  %v2784_v0 = vld [vmem:[#allocation7 + $0x10] sm:$0xff]   ;;  %vm3221_vm1 = vmmov 0  }
 0x390   : > { %2497 = vmatprep.subr.bf16.mxu0 %v3220_v59  ;;  %2517 = vmatprep.subr.bf16.mxu1 %v3220_v59  ;;  %v2785_v1 = vld [vmem:[#allocation7 + $0x18] sm:$0xff]   ;;  %v2786_v2 = vld [vmem:[#allocation7 + $0x20] sm:$0xff]   ;;  %v2787_v3 = vld [vmem:[#allocation7 + $0x28] sm:$0xff]   ;;  %vm913_vm2 = vcmask 261120   ;;  %s3894_s7 = sld [smem:[#allocation26_spill]]  ;;  %s3895_s23 = sld [smem:[#allocation27_spill]] }
 0x391   : > { %2498 = vmatpush3.bf16.msra.mxu0 %v2782_v57  ;;  %2513 = vmatprep.mubr.msk.bf16.mxu0 %vm3221_vm1, %v3220_v59  ;;  %v2788_v4 = vld [vmem:[#allocation7 + $0x30] sm:$0xff]   ;;  %v2789_v5 = vld [vmem:[#allocation7 + $0x38] sm:$0xff]   ;;  %v909_v6 = vld [vmem:[#allocation2] sm:$0xff]  ;;  %s3222_s15 = smov 32   ;;  %s3223_s24 = smov 96   ;;  %vm1098_vm3 = vcmask 130048  }
 0x392   : > { %2499 = vmatprep.subr.bf16.mxu0 %v3220_v59  ;;  %2519 = vmatprep.mubr.msk.bf16.mxu1 %vm3221_vm1, %v3220_v59  ;;  %v918_v7 = vsel %vm913_vm2, %v909_v6, 0  ;;  %v910_v18 = vld [vmem:[#allocation2 + $0x8] sm:$0xff]  ;;  %s3224_s28 = smov 64   ;;  %v911_v25 = vld [vmem:[#allocation2 + $0x10] sm:$0xff]  ;;  %v912_v28 = vld [vmem:[#allocation2 + $0x18] sm:$0xff]  ;;  %vm1336_vm4 = vcmask 523264  }
 0x393   : > { %2518 = vmatpush3.bf16.xpose.msra.mxu1 %v918_v7  ;;  %v964_v23 = vsel %vm913_vm2, %v910_v18, 0  ;;  %v1010_v26 = vsel %vm913_vm2, %v911_v25, 0  ;;  %v1056_v29 = vsel %vm913_vm2, %v912_v28, 0  ;;  %vm1338_vm5 = vcmask 785408   ;;  %s3897_s5 = sld [smem:[#allocation32_spill]]  ;;  %p3903_p6 = scmp.ne.s32.totalorder %s3881_s10, 0 }
 0x394   : > { %2523 = vmatprep.subr.bf16.mxu1 %v3220_v59  ;;  %s3226_s2 = smov [#allocation15]  }
 0x395   : > { %s2318_s1 = sshll.u32 %s3893_s3, 3  ;;  %2500 = vmatpush3.bf16.msra.mxu0 %v2783_v58  ;;  %v1147_v58 = vld [vmem:[#allocation3] sm:$0xff] }
 0x396   : > { %s766_s20 = scalar_lea.vmem %s3603_s21, %s2318_s1 [#allocation4]  ;;  %2501 = vmatprep.subr.bf16.mxu0 %v3220_v59  ;;  %v2319_v12 = vld [vmem:[%s3894_s7] ss:$0 sm:$0xff]  ;;  %s3896_s21 = sld [smem:[#allocation31_spill]] }
 0x397   : > { %v3646_v56 = vld [vmem:[%s766_s20] sm:$0xff]  ;;  %s3899_s1 = sld [smem:[#allocation35_spill]]  ;;  %s3900_s20 = sld [smem:[#allocation22_spill]] }
 0x398   : > { %770 = vadd.xlane.f32.xlu0 %v3646_v56  ;;  %v2320_v14 = vld [vmem:[%s3895_s23] ss:$0 sm:$0xff]  ;;  %s3072_s7 = sshll.u32 %s3226_s2, 4  ;;  %s3073_s7 = int_to_ptr.vmem [resolvable:$false] %s3072_s7 }
 0x399   : > { %2502 = vmatpush3.bf16.msra.mxu0 %v2784_v0 }
 0x39a   : > { %2503 = vmatprep.subr.bf16.mxu0 %v3220_v59 }
 0x39d   : > { %2504 = vmatpush3.bf16.msra.mxu0 %v2785_v1 }
 0x39e   : > { %2505 = vmatprep.subr.bf16.mxu0 %v3220_v59 }
 0x3a1   : > { %2506 = vmatpush3.bf16.msra.mxu0 %v2786_v2 }
 0x3a2   : > { %2507 = vmatprep.subr.bf16.mxu0 %v3220_v59 }
 0x3a5   : > { %2508 = vmatpush3.bf16.msra.mxu0 %v2787_v3 }
 0x3a6   : > { %2509 = vmatprep.subr.bf16.mxu0 %v3220_v59 }
 0x3a9   : > { %2510 = vmatpush3.bf16.msra.mxu0 %v2788_v4 }
 0x3aa   : > { %2511 = vmatprep.subr.bf16.mxu0 %v3220_v59 }
 0x3ad   : > { %2512 = vmatpush3.bf16.msra.mxu0 %v2789_v5 }
 0x3ae   : > { %2565 = vmatprep.subr.bf16.mxu0 %v3220_v59 }
 0x425   : > { %v771_v60 = vpop.xlane.xlu0 %770 }
 0x426   : > { %v773_v61 = vmul.f32 0.0078125, %v771_v60 }
 0x428   : > { %v774_v62 = vsub.f32 %v3646_v56, %v773_v61 }
 0x42a   : > { %v775_v63 = vmul.f32 %v774_v62, %v774_v62 }
 0x42c   : > { %776 = vadd.xlane.f32.xlu0 %v775_v63 }
 0x4b9   : > { %v777_v8 = vpop.xlane.xlu0 %776 }
 0x4ba   : > { %v778_v9 = vmul.f32 0.0078125, %v777_v8 }
 0x4bc   : > { %v779_v10 = vadd.f32 1e-05, %v778_v9 }
 0x4be   : > { %2878 = vrsqrt.f32 %v779_v10 }
 0x4c8   : > { %v2879_v11 = vpop.eup %2878 }
 0x4c9   : > { %v781_v13 = vmul.f32 %v2879_v11, %v774_v62 }
 0x4cb   : > { %v788_v15 = vmul.f32 %v2319_v12, %v781_v13 }
 0x4cd   : > { %v795_v16 = vadd.f32 %v2320_v14, %v788_v15  ;;  %v1148_v15 = vld [vmem:[#allocation3 + $0x8] sm:$0xff] }
 0x4cf   : > { %v796_v17 = vpack.c.bf16 %v795_v16, %v795_v16 }
 0x4d1   : > { %2514 = vmatmul.mubr.bf16.vlgmr.msra.gmra.mrb[0].mxu0 %v796_v17 }
 0x4d2   : > { %2581 = vmatprep.mubr.msk.bf16.mxu0 %vm3221_vm1, %v3220_v59 }
 0x5a4   : > { %v895_v19 = vpop.f32.mrb[0].mxu0 }
 0x5a5   : > { %v901_v20 = vpack.c.bf16 %v895_v19, %v895_v19  ;;  %v2515_v21 = vpop.f32.mrb[1].mxu0 }
 0x5a6   : > { %v898_v22 = vpop.f32.mrb[2].mxu0  ;;  %v1149_v21 = vld [vmem:[#allocation3 + $0x10] sm:$0xff] }
 0x5a7   : > { %907 = vrot.lane.b32.xlu0 %v901_v20, %s3222_s15  ;;  %903 = vrot.lane.b32.xlu1 %v901_v20, %s3223_s24  ;;  %v2516_v24 = vpop.f32.mrb[3].mxu0 }
 0x5a8   : > { %2520 = vmatmul.mubr.msk.bf16.vlgmr.msra.gmra.mrb[0].mxu1 %vm913_vm2, %v901_v20 }
 0x5a9   : > { %2524 = vmatpush3.bf16.xpose.msra.mxu1 %v964_v23  ;;  %2525 = vmatprep.mubr.msk.bf16.mxu1 %vm3221_vm1, %v3220_v59 }
 0x5aa   : > { %2529 = vmatprep.subr.bf16.mxu1 %v3220_v59 }
 0x5ab   : > { %905 = vrot.lane.b32.xlu1 %v901_v20, %s3224_s28 }
 0x619   : > { %v904_v27 = vpop.permute.xlu1 %903  ;;  %v908_v31 = vpop.permute.xlu0 %907 }
 0x61a   : > { %2526 = vmatmul.mubr.msk.bf16.vlgmr.msra.gmra.mrb[4].mxu1 %vm913_vm2, %v904_v27 }
 0x61b   : > { %2530 = vmatpush3.bf16.xpose.msra.mxu1 %v1010_v26  ;;  %2531 = vmatprep.mubr.msk.bf16.mxu1 %vm3221_vm1, %v3220_v59  ;;  %v1150_v26 = vld [vmem:[#allocation3 + $0x18] sm:$0xff] }
 0x61c   : > { %2535 = vmatprep.subr.bf16.mxu1 %v3220_v59 }
 0x61d   : > { %v906_v30 = vpop.permute.xlu1 %905 }
 0x622   : > { %2532 = vmatmul.mubr.msk.bf16.vlgmr.msra.gmra.mrb[8].mxu1 %vm913_vm2, %v906_v30 }
 0x623   : > { %2536 = vmatpush3.bf16.xpose.msra.mxu1 %v1056_v29  ;;  %2537 = vmatprep.mubr.msk.bf16.mxu1 %vm3221_vm1, %v3220_v59 }
 0x624   : > { %2541 = vmatprep.subr.bf16.mxu1 %v3220_v59 }
 0x62a   : > { %2538 = vmatmul.mubr.msk.bf16.vlgmr.msra.gmra.mrb[12].mxu1 %vm913_vm2, %v908_v31 }
 0x62b   : > { %2543 = vmatprep.mubr.msk.bf16.mxu1 %vm3221_vm1, %v3220_v59  ;;  %2542 = vmatpush3.bf16.msra.mxu1 %v1147_v58 }
 0x62c   : > { %2547 = vmatprep.subr.bf16.mxu1 %v3220_v59 }
 0x67b   : > { %v954_v32 = vpop.f32.mrb[0].mxu1 }
 0x67c   : > { %v2521_v33 = vpop.f32.mrb[1].mxu1  ;;  %v1099_v34 = vsel %vm1098_vm3, %v954_v32, -inf }
 0x67d   : > { %1100 = vmax.xlane.f32.xlu1 %v1099_v34  ;;  %v957_v35 = vpop.f32.mrb[2].mxu1  ;;  %v2790_v34 = vld [vmem:[#allocation10] sm:$0xff]  }
 0x67e   : > { %v2522_v36 = vpop.f32.mrb[3].mxu1  ;;  %2566 = vmatpush3.bf16.msra.mxu0 %v2790_v34  ;;  %v2791_v35 = vld [vmem:[#allocation10 + $0x8] sm:$0xff]   ;;  %v2834_v34 = vld [vmem:[#allocation12 + $0xc0] ss:$16 sps:$4 sm:$0xff]  }
 0x67f   : > { %2567 = vmatprep.subr.bf16.mxu0 %v3220_v59  ;;  %v2792_v36 = vld [vmem:[#allocation10 + $0x10] sm:$0xff]  }
 0x682   : > { %2568 = vmatpush3.bf16.msra.mxu0 %v2791_v35  ;;  %v2837_v35 = vld [vmem:[#allocation12 + $0xc8] ss:$16 sps:$4 sm:$0xff]  }
 0x683   : > { %2569 = vmatprep.subr.bf16.mxu0 %v3220_v59 }
 0x686   : > { %2570 = vmatpush3.bf16.msra.mxu0 %v2792_v36  ;;  %v2842_v36 = vld [vmem:[#allocation12 + $0xe4] ss:$16 sps:$4 sm:$0xff]  }
 0x687   : > { %2571 = vmatprep.subr.bf16.mxu0 %v3220_v59 }
 0x6ed   : > { %v1000_v37 = vpop.f32.mrb[4].mxu1 }
 0x6ee   : > { %v2527_v38 = vpop.f32.mrb[5].mxu1  ;;  %v1102_v39 = vsel %vm1098_vm3, %v1000_v37, -inf }
 0x6ef   : > { %1103 = vmax.xlane.f32.xlu0 %v1102_v39  ;;  %v1003_v40 = vpop.f32.mrb[6].mxu1  ;;  %v2794_v38 = vld [vmem:[#allocation10 + $0x20] sm:$0xff]   ;;  %v2795_v39 = vld [vmem:[#allocation10 + $0x28] sm:$0xff]  }
 0x6f0   : > { %v2528_v41 = vpop.f32.mrb[7].mxu1  ;;  %v2796_v40 = vld [vmem:[#allocation10 + $0x30] sm:$0xff]  }
 0x6f5   : > { %v1046_v42 = vpop.f32.mrb[8].mxu1 }
 0x6f6   : > { %v2533_v43 = vpop.f32.mrb[9].mxu1  ;;  %v1105_v44 = vsel %vm1098_vm3, %v1046_v42, -inf }
 0x6f7   : > { %1106 = vmax.xlane.f32.xlu1 %v1105_v44  ;;  %v1049_v45 = vpop.f32.mrb[10].mxu1 }
 0x6f8   : > { %v2534_v46 = vpop.f32.mrb[11].mxu1  ;;  %v2797_v45 = vld [vmem:[#allocation10 + $0x38] sm:$0xff]  }
 0x6fd   : > { %v1092_v47 = vpop.f32.mrb[12].mxu1 }
 0x6fe   : > { %v2539_v48 = vpop.f32.mrb[13].mxu1  ;;  %v1108_v49 = vsel %vm1098_vm3, %v1092_v47, -inf }
 0x6ff   : > { %1109 = vmax.xlane.f32.xlu1 %v1108_v49  ;;  %v1095_v50 = vpop.f32.mrb[14].mxu1 }
 0x700   : > { %v2540_v51 = vpop.f32.mrb[15].mxu1 }
 0x70a   : > { %v1101_v52 = vpop.xlane.xlu1 %1100 }
 0x70b   : > { %v1111_v53 = vsub.f32 %v954_v32, %v1101_v52 }
 0x70d   : > { %v1115_v54 = vmul.f32 1.442695, %v1111_v53 }
 0x70f   : > { %2880 = vpow2.f32 %v1115_v54 }
 0x719   : > { %v2881_v55 = vpop.eup %2880 }
 0x71a   : > { %v1123_v57 = vsel %vm1098_vm3, %v2881_v55, 0.0 }
 0x71b   : > { %1124 = vadd.xlane.f32.xlu1 %v1123_v57 }
 0x77c   : > { %v1104_v60 = vpop.xlane.xlu0 %1103 }
 0x77d   : > { %v1112_v61 = vsub.f32 %v1000_v37, %v1104_v60  ;;  %v2793_v37 = vld [vmem:[#allocation10 + $0x18] sm:$0xff]  }
 0x77e   : > { %2572 = vmatpush3.bf16.msra.mxu0 %v2793_v37  ;;  %v2845_v37 = vld [vmem:[#allocation12 + $0xec] ss:$16 sps:$4 sm:$0xff]  }
 0x77f   : > { %v1117_v62 = vmul.f32 1.442695, %v1112_v61  ;;  %2573 = vmatprep.subr.bf16.mxu0 %v3220_v59 }
 0x781   : > { %2882 = vpow2.f32 %v1117_v62  ;;  %v2337_v62 = vld [vmem:[%s3896_s21] ss:$0 sm:$0xff]  ;;  %s2414_s21 = sshll.u32 %s3900_s20, 1 }
 0x782   : > { %2574 = vmatpush3.bf16.msra.mxu0 %v2794_v38  ;;  %v2840_v38 = vld [vmem:[#allocation12 + $0xe0] ss:$16 sps:$4 sm:$0xff]   ;;  %s2142_s9 = sadd.s32 %s3893_s3, %s2414_s21  ;;  %s2131_s3 = scalar_lea.sflag [#allocation6], %s543_s4 }
 0x783   : > { %2575 = vmatprep.subr.bf16.mxu0 %v3220_v59  ;;  %s2415_s23 = sshll.u32 %s2142_s9, 7 }
 0x784   : > { %v1107_v63 = vpop.xlane.xlu1 %1106 }
 0x785   : > { %v1113_v0 = vsub.f32 %v1046_v42, %v1107_v63 }
 0x786   : > { %2576 = vmatpush3.bf16.msra.mxu0 %v2795_v39  ;;  %v2843_v39 = vld [vmem:[#allocation12 + $0xe8] ss:$16 sps:$4 sm:$0xff]  }
 0x787   : > { %v1119_v1 = vmul.f32 1.442695, %v1113_v0  ;;  %2577 = vmatprep.subr.bf16.mxu0 %v3220_v59 }
 0x789   : > { %2884 = vpow2.f32 %v1119_v1 }
 0x78a   : > { %2578 = vmatpush3.bf16.msra.mxu0 %v2796_v40  ;;  %v3225_v40 = vmov 0  }
 0x78b   : > { %v2883_v2 = vpop.eup %2882  ;;  %2579 = vmatprep.subr.bf16.mxu0 %v3220_v59 }
 0x78c   : > { %v1110_v3 = vpop.xlane.xlu1 %1109  ;;  %v1126_v4 = vsel %vm1098_vm3, %v2883_v2, 0.0 }
 0x78d   : > { %v1114_v5 = vsub.f32 %v1092_v47, %v1110_v3  ;;  %1127 = vadd.xlane.f32.xlu1 %v1126_v4 }
 0x78e   : > { %2580 = vmatpush3.bf16.msra.mxu0 %v2797_v45 }
 0x78f   : > { %v1121_v6 = vmul.f32 1.442695, %v1114_v5  ;;  %v2798_v5 = vld [vmem:[#allocation12] ss:$16 sps:$4 sm:$0xff]  }
 0x791   : > { %2886 = vpow2.f32 %v1121_v6  ;;  %v2800_v6 = vld [vmem:[#allocation12 + $0x4] ss:$16 sps:$4 sm:$0xff]  }
 0x793   : > { %v2885_v7 = vpop.eup %2884 }
 0x794   : > { %v1129_v8 = vsel %vm1098_vm3, %v2885_v7, 0.0 }
 0x795   : > { %1130 = vadd.xlane.f32.xlu1 %v1129_v8  ;;  %v2803_v8 = vld [vmem:[#allocation12 + $0xc] ss:$16 sps:$4 sm:$0xff]  }
 0x796   : > { %1736 = vmatprep.subr.bf16.mxu0 %v2803_v8  ;;  %v2865_v8 = vld [vmem:[#allocation13 + $0xa0] sm:$0xff]  }
 0x79b   : > { %v2887_v9 = vpop.eup %2886 }
 0x79c   : > { %v1132_v10 = vsel %vm1098_vm3, %v2887_v9, 0.0 }
 0x79d   : > { %1133 = vadd.xlane.f32.xlu0 %v1132_v10  ;;  %v2809_v10 = vld [vmem:[#allocation12 + $0x2c] ss:$16 sps:$4 sm:$0xff]  }
 0x7a8   : > { %v1125_v11 = vpop.xlane.xlu1 %1124 }
 0x7a9   : > { %2888 = vrcp.f32 %v1125_v11  ;;  %v2804_v11 = vld [vmem:[#allocation12 + $0x20] ss:$16 sps:$4 sm:$0xff]  }
 0x7b3   : > { %v2889_v12 = vpop.eup %2888 }
 0x7b4   : > { %v1139_v13 = vmul.f32 %v2889_v12, %v2881_v55  ;;  %v2807_v12 = vld [vmem:[#allocation12 + $0x28] ss:$16 sps:$4 sm:$0xff]  }
 0x7b6   : > { %v1143_v14 = vpack.c.bf16 %v1139_v13, %v1139_v13  ;;  %v2812_v13 = vld [vmem:[#allocation12 + $0x44] ss:$16 sps:$4 sm:$0xff]  }
 0x7b8   : > { %2544 = vmatmul.mubr.msk.bf16.vlgmr.msra.gmra.mrb[16].mxu1 %vm1098_vm3, %v1143_v14  ;;  %v2810_v14 = vld [vmem:[#allocation12 + $0x40] ss:$16 sps:$4 sm:$0xff]  }
 0x7b9   : > { %2548 = vmatpush3.bf16.msra.mxu1 %v1148_v15  ;;  %2549 = vmatprep.mubr.msk.bf16.mxu1 %vm3221_vm1, %v3220_v59  ;;  %v2813_v15 = vld [vmem:[#allocation12 + $0x48] ss:$16 sps:$4 sm:$0xff]  }
 0x7ba   : > { %2553 = vmatprep.subr.bf16.mxu1 %v3220_v59 }
 0x81a   : > { %v1128_v16 = vpop.xlane.xlu1 %1127 }
 0x81b   : > { %2890 = vrcp.f32 %v1128_v16 }
 0x822   : > { %v1131_v17 = vpop.xlane.xlu1 %1130 }
 0x823   : > { %2892 = vrcp.f32 %v1131_v17 }
 0x825   : > { %v2891_v18 = vpop.eup %2890 }
 0x826   : > { %v1140_v19 = vmul.f32 %v2891_v18, %v2883_v2 }
 0x828   : > { %v1144_v20 = vpack.c.bf16 %v1140_v19, %v1140_v19 }
 0x82a   : > { %v1134_v22 = vpop.xlane.xlu0 %1133  ;;  %2550 = vmatmul.mubr.msk.bf16.vlgmr.msra.gmra.mrb[20].mxu1 %vm1098_vm3, %v1144_v20  ;;  %v2818_v20 = vld [vmem:[#allocation12 + $0x64] ss:$16 sps:$4 sm:$0xff]  }
 0x82b   : > { %2894 = vrcp.f32 %v1134_v22  ;;  %2554 = vmatpush3.bf16.msra.mxu1 %v1149_v21  ;;  %2555 = vmatprep.mubr.msk.bf16.mxu1 %vm3221_vm1, %v3220_v59  ;;  %v2821_v21 = vld [vmem:[#allocation12 + $0x6c] ss:$16 sps:$4 sm:$0xff]   ;;  %v2816_v22 = vld [vmem:[#allocation12 + $0x60] ss:$16 sps:$4 sm:$0xff]  }
 0x82c   : > { %2559 = vmatprep.subr.bf16.mxu1 %v3220_v59 }
 0x82d   : > { %v2893_v23 = vpop.eup %2892 }
 0x82e   : > { %v1141_v24 = vmul.f32 %v2893_v23, %v2885_v7  ;;  %v2801_v7 = vld [vmem:[#allocation12 + $0x8] ss:$16 sps:$4 sm:$0xff]  }
 0x82f   : > { %v2819_v23 = vld [vmem:[#allocation12 + $0x68] ss:$16 sps:$4 sm:$0xff]  }
 0x830   : > { %v1145_v25 = vpack.c.bf16 %v1141_v24, %v1141_v24  ;;  %v2824_v24 = vld [vmem:[#allocation12 + $0x84] ss:$16 sps:$4 sm:$0xff]  }
 0x832   : > { %2556 = vmatmul.mubr.msk.bf16.vlgmr.msra.gmra.mrb[24].mxu1 %vm1098_vm3, %v1145_v25  ;;  %v2827_v25 = vld [vmem:[#allocation12 + $0x8c] ss:$16 sps:$4 sm:$0xff]  }
 0x833   : > { %2560 = vmatpush3.bf16.msra.mxu1 %v1150_v26  ;;  %2561 = vmatprep.mubr.msk.bf16.mxu1 %vm3221_vm1, %v3220_v59  ;;  %v2822_v26 = vld [vmem:[#allocation12 + $0x80] ss:$16 sps:$4 sm:$0xff]  }
 0x834   : > { %1695 = vmatprep.subr.bf16.mxu1 %v2800_v6  ;;  %v2863_v6 = vld [vmem:[#allocation13 + $0xe0] sm:$0xff]  }
 0x835   : > { %v2895_v27 = vpop.eup %2894 }
 0x836   : > { %v1142_v28 = vmul.f32 %v2895_v27, %v2887_v9  ;;  %v2806_v9 = vld [vmem:[#allocation12 + $0x24] ss:$16 sps:$4 sm:$0xff]   ;;  %v2825_v27 = vld [vmem:[#allocation12 + $0x88] ss:$16 sps:$4 sm:$0xff]  }
 0x838   : > { %v1146_v29 = vpack.c.bf16 %v1142_v28, %v1142_v28  ;;  %v2830_v28 = vld [vmem:[#allocation12 + $0xa4] ss:$16 sps:$4 sm:$0xff]  }
 0x83a   : > { %2562 = vmatmul.mubr.msk.bf16.vlgmr.msra.gmra.mrb[28].mxu1 %vm1098_vm3, %v1146_v29  ;;  %v2833_v29 = vld [vmem:[#allocation12 + $0xac] ss:$16 sps:$4 sm:$0xff]  }
 0x83b   : > { %1696 = vmatpush1.bf16.msra.mxu1 %v2798_v5  ;;  %1727 = vmatprep.mubr.bf16.mxu1 %v3225_v40  ;;  %v2862_v5 = vld [vmem:[#allocation13 + $0x60] sm:$0xff]  }
 0x83c   : > { %1697 = vmatprep.subr.bf16.mxu1 %v2806_v9  ;;  %v2866_v9 = vld [vmem:[#allocation13 + $0x68] sm:$0xff]  }
 0x83f   : > { %1698 = vmatpush1.bf16.msra.mxu1 %v2804_v11  ;;  %v2868_v11 = vld [vmem:[#allocation13 + $0x28] sm:$0xff]  }
 0x840   : > { %1699 = vmatprep.subr.bf16.mxu1 %v2812_v13  ;;  %v2870_v13 = vld [vmem:[#allocation13 + $0x70] sm:$0xff]  }
 0x843   : > { %1700 = vmatpush1.bf16.msra.mxu1 %v2810_v14  ;;  %v2872_v14 = vld [vmem:[#allocation13 + $0x30] sm:$0xff]  }
 0x844   : > { %1701 = vmatprep.subr.bf16.mxu1 %v2818_v20  ;;  %v1515_v20 = vlaneseq }
 0x847   : > { %1702 = vmatpush1.bf16.msra.mxu1 %v2816_v22 }
 0x848   : > { %1703 = vmatprep.subr.bf16.mxu1 %v2824_v24  ;;  %v1513_v24 = vld [vmem:[%s3899_s1] sm:$0xf]  ;;  %s3902_s1 = sld [smem:[#allocation37_spill]] }
 0x84b   : > { %1704 = vmatpush1.bf16.msra.mxu1 %v2822_v26 }
 0x84c   : > { %1705 = vmatprep.subr.bf16.mxu1 %v2830_v28 }
 0x84e   : > { %s3755_s20 = scalar_lea.hbm %s3902_s1, %s2415_s23 }
 0x88b   : > { %v1188_v30 = vpop.f32.mrb[16].mxu1 }
 0x88c   : > { %v2545_v31 = vpop.f32.mrb[17].mxu1 }
 0x88d   : > { %v1191_v32 = vpop.f32.mrb[18].mxu1  ;;  %v2831_v31 = vld [vmem:[#allocation12 + $0xa8] ss:$16 sps:$4 sm:$0xff]  }
 0x88e   : > { %v2546_v33 = vpop.f32.mrb[19].mxu1  ;;  %v2836_v32 = vld [vmem:[#allocation12 + $0xc4] ss:$16 sps:$4 sm:$0xff]  }
 0x88f   : > { %v2839_v33 = vld [vmem:[#allocation12 + $0xcc] ss:$16 sps:$4 sm:$0xff]  }
 0x8fd   : > { %v1231_v41 = vpop.f32.mrb[20].mxu1 }
 0x8fe   : > { %1324 = vrot.lane.b32.xlu1 %v1231_v41, %s3222_s15  ;;  %v2551_v42 = vpop.f32.mrb[21].mxu1  ;;  %v2846_v41 = vld [vmem:[#allocation13 + $0x40] sm:$0xff]   ;;  %s3898_s15 = sld [smem:[#allocation33_spill]] }
 0x8ff   : > { %v1234_v43 = vpop.f32.mrb[22].mxu1  ;;  %v2847_v42 = vld [vmem:[#allocation13 + $0xc0] sm:$0xff]  }
 0x900   : > { %v2552_v44 = vpop.f32.mrb[23].mxu1 }
 0x905   : > { %v1274_v46 = vpop.f32.mrb[24].mxu1 }
 0x906   : > { %1328 = vrot.lane.b32.xlu0 %v1274_v46, %s3224_s28  ;;  %v2557_v47 = vpop.f32.mrb[25].mxu1 }
 0x907   : > { %v1277_v48 = vpop.f32.mrb[26].mxu1  ;;  %v2346_v47 = vld [vmem:[%s3897_s5] ss:$0 sm:$0xff]  ;;  %s3901_s5 = sld [smem:[#allocation36_spill]] }
 0x908   : > { %v2558_v49 = vpop.f32.mrb[27].mxu1 }
 0x909   : > { %v2347_v49 = vld [vmem:[%s3898_s15] ss:$0 sm:$0xff]  ;;  %s2146_s15 = sshll.u32 %s545_s12, 4  ;;  %s3757_s15 = int_to_ptr.vmem [resolvable:$true] %s2146_s15 }
 0x90a   : > { %s3068_s21 = scalar_lea.vmem %s3757_s15, 128  ;;  %p3075_p8 = scmp.lt.s32.totalorder %s3757_s15, %s3073_s7 }
 0x90b   : > { %p3069_p2 = scmp.ne.s32.totalorder %s3757_s15, %s3068_s21 }
 0x90d   : > { %v1317_v50 = vpop.f32.mrb[28].mxu1  ;;  %p3070_p9 = pnand %p3069_p2, %p3903_p6 }
 0x90e   : > { %1332 = vrot.lane.b32.xlu1 %v1317_v50, %s3223_s24  ;;  %v2563_v51 = vpop.f32.mrb[29].mxu1 }
 0x90f   : > { %v1320_v52 = vpop.f32.mrb[30].mxu1  ;;  %p3071_p11 = pneg %p3070_p9 }
 0x910   : > { %v2564_v53 = vpop.f32.mrb[31].mxu1  ;;  %v2848_v52 = vld [vmem:[#allocation13] sm:$0xff]  }
 0x911   : > { %v2849_v53 = vld [vmem:[#allocation13 + $0x80] sm:$0xff]  }
 0x970   : > { %v1325_v54 = vpop.permute.xlu1 %1324 }
 0x971   : > { %v1335_v59 = vsel %vm913_vm2, %v1188_v30, %v1325_v54  ;;  %v2828_v30 = vld [vmem:[#allocation12 + $0xa0] ss:$16 sps:$4 sm:$0xff]  }
 0x972   : > { %1706 = vmatpush1.bf16.msra.mxu1 %v2828_v30 }
 0x973   : > { %1707 = vmatprep.subr.bf16.mxu1 %v2836_v32 }
 0x976   : > { %1708 = vmatpush1.bf16.msra.mxu1 %v2834_v34 }
 0x977   : > { %1709 = vmatprep.subr.bf16.mxu1 %v2842_v36 }
 0x978   : > { %v1329_v55 = vpop.permute.xlu0 %1328 }
 0x979   : > { %v1337_v57 = vsel %vm1336_vm4, %v1335_v59, %v1329_v55  ;;  %v2850_v55 = vld [vmem:[#allocation13 + $0x48] sm:$0xff]  }
 0x97a   : > { %1710 = vmatpush1.bf16.msra.mxu1 %v2840_v38  ;;  %v2851_v59 = vld [vmem:[#allocation13 + $0xc8] sm:$0xff]  }
 0x97b   : > { %2453 = vmatprep.subr.bf16.mxu1 %v2846_v41 }
 0x980   : > { %v1333_v58 = vpop.permute.xlu1 %1332 }
 0x981   : > { %v1339_v60 = vsel %vm1338_vm5, %v1337_v57, %v1333_v58  ;;  %v2852_v57 = vld [vmem:[#allocation13 + $0x8] sm:$0xff]  }
 0x982   : > { %v1340_v61 = vpack.c.bf16 %v1339_v60, %v1339_v60  ;;  %v2853_v58 = vld [vmem:[#allocation13 + $0x88] sm:$0xff]   ;;  %v2854_v60 = vld [vmem:[#allocation13 + $0x50] sm:$0xff]  }
 0x984   : > { %2582 = vmatmul.mubr.bf16.vlgmr.msra.gmra.mrb[4].mxu0 %v1340_v61  ;;  %v2855_v61 = vld [vmem:[#allocation13 + $0xd0] sm:$0xff]  }
 0x985   : > { %1737 = vmatpush1.bf16.msra.mxu0 %v2801_v7  ;;  %1768 = vmatprep.mubr.bf16.mxu0 %v3225_v40  ;;  %v2864_v7 = vld [vmem:[#allocation13 + $0x20] sm:$0xff]  }
 0x986   : > { %1738 = vmatprep.subr.bf16.mxu0 %v2809_v10  ;;  %v2867_v10 = vld [vmem:[#allocation13 + $0xe8] sm:$0xff]  }
 0x989   : > { %1739 = vmatpush1.bf16.msra.mxu0 %v2807_v12  ;;  %v2869_v12 = vld [vmem:[#allocation13 + $0xa8] sm:$0xff]  }
 0xa57   : > { %v1446_v63 = vpop.f32.mrb[4].mxu0 }
 0xa58   : > { %v1447_v0 = vadd.f32 %v2337_v62, %v1446_v63  ;;  %v2583_v1 = vpop.f32.mrb[5].mxu0  ;;  %v2856_v62 = vld [vmem:[#allocation13 + $0x10] sm:$0xff]  }
 0xa59   : > { %v1449_v2 = vpop.f32.mrb[6].mxu0  ;;  %v2857_v63 = vld [vmem:[#allocation13 + $0x90] sm:$0xff]   ;;  %v2859_v1 = vld [vmem:[#allocation13 + $0xd8] sm:$0xff]  }
 0xa5a   : > { %v3731_v3 = vadd.f32 %v1447_v0, %v3646_v56  ;;  %v2584_v4 = vpop.f32.mrb[7].mxu0  ;;  %v2815_v56 = vld [vmem:[#allocation12 + $0x4c] ss:$16 sps:$4 sm:$0xff]  }
 0xa5b   : > { %1740 = vmatprep.subr.bf16.mxu0 %v2815_v56  ;;  %v2858_v0 = vld [vmem:[#allocation13 + $0x58] sm:$0xff]   ;;  %v2871_v56 = vld [vmem:[#allocation13 + $0xf0] sm:$0xff]  }
 0xa5c   : > { %1455 = vadd.xlane.f32.xlu1 %v3731_v3  ;;  %1741 = vmatpush1.bf16.msra.mxu0 %v2813_v15  ;;  %v2860_v2 = vld [vmem:[#allocation13 + $0x18] sm:$0xff]   ;;  %v2873_v15 = vld [vmem:[#allocation13 + $0xb0] sm:$0xff]  }
 0xa5d   : > { %1742 = vmatprep.subr.bf16.mxu0 %v2821_v21  ;;  %v2861_v4 = vld [vmem:[#allocation13 + $0x98] sm:$0xff]   ;;  %v1516_v21 = vshrl.u32 %v1515_v20, 7 }
 0xa5f   : > { %v1517_v22 = vsub.s32 0, %v1516_v21  ;;  %v1529_v26 = vsub.s32 3, %v1516_v21 }
 0xa60   : > { %1743 = vmatpush1.bf16.msra.mxu0 %v2819_v23  ;;  %v1525_v23 = vsub.s32 2, %v1516_v21 }
 0xa61   : > { %1744 = vmatprep.subr.bf16.mxu0 %v2827_v25  ;;  %v1521_v25 = vsub.s32 1, %v1516_v21  ;;  %v1530_v30 = vrot.slane %v1513_v24, %v1529_v26 }
 0xa62   : > { %v1526_v28 = vrot.slane %v1513_v24, %v1525_v23 }
 0xa64   : > { %1745 = vmatpush1.bf16.msra.mxu0 %v2825_v27  ;;  %v1518_v27 = vrot.slane %v1513_v24, %v1517_v22 }
 0xa65   : > { %1746 = vmatprep.subr.bf16.mxu0 %v2833_v29  ;;  %v1522_v29 = vrot.slane %v1513_v24, %v1521_v25 }
 0xa68   : > { %1747 = vmatpush1.bf16.msra.mxu0 %v2831_v31 }
 0xa69   : > { %1748 = vmatprep.subr.bf16.mxu0 %v2839_v33 }
 0xa6c   : > { %1749 = vmatpush1.bf16.msra.mxu0 %v2837_v35 }
 0xa6d   : > { %1750 = vmatprep.subr.bf16.mxu0 %v2845_v37 }
 0xa70   : > { %1751 = vmatpush1.bf16.msra.mxu0 %v2843_v39 }
 0xa71   : > { %2475 = vmatprep.subr.bf16.mxu0 %v2847_v42 }
 0xae9   : > { %v1456_v16 = vpop.xlane.xlu1 %1455 }
 0xaea   : > { %v1457_v17 = vmul.f32 0.0078125, %v1456_v16  ;;  %v2874_v16 = vld [vmem:[#allocation13 + $0x78] sm:$0xff]  }
 0xaec   : > { %v1458_v18 = vsub.f32 %v3731_v3, %v1457_v17  ;;  %v2875_v17 = vld [vmem:[#allocation13 + $0xf8] sm:$0xff]  }
 0xaee   : > { %v1459_v19 = vmul.f32 %v1458_v18, %v1458_v18 }
 0xaf0   : > { %1460 = vadd.xlane.f32.xlu0 %v1459_v19  ;;  %v2877_v19 = vld [vmem:[#allocation13 + $0xb8] sm:$0xff]  }
 0xb7d   : > { %v1461_v43 = vpop.xlane.xlu0 %1460 }
 0xb7e   : > { %v1462_v44 = vmul.f32 0.0078125, %v1461_v43 }
 0xb80   : > { %v1463_v45 = vadd.f32 1e-05, %v1462_v44 }
 0xb82   : > { %2896 = vrsqrt.f32 %v1463_v45 }
 0xb8c   : > { %v2897_v46 = vpop.eup %2896 }
 0xb8d   : > { %v1465_v48 = vmul.f32 %v2897_v46, %v1458_v18  ;;  %v2876_v18 = vld [vmem:[#allocation13 + $0x38] sm:$0xff]  }
 0xb8f   : > { %v1472_v50 = vmul.f32 %v2346_v47, %v1465_v48 }
 0xb91   : > { %v1479_v51 = vadd.f32 %v2347_v49, %v1472_v50 }
 0xb93   : > { %v1480_v54 = vpack.c.bf16 %v1479_v51, %v1479_v51 }
 0xb95   : > { %1728 = vmatmul.mubr.bf16.vlgmr.msra.gmra.mrb[32].mxu1 %v1480_v54  ;;  %1769 = vmatmul.mubr.bf16.vlgmr.msra.gmra.mrb[8].mxu0 %v1480_v54 }
 0xb96   : > { %2454 = vmatpush3.bf16.msra.mxu1 %v2848_v52  ;;  %2476 = vmatpush3.bf16.msra.mxu0 %v2849_v53  ;;  %v2380_v53 = vld [vmem:[%s3901_s5] ss:$0 sm:$0xff]  ;;  %s3074_s5 = scalar_lea.vmem %s3073_s7, 256 }
 0xb97   : > { %2455 = vmatprep.subr.bf16.mxu1 %v2850_v55  ;;  %2477 = vmatprep.subr.bf16.mxu0 %v2851_v59  ;;  %p3076_p1 = scmp.lt.s32.totalorder %s3074_s5, %s3068_s21 }
 0xb99   : > { %p3077_p13 = por %p3076_p1, %p3075_p8 }
 0xb9a   : > { %2456 = vmatpush3.bf16.msra.mxu1 %v2852_v57  ;;  %2478 = vmatpush3.bf16.msra.mxu0 %v2853_v58 }
 0xb9b   : > { %2457 = vmatprep.subr.bf16.mxu1 %v2854_v60  ;;  %2479 = vmatprep.subr.bf16.mxu0 %v2855_v61  ;;  %p3078_p7 = pnand %p3077_p13, %p3071_p11 }
 0xb9e   : > { %2458 = vmatpush3.bf16.msra.mxu1 %v2856_v62  ;;  %2480 = vmatpush3.bf16.msra.mxu0 %v2857_v63 }
 0xb9f   : > { %2459 = vmatprep.subr.bf16.mxu1 %v2858_v0  ;;  %2481 = vmatprep.subr.bf16.mxu0 %v2859_v1 }
 0xba2   : > { %2460 = vmatpush3.bf16.msra.mxu1 %v2860_v2  ;;  %2482 = vmatpush3.bf16.msra.mxu0 %v2861_v4 }
 0xba3   : > { %2461 = vmatprep.subr.bf16.mxu1 %v2862_v5  ;;  %2483 = vmatprep.subr.bf16.mxu0 %v2863_v6 }
 0xba6   : > { %2462 = vmatpush3.bf16.msra.mxu1 %v2864_v7  ;;  %2484 = vmatpush3.bf16.msra.mxu0 %v2865_v8 }
 0xba7   : > { %2463 = vmatprep.subr.bf16.mxu1 %v2866_v9  ;;  %2485 = vmatprep.subr.bf16.mxu0 %v2867_v10 }
 0xbaa   : > { %2464 = vmatpush3.bf16.msra.mxu1 %v2868_v11  ;;  %2486 = vmatpush3.bf16.msra.mxu0 %v2869_v12 }
 0xbab   : > { %2465 = vmatprep.subr.bf16.mxu1 %v2870_v13  ;;  %2487 = vmatprep.subr.bf16.mxu0 %v2871_v56 }
 0xbae   : > { %2466 = vmatpush3.bf16.msra.mxu1 %v2872_v14  ;;  %2488 = vmatpush3.bf16.msra.mxu0 %v2873_v15 }
 0xbaf   : > { %2467 = vmatprep.subr.bf16.mxu1 %v2874_v16  ;;  %2489 = vmatprep.subr.bf16.mxu0 %v2875_v17 }
 0xbb2   : > { %2468 = vmatpush3.bf16.msra.mxu1 %v2876_v18  ;;  %2490 = vmatpush3.bf16.msra.mxu0 %v2877_v19 }
 0xc68   : > { %v1729_v31 = vpop.f32.mrb[32].mxu1  ;;  %v1770_v32 = vpop.f32.mrb[8].mxu0 }
 0xc69   : > { %v1730_v33 = vadd.f32 %v1729_v31, %v1518_v27  ;;  %v1771_v34 = vadd.f32 %v1770_v32, %v1526_v28  ;;  %v1731_v35 = vpop.f32.mrb[33].mxu1  ;;  %v1772_v36 = vpop.f32.mrb[9].mxu0 }
 0xc6a   : > { %v1732_v37 = vadd.f32 %v1731_v35, %v1522_v29  ;;  %v1773_v38 = vadd.f32 %v1772_v36, %v1530_v30  ;;  %v1733_v39 = vpop.f32.mrb[34].mxu1  ;;  %v1774_v40 = vpop.f32.mrb[10].mxu0 }
 0xc6b   : > { %v1777_v41 = vmax.f32 %v1730_v33, 0.0  ;;  %v1779_v42 = vmax.f32 %v1771_v34, 0.0  ;;  %v1734_v43 = vpop.f32.mrb[35].mxu1  ;;  %v1775_v44 = vpop.f32.mrb[11].mxu0 }
 0xc6c   : > { %v1778_v45 = vmax.f32 %v1732_v37, 0.0  ;;  %v1780_v46 = vmax.f32 %v1773_v38, 0.0 }
 0xc6d   : > { %v1781_v49 = vpack.c.bf16 %v1777_v41, %v1777_v41  ;;  %v1783_v50 = vpack.c.bf16 %v1779_v42, %v1779_v42 }
 0xc6e   : > { %v1782_v47 = vpack.c.bf16 %v1778_v45, %v1778_v45  ;;  %v1784_v48 = vpack.c.bf16 %v1780_v46, %v1780_v46 }
 0xc70   : > { %2080 = vmatprep.mubr.bf16.mxu1 %v1782_v47  ;;  %2120 = vmatprep.mubr.bf16.mxu0 %v1784_v48 }
 0xc71   : > { %2081 = vmatmul.mubr.bf16.vlgmr.msra.gmra.mrb[36].mxu1 %v1781_v49  ;;  %2121 = vmatmul.mubr.bf16.vlgmr.msra.gmra.mrb[12].mxu0 %v1783_v50 }
 0xd44   : > { %v2469_v51 = vpop.f32.mrb[36].mxu1  ;;  %v2491_v52 = vpop.f32.mrb[12].mxu0 }
 0xd45   : > { %v2470_v54 = vpop.f32.mrb[37].mxu1  ;;  %v2492_v55 = vpop.f32.mrb[13].mxu0 }
 0xd46   : > { %v2471_v59 = vadd.f32 %v2470_v54, %v2469_v51  ;;  %v2493_v57 = vadd.f32 %v2492_v55, %v2491_v52  ;;  %v2472_v58 = vpop.f32.mrb[38].mxu1  ;;  %v2494_v60 = vpop.f32.mrb[14].mxu0 }
 0xd47   : > { %v2473_v61 = vpop.f32.mrb[39].mxu1  ;;  %v2495_v62 = vpop.f32.mrb[15].mxu0 }
 0xd48   : > { %v2083_v63 = vadd.f32 %v2471_v59, %v2380_v53 }
 0xd4a   : > { %v2123_v0 = vadd.f32 %v2493_v57, %v2083_v63 }
 0xd4c   : > { %v2128_v1 = vadd.f32 %v2123_v0, %v3731_v3 }
 0xd4e   : > { %2129 = vst [vmem:[%s545_s12] sm:$0xff] %v2128_v1 }
 0xd4f   : > { %3081 = shalt.err (!%p3078_p7)
}
 0xd50   : > { %s3082_s4 = scalar_lea.hbm %s3755_s20, 128  ;;  %s3086_s9 = scalar_lea.hbm %s3902_s1, 512 }
 0xd51   : > { %p3083_p0 = scmp.ne.s32.totalorder %s3755_s20, %s3082_s4  ;;  %p3087_p3 = scmp.lt.u32.totalorder %s3755_s20, %s3902_s1 }
 0xd52   : > { %p3088_p12 = scmp.lt.u32.totalorder %s3086_s9, %s3082_s4  ;;  %p3090_p2 = scmp.lt.u32.totalorder %s3082_s4, %s3755_s20 }
 0xd53   : > { %p3084_p4 = pnand %p3083_p0, %p3903_p6 }
 0xd54   : > { %p3089_p5 = por %p3088_p12, %p3087_p3 }
 0xd55   : > { %p3085_p10 = pneg %p3084_p4 }
 0xd56   : > { %p3091_p9 = por %p3090_p2, %p3089_p5 }
 0xd58   : > { %p3092_p11 = pnand %p3091_p9, %p3085_p10 }
 0xd5a   : > { %3095 = shalt.err (!%p3092_p11)
}
 0xd5b   : > { %2607 = dma.vmem_to_hbm [thread:$0]  (%p3903_p6), %s3757_s15, 128, %s3755_s20, %s2131_s3  }
 0xd5c PF: > { %p2644_p8 = scmp.ge.s32.totalorder %s3202_s18, 2  ;;  %s2158_s28 = sand.u32 1, %s3162_s25  }
 0xd5d   : > { %p3904_p1 = scmp.ne.s32.totalorder %s3882_s0, 0  ;;  %s2159_s21 = scalar_lea.sflag [#allocation6], %s2158_s28 }
 0xd5f   : > { %p2630_p13 = pnand %p2644_p8, %p3904_p1 }
 0xd61   : > { %3157 = dma.done.wait (!%p2630_p13), %s2159_s21, 128  }
 0xd62   : > { %3159 = vsyncadd (!%p2630_p13), %s2159_s21, 4294967168  ;;  %s32_s18 = sadd.s32 1, %s3202_s18   ;;  %s3905_s25 = smov %s3166_s26 }
 0xd63   : > { %p29_p7 = scmp.ge.s32.totalorder %s32_s18, 6   ;;  %s3906_s26 = smov %s3170_s27 }
 0xd64   : > { %s3907_s27 = smov %s3547_s14  ;;  %s3908_s28 = smov %s3178_s29 }
 0xd65   : > { %s3909_s29 = smov %s3182_s30  ;;  %s3910_s30 = smov %s3544_s8 }
 0xd66   : > { %s3911_s14 = smov %s3194_s16  ;;  %s3912_s15 = smov %s3198_s17 }
 0xd67   : > { %s3913_s16 = smov %s3916_s13  ;;  %s3914_s17 = smov %s3920_s6 }
 0xd68   :  { %31 = sbr.rel (!%p29_p7) target bundleno = 26 (0x1a), region = 142 }
 0xd6f   :  { %2164 = vsyncpa [#allocation5], 1 }
 0xd70   :  { %2166 = vsyncpa [#allocation5 + $0x1], 1 }
 0xd71   :  { %2167 = vsyncpa [#allocation8], 1 }
 0xd72   :  { %2168 = vsyncpa [#allocation11], 1 }
 0xd73   :  { %2169 = vsyncpa [#allocation14], 1 }
 0xd74   :  { %2170 = vsyncpa [#allocation6], 1 }
 0xd75   :  { %2172 = vsyncpa [#allocation6 + $0x1], 1 }

</bundles_post_ra>
